<compile_context>
chip_gen: v6e
topology: v6e:2x2x1
jax: 0.10.0
libtpu: 0.0.40
codegen_flags: <defaults>
</compile_context>

<pallas_src>
import functools

import jax
import jax.numpy as jnp
from jax.experimental import pallas as pl
from jax.experimental.pallas import tpu as pltpu


# ---------------------------------------------------------------------------
# helpers
# ---------------------------------------------------------------------------
def _m_tile(m, cap=512):
    """Multiple-of-8 row tile <= cap, giving >= 2 grid steps when m allows."""
    if m <= 8:
        return m
    tm = min(cap, ((m + 1) // 2 + 7) // 8 * 8)   # ~ceil(m/2), rounded up to 8
    return max(8, tm)


def _pick_channel_block(c):
    """Channel (lane) block for the fused pool+cv2 kernel."""
    if c <= 512 or c % 128 != 0:
        return c            # single block: w2 block index is grid-constant
    for cb in (512, 256, 128):
        if c % cb == 0:
            return cb
    return c


# ---------------------------------------------------------------------------
# Kernel 1: cv1  —  1x1 conv + folded BatchNorm + SiLU, tiled over M rows
# ---------------------------------------------------------------------------
def _pw_conv_bn_silu_kernel(x_ref, w_ref, s_ref, b_ref, o_ref):
    # bf16 operands (pre-cast in the wrapper), f32 accumulation + BN/SiLU.
    y = jnp.dot(x_ref[...], w_ref[...], preferred_element_type=jnp.float32)
    y = y * s_ref[...] + b_ref[...]                      # folded BatchNorm
    o_ref[...] = (y * jax.nn.sigmoid(y)).astype(o_ref.dtype)   # SiLU


def pointwise_conv_bn_silu(x2d, w, scale, bias, out_dtype=jnp.bfloat16,
                           m_tile_cap=512):
    """x2d: (M, Cin) bf16, w: (Cin, Cout) bf16, scale/bias: (1, Cout) f32."""
    M, Cin = x2d.shape
    Cout = w.shape[1]
    TM = _m_tile(M, m_tile_cap)
    return pl.pallas_call(
        _pw_conv_bn_silu_kernel,
        out_shape=jax.ShapeDtypeStruct((M, Cout), out_dtype),
        grid_spec=pltpu.PrefetchScalarGridSpec(
            num_scalar_prefetch=0,
            grid=(pl.cdiv(M, TM),),
            in_specs=[
                pl.BlockSpec((TM, Cin), lambda i: (i, 0)),
                pl.BlockSpec((Cin, Cout), lambda i: (0, 0)),
                pl.BlockSpec((1, Cout), lambda i: (0, 0)),
                pl.BlockSpec((1, Cout), lambda i: (0, 0)),
            ],
            out_specs=pl.BlockSpec((TM, Cout), lambda i: (i, 0)),
        ),
        compiler_params=pltpu.CompilerParams(
            dimension_semantics=("parallel",)),
    )(x2d, w, scale, bias)


# ---------------------------------------------------------------------------
# Kernel 2: FUSED  (3 chained 5x5/s1/p2 max pools) + cv2 on implicit concat
# ---------------------------------------------------------------------------
def _pool_cv2_kernel(x_ref, w_ref, s_ref, b_ref, o_ref, pad_ref, acc_ref,
                     *, H, W):
    c = pl.program_id(1)

    @pl.when(c == 0)
    def _():
        acc_ref[...] = jnp.zeros(acc_ref.shape, acc_ref.dtype)

    cb = x_ref.shape[-1]
    HW = H * W

    def mm(feat_2d_bf16, j):
        return jnp.dot(feat_2d_bf16, w_ref[j],
                       preferred_element_type=jnp.float32)

    # -inf border written once per grid step; the centre store below never
    # touches the 2-wide border, so it survives all three chained pools.
    pad_ref[...] = jnp.full(pad_ref.shape, -jnp.inf, dtype=pad_ref.dtype)

    x0 = x_ref[0]                                    # (H, W, cb) bf16
    # NOTE: (H, W, cb) -> (H*W, cb) reshape is layout-free when W % 8 == 0.
    acc = acc_ref[...] + mm(x0.reshape(HW, cb), 0)

    cur = x0.astype(jnp.float32)
    for j in (1, 2, 3):                              # y1, y2, y3
        pad_ref[2:2 + H, 2:2 + W, :] = cur
        p = pad_ref[...]                             # (H+4, W+4, cb) f32
        # separable 5x5 max: 4 column maxes then 4 row maxes (8 vs 24 maxes)
        cp = p[:, 0:W, :]
        for dw in range(1, 5):
            cp = jnp.maximum(cp, p[:, dw:dw + W, :])
        r = cp[0:H, :, :]
        for dh in range(1, 5):
            r = jnp.maximum(r, cp[dh:dh + H, :, :])
        acc = acc + mm(r.reshape(HW, cb).astype(jnp.bfloat16), j)
        cur = r                                       # feed next pool

    acc_ref[...] = acc

    @pl.when(c == pl.num_programs(1) - 1)
    def _():
        y = acc_ref[...] * s_ref[...] + b_ref[...]   # folded BatchNorm (f32)
        o_ref[0] = (y * jax.nn.sigmoid(y)).astype(o_ref.dtype)   # SiLU


def fused_pool_cv2(xcv1_nhwc, w2r_bf16, scale2, bias2, out_dtype=jnp.float32):
    """xcv1: (N,H,W,c_) bf16; w2r: (4,c_,C2) bf16 -> (N, H*W, C2) out."""
    N, H, W, c_ = xcv1_nhwc.shape
    C2 = w2r_bf16.shape[2]
    HW = H * W
    cb = _pick_channel_block(c_)

    kernel = functools.partial(_pool_cv2_kernel, H=H, W=W)
    return pl.pallas_call(
        kernel,
        out_shape=jax.ShapeDtypeStruct((N, HW, C2), out_dtype),
        grid_spec=pltpu.PrefetchScalarGridSpec(
            num_scalar_prefetch=0,
            grid=(N, c_ // cb),
            in_specs=[
                pl.BlockSpec((1, H, W, cb), lambda n, c: (n, 0, 0, c)),
                pl.BlockSpec((4, cb, C2), lambda n, c: (0, c, 0)),
                pl.BlockSpec((1, C2), lambda n, c: (0, 0)),
                pl.BlockSpec((1, C2), lambda n, c: (0, 0)),
            ],
            out_specs=pl.BlockSpec((1, HW, C2), lambda n, c: (n, 0, 0)),
            scratch_shapes=[
                pltpu.VMEM((H + 4, W + 4, cb), jnp.float32),   # padded pool buf
                pltpu.VMEM((HW, C2), jnp.float32),             # cv2 accumulator
            ],
        ),
        compiler_params=pltpu.CompilerParams(
            dimension_semantics=("parallel", "arbitrary")),
    )(xcv1_nhwc, w2r_bf16, scale2, bias2)


# ---------------------------------------------------------------------------
# SPPF forward (wrapper: layout conversion / bf16 pre-casts / reshape glue)
# ---------------------------------------------------------------------------
def sppf_forward(x_nchw, params):
    N, C1, H, W = x_nchw.shape
    c_ = params["w1"].shape[1]
    C2 = params["w2"].shape[1]
    M = N * H * W

    # NCHW -> NHWC -> (M, C1); the bf16 cast fuses into the transpose copy.
    x2d = (jnp.transpose(x_nchw, (0, 2, 3, 1))
           .astype(jnp.bfloat16).reshape(M, C1))

    # Pre-cast weights to bf16 once, outside the kernels.
    w1 = params["w1"].astype(jnp.bfloat16)
    w2r = params["w2"].astype(jnp.bfloat16).reshape(4, c_, C2)

    # cv1: 1x1 conv + folded BN + SiLU (bf16 intermediate halves HBM traffic)
    xcv1 = pointwise_conv_bn_silu(
        x2d, w1, params["scale1"], params["bias1"]).reshape(N, H, W, c_)

    # fused: 3 chained 5x5 max pools + cv2 over the never-materialized concat
    out = fused_pool_cv2(xcv1, w2r, params["scale2"], params["bias2"])

    return jnp.transpose(out.reshape(N, H, W, C2), (0, 3, 1, 2))   # -> NCHW


# ---------------------------------------------------------------------------
# Parameters (BatchNorm folded into scale/bias) and a pure-JAX reference
# ---------------------------------------------------------------------------
def _fold_bn(gamma, beta, mean, var, eps=1e-5):
    scale = gamma / jnp.sqrt(var + eps)
    bias = beta - mean * scale
    return scale.reshape(1, -1), bias.reshape(1, -1)


def make_params(key, c1, c2):
    c_ = c1 // 2
    ks = jax.random.split(key, 10)
    w1 = 0.2 * jax.random.normal(ks[0], (c1, c_), jnp.float32)
    g1 = 1.0 + 0.1 * jax.random.normal(ks[1], (c_,), jnp.float32)
    b1 = 0.1 * jax.random.normal(ks[2], (c_,), jnp.float32)
    m1 = 0.1 * jax.random.normal(ks[3], (c_,), jnp.float32)
    v1 = 0.5 + jnp.abs(jax.random.normal(ks[4], (c_,), jnp.float32))
    scale1, bias1 = _fold_bn(g1, b1, m1, v1)
    w2 = 0.2 * jax.random.normal(ks[5], (4 * c_, c2), jnp.float32)
    g2 = 1.0 + 0.1 * jax.random.normal(ks[6], (c2,), jnp.float32)
    b2 = 0.1 * jax.random.normal(ks[7], (c2,), jnp.float32)
    m2 = 0.1 * jax.random.normal(ks[8], (c2,), jnp.float32)
    v2 = 0.5 + jnp.abs(jax.random.normal(ks[9], (c2,), jnp.float32))
    scale2, bias2 = _fold_bn(g2, b2, m2, v2)
    return dict(w1=w1, scale1=scale1, bias1=bias1,
                w2=w2, scale2=scale2, bias2=bias2)


def _ref_sppf(x_nchw, params):
    """Pure-JAX f32 reference (same math as the PyTorch SPPF module)."""
    x = jnp.transpose(x_nchw, (0, 2, 3, 1))

    def conv(t, w, s, b):
        y = jnp.einsum('nhwc,cd->nhwd', t, w)
        y = y * s.reshape(1, 1, 1, -1) + b.reshape(1, 1, 1, -1)
        return y * jax.nn.sigmoid(y)

    def pool(t):
        _, Hh, Ww, _ = t.shape
        tp = jnp.pad(t, ((0, 0), (2, 2), (2, 2), (0, 0)),
                     constant_values=-jnp.inf)
        o = jnp.full_like(t, -jnp.inf)
        for dh in range(5):
            for dw in range(5):
                o = jnp.maximum(o, tp[:, dh:dh + Hh, dw:dw + Ww, :])
        return o

    xc = conv(x, params["w1"], params["scale1"], params["bias1"])
    p1 = pool(xc)
    p2 = pool(p1)
    p3 = pool(p2)
    cat = jnp.concatenate([xc, p1, p2, p3], axis=-1)
    out = conv(cat, params["w2"], params["scale2"], params["bias2"])
    return jnp.transpose(out, (0, 3, 1, 2))


if __name__ == "__main__":
    key = jax.random.PRNGKey(0)
    k_x, k_p = jax.random.split(key)

    # small shapes consistent with SPPF(c1=4, c2=8, k=5)
    N, C1, H, W = 2, 4, 16, 16
    C2 = 8

    x = jax.random.normal(k_x, (N, C1, H, W), jnp.float32)
    params = make_params(k_p, C1, C2)

    out = jax.jit(sppf_forward)(x, params)
    jax.block_until_ready(out)
    assert out.shape == (N, C2, H, W)

    ref = _ref_sppf(x, params)
    err = float(jnp.max(jnp.abs(out - ref)))
    assert err < 1e-1, f"max abs error vs reference too large: {err}"

    print("KERNEL_OK")
</pallas_src>

<mosaic_0001>
module attributes {stable_mosaic.version = 11 : i64} {
  func.func @_pw_conv_bn_silu_kernel(%arg0: i32, %arg1: memref<256x4xbf16, #tpu.memory_space<vmem>>, %arg2: memref<4x2xbf16, #tpu.memory_space<vmem>>, %arg3: memref<1x2xf32, #tpu.memory_space<vmem>>, %arg4: memref<1x2xf32, #tpu.memory_space<vmem>>, %arg5: memref<256x2xbf16, #tpu.memory_space<vmem>>) attributes {dimension_semantics = [#tpu.dimension_semantics<parallel>], iteration_bounds = array<i64: 2>, scalar_prefetch = 0 : i64, scratch_operands = 0 : i64, tpu.core_type = #tpu.core_type<tc>, window_params = [{transform_indices = @transform_0, window_bounds = array<i64: 256, 4>}, {pipeline_mode = #tpu.pipeline_mode<synchronous>, transform_indices = @transform_1, window_bounds = array<i64: 4, 2>}, {pipeline_mode = #tpu.pipeline_mode<synchronous>, transform_indices = @transform_2, window_bounds = array<i64: 1, 2>}, {pipeline_mode = #tpu.pipeline_mode<synchronous>, transform_indices = @transform_3, window_bounds = array<i64: 1, 2>}, {transform_indices = @transform_4, window_bounds = array<i64: 256, 2>}]} {
    %c0 = arith.constant 0 : index
    %c0_0 = arith.constant 0 : index
    %0 = vector.load %arg1[%c0, %c0_0] : memref<256x4xbf16, #tpu.memory_space<vmem>>, vector<256x4xbf16>
    %c0_1 = arith.constant 0 : index
    %c0_2 = arith.constant 0 : index
    %1 = vector.load %arg2[%c0_1, %c0_2] : memref<4x2xbf16, #tpu.memory_space<vmem>>, vector<4x2xbf16>
    %cst = arith.constant dense<0.000000e+00> : vector<256x2xf32>
    %2 = tpu.matmul %0, %1, %cst {dimension_numbers = #tpu.dot_dimension_numbers<[1], [0], [0], [1], [0, 0, 1, 1], [], []>} : vector<256x4xbf16>, vector<4x2xbf16>, vector<256x2xf32> -> vector<256x2xf32>
    %c0_3 = arith.constant 0 : index
    %c0_4 = arith.constant 0 : index
    %3 = vector.load %arg3[%c0_3, %c0_4] : memref<1x2xf32, #tpu.memory_space<vmem>>, vector<1x2xf32>
    %4 = vector.broadcast %3 : vector<1x2xf32> to vector<256x2xf32>
    %5 = arith.mulf %2, %4 : vector<256x2xf32>
    %c0_5 = arith.constant 0 : index
    %c0_6 = arith.constant 0 : index
    %6 = vector.load %arg4[%c0_5, %c0_6] : memref<1x2xf32, #tpu.memory_space<vmem>>, vector<1x2xf32>
    %7 = vector.broadcast %6 : vector<1x2xf32> to vector<256x2xf32>
    %8 = arith.addf %5, %7 : vector<256x2xf32>
    %9 = arith.negf %8 : vector<256x2xf32>
    %10 = math.exp %9 : vector<256x2xf32>
    %cst_7 = arith.constant 1.000000e+00 : f32
    %11 = vector.broadcast %cst_7 : f32 to vector<256x2xf32>
    %12 = arith.addf %11, %10 : vector<256x2xf32>
    %13 = arith.divf %11, %12 : vector<256x2xf32>
    %14 = arith.mulf %8, %13 : vector<256x2xf32>
    %15 = arith.truncf %14 : vector<256x2xf32> to vector<256x2xbf16>
    %c0_8 = arith.constant 0 : index
    %c0_9 = arith.constant 0 : index
    %16 = vector.load %arg5[%c0_8, %c0_9] : memref<256x2xbf16, #tpu.memory_space<vmem>>, vector<256x2xbf16>
    tpu.vector_store %arg5[%c0_8, %c0_9], %15 {strides = array<i32>} : memref<256x2xbf16, #tpu.memory_space<vmem>>, vector<256x2xbf16>,
    return
  }
  func.func @transform_0(%arg0: i32) -> (i32, i32) {
    %c0_i32 = arith.constant 0 : i32
    %c0_i32_0 = arith.constant 0 : i32
    return %arg0, %c0_i32 : i32, i32
  }
  func.func @transform_1(%arg0: i32) -> (i32, i32) {
    %c0_i32 = arith.constant 0 : i32
    %c0_i32_0 = arith.constant 0 : i32
    %c0_i32_1 = arith.constant 0 : i32
    return %c0_i32, %c0_i32_0 : i32, i32
  }
  func.func @transform_2(%arg0: i32) -> (i32, i32) {
    %c0_i32 = arith.constant 0 : i32
    %c0_i32_0 = arith.constant 0 : i32
    %c0_i32_1 = arith.constant 0 : i32
    return %c0_i32, %c0_i32_0 : i32, i32
  }
  func.func @transform_3(%arg0: i32) -> (i32, i32) {
    %c0_i32 = arith.constant 0 : i32
    %c0_i32_0 = arith.constant 0 : i32
    %c0_i32_1 = arith.constant 0 : i32
    return %c0_i32, %c0_i32_0 : i32, i32
  }
  func.func @transform_4(%arg0: i32) -> (i32, i32) {
    %c0_i32 = arith.constant 0 : i32
    %c0_i32_0 = arith.constant 0 : i32
    return %arg0, %c0_i32 : i32, i32
  }
}

module attributes {stable_mosaic.version = 11 : i64} {
  func.func @_pool_cv2_kernel(%arg0: i32, %arg1: i32, %arg2: memref<1x16x16x2xbf16, #tpu.memory_space<vmem>>, %arg3: memref<4x2x8xbf16, #tpu.memory_space<vmem>>, %arg4: memref<1x8xf32, #tpu.memory_space<vmem>>, %arg5: memref<1x8xf32, #tpu.memory_space<vmem>>, %arg6: memref<1x256x8xf32, #tpu.memory_space<vmem>>, %arg7: memref<20x20x2xf32, #tpu.memory_space<vmem>>, %arg8: memref<256x8xf32, #tpu.memory_space<vmem>>) attributes {dimension_semantics = [#tpu.dimension_semantics<parallel>, #tpu.dimension_semantics<arbitrary>], iteration_bounds = array<i64: 2, 1>, scalar_prefetch = 0 : i64, scratch_operands = 2 : i64, tpu.core_type = #tpu.core_type<tc>, window_params = [{transform_indices = @transform_0, window_bounds = array<i64: 1, 16, 16, 2>}, {transform_indices = @transform_1, window_bounds = array<i64: 4, 2, 8>}, {pipeline_mode = #tpu.pipeline_mode<synchronous>, transform_indices = @transform_2, window_bounds = array<i64: 1, 8>}, {pipeline_mode = #tpu.pipeline_mode<synchronous>, transform_indices = @transform_3, window_bounds = array<i64: 1, 8>}, {transform_indices = @transform_4, window_bounds = array<i64: 1, 256, 8>}]} {
    %c0_i32 = arith.constant 0 : i32
    %0 = arith.cmpi eq, %arg1, %c0_i32 : i32
    %1 = arith.extui %0 : i1 to i32
    %c0_i32_0 = arith.constant 0 : i32
    %2 = arith.cmpi ne, %1, %c0_i32_0 : i32
    scf.if %2 {
      %cst_44 = arith.constant 0.000000e+00 : f32
      %96 = vector.broadcast %cst_44 : f32 to vector<256x8xf32>
      %c0_45 = arith.constant 0 : index
      %c0_46 = arith.constant 0 : index
      %97 = vector.load %arg8[%c0_45, %c0_46] : memref<256x8xf32, #tpu.memory_space<vmem>>, vector<256x8xf32>
      tpu.vector_store %arg8[%c0_45, %c0_46], %96 {strides = array<i32>} : memref<256x8xf32, #tpu.memory_space<vmem>>, vector<256x8xf32>,
    } else {
    }
    %cst = arith.constant 0xFF800000 : f32
    %3 = vector.broadcast %cst : f32 to vector<20x20x2xf32>
    %c0 = arith.constant 0 : index
    %c0_1 = arith.constant 0 : index
    %c0_2 = arith.constant 0 : index
    %4 = vector.load %arg7[%c0, %c0_1, %c0_2] : memref<20x20x2xf32, #tpu.memory_space<vmem>>, vector<20x20x2xf32>
    tpu.vector_store %arg7[%c0, %c0_1, %c0_2], %3 {strides = array<i32>} : memref<20x20x2xf32, #tpu.memory_space<vmem>>, vector<20x20x2xf32>,
    %c0_3 = arith.constant 0 : index
    %c0_4 = arith.constant 0 : index
    %c0_5 = arith.constant 0 : index
    %c0_6 = arith.constant 0 : index
    %5 = vector.load %arg2[%c0_3, %c0_4, %c0_5, %c0_6] : memref<1x16x16x2xbf16, #tpu.memory_space<vmem>>, vector<1x16x16x2xbf16>
    %6 = vector.shape_cast %5 : vector<1x16x16x2xbf16> to vector<16x16x2xbf16>
    %c0_7 = arith.constant 0 : index
    %c0_8 = arith.constant 0 : index
    %7 = vector.load %arg8[%c0_7, %c0_8] : memref<256x8xf32, #tpu.memory_space<vmem>>, vector<256x8xf32>
    %8 = vector.shape_cast %6 : vector<16x16x2xbf16> to vector<256x2xbf16>
    %c0_9 = arith.constant 0 : index
    %c0_10 = arith.constant 0 : index
    %c0_11 = arith.constant 0 : index
    %9 = vector.load %arg3[%c0_9, %c0_10, %c0_11] : memref<4x2x8xbf16, #tpu.memory_space<vmem>>, vector<1x2x8xbf16>
    %10 = vector.shape_cast %9 : vector<1x2x8xbf16> to vector<2x8xbf16>
    %cst_12 = arith.constant dense<0.000000e+00> : vector<256x8xf32>
    %11 = tpu.matmul %8, %10, %cst_12 {dimension_numbers = #tpu.dot_dimension_numbers<[1], [0], [0], [1], [0, 0, 1, 1], [], []>} : vector<256x2xbf16>, vector<2x8xbf16>, vector<256x8xf32> -> vector<256x8xf32>
    %12 = arith.addf %7, %11 : vector<256x8xf32>
    %13 = arith.extf %6 : vector<16x16x2xbf16> to vector<16x16x2xf32>
    %c2 = arith.constant 2 : index
    %c2_13 = arith.constant 2 : index
    %c0_14 = arith.constant 0 : index
    %14 = vector.load %arg7[%c2, %c2_13, %c0_14] : memref<20x20x2xf32, #tpu.memory_space<vmem>>, vector<16x16x2xf32>
    tpu.vector_store %arg7[%c2, %c2_13, %c0_14], %13 {strides = array<i32>} : memref<20x20x2xf32, #tpu.memory_space<vmem>>, vector<16x16x2xf32>,
    %c0_15 = arith.constant 0 : index
    %c0_16 = arith.constant 0 : index
    %c0_17 = arith.constant 0 : index
    %15 = vector.load %arg7[%c0_15, %c0_16, %c0_17] : memref<20x20x2xf32, #tpu.memory_space<vmem>>, vector<20x20x2xf32>
    %16 = vector.extract_strided_slice %15 {offsets = [0, 0, 0], sizes = [20, 16, 2], strides = [1, 1, 1]} : vector<20x20x2xf32> to vector<20x16x2xf32>
    %17 = vector.extract_strided_slice %15 {offsets = [0, 1, 0], sizes = [20, 16, 2], strides = [1, 1, 1]} : vector<20x20x2xf32> to vector<20x16x2xf32>
    %18 = arith.maximumf %16, %17 : vector<20x16x2xf32>
    %19 = vector.extract_strided_slice %15 {offsets = [0, 2, 0], sizes = [20, 16, 2], strides = [1, 1, 1]} : vector<20x20x2xf32> to vector<20x16x2xf32>
    %20 = arith.maximumf %18, %19 : vector<20x16x2xf32>
    %21 = vector.extract_strided_slice %15 {offsets = [0, 3, 0], sizes = [20, 16, 2], strides = [1, 1, 1]} : vector<20x20x2xf32> to vector<20x16x2xf32>
    %22 = arith.maximumf %20, %21 : vector<20x16x2xf32>
    %23 = vector.extract_strided_slice %15 {offsets = [0, 4, 0], sizes = [20, 16, 2], strides = [1, 1, 1]} : vector<20x20x2xf32> to vector<20x16x2xf32>
    %24 = arith.maximumf %22, %23 : vector<20x16x2xf32>
    %25 = vector.extract_strided_slice %24 {offsets = [0, 0, 0], sizes = [16, 16, 2], strides = [1, 1, 1]} : vector<20x16x2xf32> to vector<16x16x2xf32>
    %26 = vector.extract_strided_slice %24 {offsets = [1, 0, 0], sizes = [16, 16, 2], strides = [1, 1, 1]} : vector<20x16x2xf32> to vector<16x16x2xf32>
    %27 = arith.maximumf %25, %26 : vector<16x16x2xf32>
    %28 = vector.extract_strided_slice %24 {offsets = [2, 0, 0], sizes = [16, 16, 2], strides = [1, 1, 1]} : vector<20x16x2xf32> to vector<16x16x2xf32>
    %29 = arith.maximumf %27, %28 : vector<16x16x2xf32>
    %30 = vector.extract_strided_slice %24 {offsets = [3, 0, 0], sizes = [16, 16, 2], strides = [1, 1, 1]} : vector<20x16x2xf32> to vector<16x16x2xf32>
    %31 = arith.maximumf %29, %30 : vector<16x16x2xf32>
    %32 = vector.extract_strided_slice %24 {offsets = [4, 0, 0], sizes = [16, 16, 2], strides = [1, 1, 1]} : vector<20x16x2xf32> to vector<16x16x2xf32>
    %33 = arith.maximumf %31, %32 : vector<16x16x2xf32>
    %34 = vector.shape_cast %33 : vector<16x16x2xf32> to vector<256x2xf32>
    %35 = arith.truncf %34 : vector<256x2xf32> to vector<256x2xbf16>
    %c1 = arith.constant 1 : index
    %c0_18 = arith.constant 0 : index
    %c0_19 = arith.constant 0 : index
    %36 = vector.load %arg3[%c1, %c0_18, %c0_19] : memref<4x2x8xbf16, #tpu.memory_space<vmem>>, vector<1x2x8xbf16>
    %37 = vector.shape_cast %36 : vector<1x2x8xbf16> to vector<2x8xbf16>
    %cst_20 = arith.constant dense<0.000000e+00> : vector<256x8xf32>
    %38 = tpu.matmul %35, %37, %cst_20 {dimension_numbers = #tpu.dot_dimension_numbers<[1], [0], [0], [1], [0, 0, 1, 1], [], []>} : vector<256x2xbf16>, vector<2x8xbf16>, vector<256x8xf32> -> vector<256x8xf32>
    %39 = arith.addf %12, %38 : vector<256x8xf32>
    %c2_21 = arith.constant 2 : index
    %c2_22 = arith.constant 2 : index
    %c0_23 = arith.constant 0 : index
    %40 = vector.load %arg7[%c2_21, %c2_22, %c0_23] : memref<20x20x2xf32, #tpu.memory_space<vmem>>, vector<16x16x2xf32>
    tpu.vector_store %arg7[%c2_21, %c2_22, %c0_23], %33 {strides = array<i32>} : memref<20x20x2xf32, #tpu.memory_space<vmem>>, vector<16x16x2xf32>,
    %c0_24 = arith.constant 0 : index
    %c0_25 = arith.constant 0 : index
    %c0_26 = arith.constant 0 : index
    %41 = vector.load %arg7[%c0_24, %c0_25, %c0_26] : memref<20x20x2xf32, #tpu.memory_space<vmem>>, vector<20x20x2xf32>
    %42 = vector.extract_strided_slice %41 {offsets = [0, 0, 0], sizes = [20, 16, 2], strides = [1, 1, 1]} : vector<20x20x2xf32> to vector<20x16x2xf32>
    %43 = vector.extract_strided_slice %41 {offsets = [0, 1, 0], sizes = [20, 16, 2], strides = [1, 1, 1]} : vector<20x20x2xf32> to vector<20x16x2xf32>
    %44 = arith.maximumf %42, %43 : vector<20x16x2xf32>
    %45 = vector.extract_strided_slice %41 {offsets = [0, 2, 0], sizes = [20, 16, 2], strides = [1, 1, 1]} : vector<20x20x2xf32> to vector<20x16x2xf32>
    %46 = arith.maximumf %44, %45 : vector<20x16x2xf32>
    %47 = vector.extract_strided_slice %41 {offsets = [0, 3, 0], sizes = [20, 16, 2], strides = [1, 1, 1]} : vector<20x20x2xf32> to vector<20x16x2xf32>
    %48 = arith.maximumf %46, %47 : vector<20x16x2xf32>
    %49 = vector.extract_strided_slice %41 {offsets = [0, 4, 0], sizes = [20, 16, 2], strides = [1, 1, 1]} : vector<20x20x2xf32> to vector<20x16x2xf32>
    %50 = arith.maximumf %48, %49 : vector<20x16x2xf32>
    %51 = vector.extract_strided_slice %50 {offsets = [0, 0, 0], sizes = [16, 16, 2], strides = [1, 1, 1]} : vector<20x16x2xf32> to vector<16x16x2xf32>
    %52 = vector.extract_strided_slice %50 {offsets = [1, 0, 0], sizes = [16, 16, 2], strides = [1, 1, 1]} : vector<20x16x2xf32> to vector<16x16x2xf32>
    %53 = arith.maximumf %51, %52 : vector<16x16x2xf32>
    %54 = vector.extract_strided_slice %50 {offsets = [2, 0, 0], sizes = [16, 16, 2], strides = [1, 1, 1]} : vector<20x16x2xf32> to vector<16x16x2xf32>
    %55 = arith.maximumf %53, %54 : vector<16x16x2xf32>
    %56 = vector.extract_strided_slice %50 {offsets = [3, 0, 0], sizes = [16, 16, 2], strides = [1, 1, 1]} : vector<20x16x2xf32> to vector<16x16x2xf32>
    %57 = arith.maximumf %55, %56 : vector<16x16x2xf32>
    %58 = vector.extract_strided_slice %50 {offsets = [4, 0, 0], sizes = [16, 16, 2], strides = [1, 1, 1]} : vector<20x16x2xf32> to vector<16x16x2xf32>
    %59 = arith.maximumf %57, %58 : vector<16x16x2xf32>
    %60 = vector.shape_cast %59 : vector<16x16x2xf32> to vector<256x2xf32>
    %61 = arith.truncf %60 : vector<256x2xf32> to vector<256x2xbf16>
    %c2_27 = arith.constant 2 : index
    %c0_28 = arith.constant 0 : index
    %c0_29 = arith.constant 0 : index
    %62 = vector.load %arg3[%c2_27, %c0_28, %c0_29] : memref<4x2x8xbf16, #tpu.memory_space<vmem>>, vector<1x2x8xbf16>
    %63 = vector.shape_cast %62 : vector<1x2x8xbf16> to vector<2x8xbf16>
    %cst_30 = arith.constant dense<0.000000e+00> : vector<256x8xf32>
    %64 = tpu.matmul %61, %63, %cst_30 {dimension_numbers = #tpu.dot_dimension_numbers<[1], [0], [0], [1], [0, 0, 1, 1], [], []>} : vector<256x2xbf16>, vector<2x8xbf16>, vector<256x8xf32> -> vector<256x8xf32>
    %65 = arith.addf %39, %64 : vector<256x8xf32>
    %c2_31 = arith.constant 2 : index
    %c2_32 = arith.constant 2 : index
    %c0_33 = arith.constant 0 : index
    %66 = vector.load %arg7[%c2_31, %c2_32, %c0_33] : memref<20x20x2xf32, #tpu.memory_space<vmem>>, vector<16x16x2xf32>
    tpu.vector_store %arg7[%c2_31, %c2_32, %c0_33], %59 {strides = array<i32>} : memref<20x20x2xf32, #tpu.memory_space<vmem>>, vector<16x16x2xf32>,
    %c0_34 = arith.constant 0 : index
    %c0_35 = arith.constant 0 : index
    %c0_36 = arith.constant 0 : index
    %67 = vector.load %arg7[%c0_34, %c0_35, %c0_36] : memref<20x20x2xf32, #tpu.memory_space<vmem>>, vector<20x20x2xf32>
    %68 = vector.extract_strided_slice %67 {offsets = [0, 0, 0], sizes = [20, 16, 2], strides = [1, 1, 1]} : vector<20x20x2xf32> to vector<20x16x2xf32>
    %69 = vector.extract_strided_slice %67 {offsets = [0, 1, 0], sizes = [20, 16, 2], strides = [1, 1, 1]} : vector<20x20x2xf32> to vector<20x16x2xf32>
    %70 = arith.maximumf %68, %69 : vector<20x16x2xf32>
    %71 = vector.extract_strided_slice %67 {offsets = [0, 2, 0], sizes = [20, 16, 2], strides = [1, 1, 1]} : vector<20x20x2xf32> to vector<20x16x2xf32>
    %72 = arith.maximumf %70, %71 : vector<20x16x2xf32>
    %73 = vector.extract_strided_slice %67 {offsets = [0, 3, 0], sizes = [20, 16, 2], strides = [1, 1, 1]} : vector<20x20x2xf32> to vector<20x16x2xf32>
    %74 = arith.maximumf %72, %73 : vector<20x16x2xf32>
    %75 = vector.extract_strided_slice %67 {offsets = [0, 4, 0], sizes = [20, 16, 2], strides = [1, 1, 1]} : vector<20x20x2xf32> to vector<20x16x2xf32>
    %76 = arith.maximumf %74, %75 : vector<20x16x2xf32>
    %77 = vector.extract_strided_slice %76 {offsets = [0, 0, 0], sizes = [16, 16, 2], strides = [1, 1, 1]} : vector<20x16x2xf32> to vector<16x16x2xf32>
    %78 = vector.extract_strided_slice %76 {offsets = [1, 0, 0], sizes = [16, 16, 2], strides = [1, 1, 1]} : vector<20x16x2xf32> to vector<16x16x2xf32>
    %79 = arith.maximumf %77, %78 : vector<16x16x2xf32>
    %80 = vector.extract_strided_slice %76 {offsets = [2, 0, 0], sizes = [16, 16, 2], strides = [1, 1, 1]} : vector<20x16x2xf32> to vector<16x16x2xf32>
    %81 = arith.maximumf %79, %80 : vector<16x16x2xf32>
    %82 = vector.extract_strided_slice %76 {offsets = [3, 0, 0], sizes = [16, 16, 2], strides = [1, 1, 1]} : vector<20x16x2xf32> to vector<16x16x2xf32>
    %83 = arith.maximumf %81, %82 : vector<16x16x2xf32>
    %84 = vector.extract_strided_slice %76 {offsets = [4, 0, 0], sizes = [16, 16, 2], strides = [1, 1, 1]} : vector<20x16x2xf32> to vector<16x16x2xf32>
    %85 = arith.maximumf %83, %84 : vector<16x16x2xf32>
    %86 = vector.shape_cast %85 : vector<16x16x2xf32> to vector<256x2xf32>
    %87 = arith.truncf %86 : vector<256x2xf32> to vector<256x2xbf16>
    %c3 = arith.constant 3 : index
    %c0_37 = arith.constant 0 : index
    %c0_38 = arith.constant 0 : index
    %88 = vector.load %arg3[%c3, %c0_37, %c0_38] : memref<4x2x8xbf16, #tpu.memory_space<vmem>>, vector<1x2x8xbf16>
    %89 = vector.shape_cast %88 : vector<1x2x8xbf16> to vector<2x8xbf16>
    %cst_39 = arith.constant dense<0.000000e+00> : vector<256x8xf32>
    %90 = tpu.matmul %87, %89, %cst_39 {dimension_numbers = #tpu.dot_dimension_numbers<[1], [0], [0], [1], [0, 0, 1, 1], [], []>} : vector<256x2xbf16>, vector<2x8xbf16>, vector<256x8xf32> -> vector<256x8xf32>
    %91 = arith.addf %65, %90 : vector<256x8xf32>
    %c0_40 = arith.constant 0 : index
    %c0_41 = arith.constant 0 : index
    %92 = vector.load %arg8[%c0_40, %c0_41] : memref<256x8xf32, #tpu.memory_space<vmem>>, vector<256x8xf32>
    tpu.vector_store %arg8[%c0_40, %c0_41], %91 {strides = array<i32>} : memref<256x8xf32, #tpu.memory_space<vmem>>, vector<256x8xf32>,
    %c0_i32_42 = arith.constant 0 : i32
    %93 = arith.cmpi eq, %arg1, %c0_i32_42 : i32
    %94 = arith.extui %93 : i1 to i32
    %c0_i32_43 = arith.constant 0 : i32
    %95 = arith.cmpi ne, %94, %c0_i32_43 : i32
    scf.if %95 {
      %c0_44 = arith.constant 0 : index
      %c0_45 = arith.constant 0 : index
      %96 = vector.load %arg8[%c0_44, %c0_45] : memref<256x8xf32, #tpu.memory_space<vmem>>, vector<256x8xf32>
      %c0_46 = arith.constant 0 : index
      %c0_47 = arith.constant 0 : index
      %97 = vector.load %arg4[%c0_46, %c0_47] : memref<1x8xf32, #tpu.memory_space<vmem>>, vector<1x8xf32>
      %98 = vector.broadcast %97 : vector<1x8xf32> to vector<256x8xf32>
      %99 = arith.mulf %96, %98 : vector<256x8xf32>
      %c0_48 = arith.constant 0 : index
      %c0_49 = arith.constant 0 : index
      %100 = vector.load %arg5[%c0_48, %c0_49] : memref<1x8xf32, #tpu.memory_space<vmem>>, vector<1x8xf32>
      %101 = vector.broadcast %100 : vector<1x8xf32> to vector<256x8xf32>
      %102 = arith.addf %99, %101 : vector<256x8xf32>
      %103 = arith.negf %102 : vector<256x8xf32>
      %104 = math.exp %103 : vector<256x8xf32>
      %cst_50 = arith.constant 1.000000e+00 : f32
      %105 = vector.broadcast %cst_50 : f32 to vector<256x8xf32>
      %106 = arith.addf %105, %104 : vector<256x8xf32>
      %107 = arith.divf %105, %106 : vector<256x8xf32>
      %108 = arith.mulf %102, %107 : vector<256x8xf32>
      %c0_51 = arith.constant 0 : index
      %c0_52 = arith.constant 0 : index
      %c0_53 = arith.constant 0 : index
      %109 = vector.load %arg6[%c0_51, %c0_52, %c0_53] : memref<1x256x8xf32, #tpu.memory_space<vmem>>, vector<1x256x8xf32>
      %110 = vector.shape_cast %109 : vector<1x256x8xf32> to vector<256x8xf32>
      %111 = vector.shape_cast %108 : vector<256x8xf32> to vector<1x256x8xf32>
      tpu.vector_store %arg6[%c0_51, %c0_52, %c0_53], %111 {strides = array<i32>} : memref<1x256x8xf32, #tpu.memory_space<vmem>>, vector<1x256x8xf32>,
    } else {
    }
    return
  }
  func.func @transform_0(%arg0: i32, %arg1: i32) -> (i32, i32, i32, i32) {
    %c0_i32 = arith.constant 0 : i32
    %c0_i32_0 = arith.constant 0 : i32
    %c0_i32_1 = arith.constant 0 : i32
    return %arg0, %c0_i32, %c0_i32_0, %arg1 : i32, i32, i32, i32
  }
  func.func @transform_1(%arg0: i32, %arg1: i32) -> (i32, i32, i32) {
    %c0_i32 = arith.constant 0 : i32
    %c0_i32_0 = arith.constant 0 : i32
    %c0_i32_1 = arith.constant 0 : i32
    return %c0_i32, %arg1, %c0_i32_0 : i32, i32, i32
  }
  func.func @transform_2(%arg0: i32, %arg1: i32) -> (i32, i32) {
    %c0_i32 = arith.constant 0 : i32
    %c0_i32_0 = arith.constant 0 : i32
    %c0_i32_1 = arith.constant 0 : i32
    return %c0_i32, %c0_i32_0 : i32, i32
  }
  func.func @transform_3(%arg0: i32, %arg1: i32) -> (i32, i32) {
    %c0_i32 = arith.constant 0 : i32
    %c0_i32_0 = arith.constant 0 : i32
    %c0_i32_1 = arith.constant 0 : i32
    return %c0_i32, %c0_i32_0 : i32, i32
  }
  func.func @transform_4(%arg0: i32, %arg1: i32) -> (i32, i32, i32) {
    %c0_i32 = arith.constant 0 : i32
    %c0_i32_0 = arith.constant 0 : i32
    %c0_i32_1 = arith.constant 0 : i32
    return %arg0, %c0_i32, %c0_i32_0 : i32, i32, i32
  }
}

</mosaic_0001>

<bundles_post_ra>
// kernel: sppf_forward.2
= control target key start
LH: loop header
LB: loop body
LE: loop exit
PB: predicated region body
PF: predicated region fallthrough
CT: control target
= control target key end

     0   :  { %s1429_s15 = smov 0   ;;  %s1779_s0 = inlined_call_operand.vmem [shape: bf16[512,4], index: 0, kind: input, shape index: {}]   ;;  %s1780_s1 = inlined_call_operand.vmem [shape: bf16[4,2], index: 1, kind: input, shape index: {}]   ;;  %s1781_s2 = inlined_call_operand.vmem [shape: f32[1,2], index: 2, kind: input, shape index: {}]   ;;  %s1782_s3 = inlined_call_operand.vmem [shape: f32[1,2], index: 3, kind: input, shape index: {}]   ;;  %s1783_s4 = inlined_call_operand.vmem [shape: bf16[512,2], index: 4, kind: output, shape index: {}]  }
   0x1 LB: > { %s1048_s16 = sadd.s32 4294967295, %s1402_s15   ;;  %p1052_p0 = scmp.ge.s32.totalorder %s1402_s15, 1  ;;  %s1402_s15 = sphi %s1429_s15, %s14_s15  }
   0x2   : > { %p163_p1 = scmp.lt.s32.totalorder %s1402_s15, 3 }
   0x4   : > { %p164_p2 = pnand %p1052_p0, %p163_p1 }
   0x5   : > { %s1053_s19 = sshll.u32 (!%p164_p2), %s1048_s16, 5 }
   0x6   : > { %167 = sbr.rel (%p164_p2) target bundleno = 297 (0x129), region = 36  ;;  %p190_p3 = scmp.lt.s32.totalorder (!%p164_p2), %s1053_s19, 63 }
   0xb   : > { %v234_v0 = vld [vmem:[%s1780_s1] sm:$0x3]  ;;  %vm364_vm0 = vcmask 1041408   ;;  %s1785_s19 = smov (!%p190_p3, %s1053_s19), 63  ;;  %vm315_vm1 = vcmask 31744   ;;  %vm959_vm2 = vcmask 11264  }
   0xc   : > { %1242 = vmatprep.subr.msk.bf16.mxu0 %vm364_vm0, %v234_v0  ;;  %1243 = vmatprep.subr.msk.bf16.mxu1 %vm364_vm0, %v234_v0  ;;  %v366_v1 = vsel %vm364_vm0, %v234_v0, 0  ;;  %s1054_s20 = sshll.u32 %s1785_s19, 2  ;;  %v1485_v18 = vld [vmem:[%s1781_s2] ss:$0 sm:$0xff] }
   0xd   : > { %1207 = vmatpush3.bf16.msra.mxu0 %v366_v1  ;;  %1241 = vmatpush3.bf16.msra.mxu1 %v366_v1  ;;  %s1448_s23 = scalar_lea.vmem %s1779_s0, %s1054_s20  ;;  %v1490_v20 = vld [vmem:[%s1782_s3] ss:$0 sm:$0xff]  ;;  %s1646_s30 = scalar_lea.vmem %s1783_s4, %s1054_s20 }
   0xe   : > { %v1252_v2 = vld [vmem:[%s1448_s23] sm:$0xff]   ;;  %v1254_v4 = vld [vmem:[%s1448_s23 + $0x8] sm:$0xff]   ;;  %v1256_v6 = vld [vmem:[%s1448_s23 + $0x10] sm:$0xff]  }
   0xf   : > { %v1253_v3 = vld [vmem:[%s1448_s23 + $0x40] sm:$0xff]   ;;  %1208 = vmatprep.mubr.msk.bf16.mxu0 %vm315_vm1, %v1252_v2  ;;  %v1255_v5 = vld [vmem:[%s1448_s23 + $0x48] sm:$0xff]   ;;  %v1257_v7 = vld [vmem:[%s1448_s23 + $0x50] sm:$0xff]  }
  0x10   : > { %1224 = vmatprep.mubr.msk.bf16.mxu1 %vm315_vm1, %v1253_v3  ;;  %1209 = vmatmul.mubr.msk.bf16.vlgmr.msra.gmra.mxu0 %vm315_vm1, %v1254_v4  ;;  %v1258_v8 = vld [vmem:[%s1448_s23 + $0x18] sm:$0xff]   ;;  %v1260_v10 = vld [vmem:[%s1448_s23 + $0x20] sm:$0xff]   ;;  %v1262_v12 = vld [vmem:[%s1448_s23 + $0x28] sm:$0xff]  }
  0x11   : > { %1225 = vmatmul.mubr.msk.bf16.vlgmr.msra.gmra.mxu1 %vm315_vm1, %v1255_v5  ;;  %1212 = vmatprep.mubr.msk.bf16.mxu0 %vm315_vm1, %v1256_v6  ;;  %v1259_v9 = vld [vmem:[%s1448_s23 + $0x58] sm:$0xff]   ;;  %v1261_v11 = vld [vmem:[%s1448_s23 + $0x60] sm:$0xff]   ;;  %v1263_v13 = vld [vmem:[%s1448_s23 + $0x68] sm:$0xff]  }
  0x12   : > { %1228 = vmatprep.mubr.msk.bf16.mxu1 %vm315_vm1, %v1257_v7  ;;  %v1264_v14 = vld [vmem:[%s1448_s23 + $0x30] sm:$0xff]   ;;  %v1266_v16 = vld [vmem:[%s1448_s23 + $0x38] sm:$0xff]  }
  0x13   : > { %v1265_v15 = vld [vmem:[%s1448_s23 + $0x70] sm:$0xff]   ;;  %v1267_v17 = vld [vmem:[%s1448_s23 + $0x78] sm:$0xff]  }
  0x18   : > { %1213 = vmatmul.mubr.msk.bf16.gmra.mxu0 %vm315_vm1, %v1258_v8 }
  0x19   : > { %1229 = vmatmul.mubr.msk.bf16.gmra.mxu1 %vm315_vm1, %v1259_v9  ;;  %1216 = vmatprep.mubr.msk.bf16.mxu0 %vm315_vm1, %v1260_v10 }
  0x1a   : > { %1232 = vmatprep.mubr.msk.bf16.mxu1 %vm315_vm1, %v1261_v11 }
  0x20   : > { %1217 = vmatmul.mubr.msk.bf16.gmra.mxu0 %vm315_vm1, %v1262_v12 }
  0x21   : > { %1233 = vmatmul.mubr.msk.bf16.gmra.mxu1 %vm315_vm1, %v1263_v13  ;;  %1220 = vmatprep.mubr.msk.bf16.mxu0 %vm315_vm1, %v1264_v14 }
  0x22   : > { %1236 = vmatprep.mubr.msk.bf16.mxu1 %vm315_vm1, %v1265_v15 }
  0x28   : > { %1221 = vmatmul.mubr.msk.bf16.gmra.mxu0 %vm315_vm1, %v1266_v16 }
  0x29   : > { %1237 = vmatmul.mubr.msk.bf16.gmra.mxu1 %vm315_vm1, %v1267_v17 }
  0xd0   : > { %v1210_v19 = vpop.f32.mrf.mxu0 }
  0xd1   : > { %v538_v21 = vmul.f32 %v1210_v19, %v1485_v18  ;;  %v1226_v22 = vpop.f32.mrf.mxu1 }
  0xd2   : > { %v554_v23 = vmul.f32 %v1226_v22, %v1485_v18  ;;  %v402_v24 = vpop.f32.mrf.mxu0 }
  0xd3   : > { %v1495_v25 = vadd.f32 %v1490_v20, %v538_v21  ;;  %v536_v26 = vmul.f32 %v1485_v18, %v402_v24  ;;  %v466_v27 = vpop.f32.mrf.mxu1 }
  0xd4   : > { %v1499_v28 = vadd.f32 %v1490_v20, %v554_v23  ;;  %v552_v29 = vmul.f32 %v1485_v18, %v466_v27  ;;  %v1211_v30 = vpop.f32.mrf.mxu0 }
  0xd5   : > { %v1093_v31 = vmul.f32 -1.442695, %v1495_v25  ;;  %v1504_v32 = vadd.f32 %v1490_v20, %v536_v26  ;;  %v539_v33 = vmul.f32 %v1211_v30, %v1485_v18  ;;  %v1227_v34 = vpop.f32.mrf.mxu1 }
  0xd6   : > { %v1109_v35 = vmul.f32 -1.442695, %v1499_v28  ;;  %v1509_v36 = vadd.f32 %v1490_v20, %v552_v29  ;;  %v555_v37 = vmul.f32 %v1227_v34, %v1485_v18  ;;  %v405_v38 = vpop.f32.mrf.mxu0 }
  0xd7   : > { %1268 = vpow2.f32 %v1093_v31  ;;  %v1091_v39 = vmul.f32 -1.442695, %v1504_v32  ;;  %v1514_v40 = vadd.f32 %v1490_v20, %v539_v33  ;;  %v537_v41 = vmul.f32 %v1485_v18, %v405_v38  ;;  %v469_v42 = vpop.f32.mrf.mxu1 }
  0xd8   : > { %1270 = vpow2.f32 %v1109_v35  ;;  %v1107_v43 = vmul.f32 -1.442695, %v1509_v36  ;;  %v1519_v44 = vadd.f32 %v1490_v20, %v555_v37  ;;  %v553_v45 = vmul.f32 %v1485_v18, %v469_v42  ;;  %v1214_v46 = vpop.f32.mrf.mxu0 }
  0xd9   : > { %1272 = vpow2.f32 %v1091_v39  ;;  %v1094_v47 = vmul.f32 -1.442695, %v1514_v40  ;;  %v1524_v48 = vadd.f32 %v1490_v20, %v537_v41  ;;  %v542_v49 = vmul.f32 %v1214_v46, %v1485_v18  ;;  %v1230_v50 = vpop.f32.mrf.mxu1 }
  0xda   : > { %1274 = vpow2.f32 %v1107_v43  ;;  %v1110_v51 = vmul.f32 -1.442695, %v1519_v44  ;;  %v1529_v52 = vadd.f32 %v1490_v20, %v553_v45  ;;  %v558_v53 = vmul.f32 %v1230_v50, %v1485_v18  ;;  %v418_v54 = vpop.f32.mrf.mxu0 }
  0xdb   : > { %1276 = vpow2.f32 %v1094_v47  ;;  %v1092_v55 = vmul.f32 -1.442695, %v1524_v48  ;;  %v1534_v56 = vadd.f32 %v1490_v20, %v542_v49  ;;  %v540_v57 = vmul.f32 %v1485_v18, %v418_v54  ;;  %v482_v58 = vpop.f32.mrf.mxu1 }
  0xdc   : > { %1278 = vpow2.f32 %v1110_v51  ;;  %v1108_v59 = vmul.f32 -1.442695, %v1529_v52  ;;  %v1539_v60 = vadd.f32 %v1490_v20, %v558_v53  ;;  %v556_v61 = vmul.f32 %v1485_v18, %v482_v58  ;;  %v1215_v62 = vpop.f32.mrf.mxu0 }
  0xdd   : > { %1280 = vpow2.f32 %v1092_v55  ;;  %v1097_v63 = vmul.f32 -1.442695, %v1534_v56  ;;  %v1544_v0 = vadd.f32 %v1490_v20, %v540_v57  ;;  %v543_v1 = vmul.f32 %v1215_v62, %v1485_v18  ;;  %v1231_v2 = vpop.f32.mrf.mxu1 }
  0xde   : > { %1282 = vpow2.f32 %v1108_v59  ;;  %v1113_v3 = vmul.f32 -1.442695, %v1539_v60  ;;  %v1549_v4 = vadd.f32 %v1490_v20, %v556_v61  ;;  %v559_v5 = vmul.f32 %v1231_v2, %v1485_v18  ;;  %v421_v6 = vpop.f32.mrf.mxu0 }
  0xdf   : > { %1284 = vpow2.f32 %v1097_v63  ;;  %v1095_v7 = vmul.f32 -1.442695, %v1544_v0  ;;  %v1554_v8 = vadd.f32 %v1490_v20, %v543_v1  ;;  %v541_v9 = vmul.f32 %v1485_v18, %v421_v6  ;;  %v485_v10 = vpop.f32.mrf.mxu1 }
  0xe0   : > { %1286 = vpow2.f32 %v1113_v3  ;;  %v1111_v11 = vmul.f32 -1.442695, %v1549_v4  ;;  %v1559_v12 = vadd.f32 %v1490_v20, %v559_v5  ;;  %v557_v13 = vmul.f32 %v1485_v18, %v485_v10  ;;  %v1218_v14 = vpop.f32.mrf.mxu0 }
  0xe1   : > { %1288 = vpow2.f32 %v1095_v7  ;;  %v1098_v15 = vmul.f32 -1.442695, %v1554_v8  ;;  %v1564_v16 = vadd.f32 %v1490_v20, %v541_v9  ;;  %v546_v17 = vmul.f32 %v1218_v14, %v1485_v18  ;;  %v1234_v19 = vpop.f32.mrf.mxu1 }
  0xe2   : > { %1290 = vpow2.f32 %v1111_v11  ;;  %v1114_v21 = vmul.f32 -1.442695, %v1559_v12  ;;  %v1569_v22 = vadd.f32 %v1490_v20, %v557_v13  ;;  %v562_v23 = vmul.f32 %v1234_v19, %v1485_v18  ;;  %v434_v24 = vpop.f32.mrf.mxu0 }
  0xe3   : > { %1292 = vpow2.f32 %v1098_v15  ;;  %v1096_v26 = vmul.f32 -1.442695, %v1564_v16  ;;  %v544_v27 = vmul.f32 %v1485_v18, %v434_v24  ;;  %v498_v29 = vpop.f32.mrf.mxu1  ;;  %v1577_v38 = vadd.f32 %v1490_v20, %v546_v17 }
  0xe4   : > { %v1269_v30 = vpop.eup %1268  ;;  %1294 = vpow2.f32 %v1114_v21  ;;  %v1112_v31 = vmul.f32 -1.442695, %v1569_v22  ;;  %v560_v33 = vmul.f32 %v1485_v18, %v498_v29  ;;  %v1219_v34 = vpop.f32.mrf.mxu0  ;;  %v1580_v43 = vadd.f32 %v1490_v20, %v562_v23 }
  0xe5   : > { %v1271_v35 = vpop.eup %1270  ;;  %v705_v37 = vadd.f32 1.0, %v1269_v30  ;;  %1296 = vpow2.f32 %v1096_v26  ;;  %v1235_v39 = vpop.f32.mrf.mxu1  ;;  %v1583_v49 = vadd.f32 %v1490_v20, %v544_v27  ;;  %v1589_v59 = vmul.f32 -1.442695, %v1577_v38 }
  0xe6   : > { %v1273_v41 = vpop.eup %1272  ;;  %v721_v42 = vadd.f32 1.0, %v1271_v35  ;;  %1298 = vpow2.f32 %v1112_v31  ;;  %v437_v45 = vpop.f32.mrf.mxu0  ;;  %v1586_v54 = vadd.f32 %v1490_v20, %v560_v33  ;;  %v547_v61 = vmul.f32 %v1219_v34, %v1485_v18 }
  0xe7   : > { %v1275_v46 = vpop.eup %1274  ;;  %1300 = vrcp.f32 %v705_v37  ;;  %v703_v47 = vadd.f32 1.0, %v1273_v41  ;;  %v501_v50 = vpop.f32.mrf.mxu1  ;;  %v1593_v2 = vmul.f32 -1.442695, %v1580_v43  ;;  %v563_v3 = vmul.f32 %v1235_v39, %v1485_v18 }
  0xe8   : > { %v1277_v51 = vpop.eup %1276  ;;  %1302 = vrcp.f32 %v721_v42  ;;  %v719_v53 = vadd.f32 1.0, %v1275_v46  ;;  %v1222_v55 = vpop.f32.mrf.mxu0  ;;  %v1597_v7 = vmul.f32 -1.442695, %v1583_v49  ;;  %v545_v9 = vmul.f32 %v1485_v18, %v437_v45 }
  0xe9   : > { %v1279_v57 = vpop.eup %1278  ;;  %1304 = vrcp.f32 %v703_v47  ;;  %v706_v58 = vadd.f32 1.0, %v1277_v51  ;;  %v1238_v62 = vpop.f32.mrf.mxu1  ;;  %v1601_v13 = vmul.f32 -1.442695, %v1586_v54  ;;  %v561_v14 = vmul.f32 %v1485_v18, %v501_v50 }
  0xea   : > { %v1281_v63 = vpop.eup %1280  ;;  %1306 = vrcp.f32 %v719_v53  ;;  %v722_v1 = vadd.f32 1.0, %v1279_v57  ;;  %v450_v15 = vpop.f32.mrf.mxu0  ;;  %v1605_v21 = vadd.f32 %v1490_v20, %v547_v61  ;;  %v550_v23 = vmul.f32 %v1222_v55, %v1485_v18 }
  0xeb   : > { %v1283_v5 = vpop.eup %1282  ;;  %1308 = vrcp.f32 %v706_v58  ;;  %v704_v6 = vadd.f32 1.0, %v1281_v63  ;;  %v514_v24 = vpop.f32.mrf.mxu1  ;;  %v1609_v29 = vadd.f32 %v1490_v20, %v563_v3  ;;  %v566_v30 = vmul.f32 %v1238_v62, %v1485_v18 }
  0xec   : > { %v1285_v10 = vpop.eup %1284  ;;  %1310 = vrcp.f32 %v722_v1  ;;  %v720_v11 = vadd.f32 1.0, %v1283_v5  ;;  %v1613_v34 = vadd.f32 %v1490_v20, %v545_v9  ;;  %v548_v35 = vmul.f32 %v1485_v18, %v450_v15  ;;  %v1223_v58 = vpop.f32.mrf.mxu0 }
  0xed   : > { %v1287_v17 = vpop.eup %1286  ;;  %1312 = vrcp.f32 %v704_v6  ;;  %v709_v19 = vadd.f32 1.0, %v1285_v10  ;;  %v1617_v41 = vadd.f32 %v1490_v20, %v561_v14  ;;  %v564_v42 = vmul.f32 %v1485_v18, %v514_v24  ;;  %v1239_v3 = vpop.f32.mrf.mxu1 }
  0xee   : > { %v1289_v26 = vpop.eup %1288  ;;  %1314 = vrcp.f32 %v720_v11  ;;  %v725_v27 = vadd.f32 1.0, %v1287_v17  ;;  %v1621_v47 = vadd.f32 %v1490_v20, %v550_v23  ;;  %v1624_v50 = vadd.f32 %v1490_v20, %v566_v30 }
  0xef   : > { %v1291_v31 = vpop.eup %1290  ;;  %1316 = vrcp.f32 %v709_v19  ;;  %v707_v33 = vadd.f32 1.0, %v1289_v26  ;;  %v1102_v55 = vmul.f32 -1.442695, %v1605_v21  ;;  %v1628_v57 = vadd.f32 %v1490_v20, %v548_v35  ;;  %v453_v26 = vpop.f32.mrf.mxu0 }
  0xf0   : > { %v1293_v37 = vpop.eup %1292  ;;  %1318 = vrcp.f32 %v725_v27  ;;  %v723_v39 = vadd.f32 1.0, %v1291_v31  ;;  %v1118_v63 = vmul.f32 -1.442695, %v1609_v29  ;;  %v1632_v1 = vadd.f32 %v1490_v20, %v564_v42  ;;  %v517_v35 = vpop.f32.mrf.mxu1 }
  0xf1   : > { %v1295_v45 = vpop.eup %1294  ;;  %1320 = vrcp.f32 %v707_v33  ;;  %v710_v46 = vadd.f32 1.0, %v1293_v37  ;;  %v1100_v9 = vmul.f32 -1.442695, %v1613_v34  ;;  %v1116_v10 = vmul.f32 -1.442695, %v1617_v41 }
  0xf2   : > { %v1297_v51 = vpop.eup %1296  ;;  %1322 = vrcp.f32 %v723_v39  ;;  %v726_v53 = vadd.f32 1.0, %v1295_v45  ;;  %v1105_v15 = vmul.f32 -1.442695, %v1621_v47  ;;  %v1639_v17 = vmul.f32 -1.442695, %v1624_v50 }
  0xf3   : > { %v1299_v61 = vpop.eup %1298  ;;  %1324 = vrcp.f32 %v710_v46  ;;  %v708_v62 = vadd.f32 1.0, %v1297_v51  ;;  %v1650_v24 = vmul.f32 -1.442695, %v1628_v57  ;;  %v1656_v33 = vmul.f32 -1.442695, %v1632_v1 }
  0xf4   : > { %v1301_v5 = vpop.eup %1300  ;;  %1326 = vrcp.f32 %v726_v53  ;;  %v724_v6 = vadd.f32 1.0, %v1299_v61  ;;  %v567_v42 = vmul.f32 %v1239_v3, %v1485_v18 }
  0xf5   : > { %v1303_v11 = vpop.eup %1302  ;;  %v801_v14 = vmul.f32 %v1301_v5, %v1495_v25  ;;  %1328 = vrcp.f32 %v708_v62  ;;  %v551_v25 = vmul.f32 %v1223_v58, %v1485_v18 }
  0xf6   : > { %v1305_v19 = vpop.eup %1304  ;;  %v817_v23 = vmul.f32 %v1303_v11, %v1499_v28  ;;  %1330 = vrcp.f32 %v724_v6 }
  0xf7   : > { %v1307_v27 = vpop.eup %1306  ;;  %v1159_v30 = vpack.c.bf16 %v801_v14, %v801_v14  ;;  %v799_v31 = vmul.f32 %v1305_v19, %v1504_v32  ;;  %1332 = vpow2.f32 %v1589_v59  ;;  %v549_v59 = vmul.f32 %v1485_v18, %v453_v26 }
  0xf8   : > { %v1309_v28 = vpop.eup %1308  ;;  %v1175_v37 = vpack.c.bf16 %v817_v23, %v817_v23  ;;  %v815_v39 = vmul.f32 %v1307_v27, %v1509_v36  ;;  %1334 = vpow2.f32 %v1593_v2  ;;  %v565_v2 = vmul.f32 %v1485_v18, %v517_v35 }
  0xf9   : > { %v1311_v45 = vpop.eup %1310  ;;  %962 = vst.msk [vmem:[%s1646_s30 + $0x8] sm:$0xf] %vm959_vm2, %v1159_v30  ;;  %v1157_v32 = vpack.c.bf16 %v799_v31, %v799_v31  ;;  %v802_v46 = vmul.f32 %v1309_v28, %v1514_v40  ;;  %1336 = vpow2.f32 %v1597_v7  ;;  %v1675_v7 = vadd.f32 %v1490_v20, %v551_v25 }
  0xfa   : > { %v1313_v51 = vpop.eup %1312  ;;  %978 = vst.msk [vmem:[%s1646_s30 + $0x48] sm:$0xf] %vm959_vm2, %v1175_v37  ;;  %v1173_v36 = vpack.c.bf16 %v815_v39, %v815_v39  ;;  %v818_v53 = vmul.f32 %v1311_v45, %v1519_v44  ;;  %1338 = vpow2.f32 %v1601_v13  ;;  %v1681_v18 = vadd.f32 %v1490_v20, %v567_v42 }
  0xfb   : > { %v1315_v58 = vpop.eup %1314  ;;  %960 = vst.msk [vmem:[%s1646_s30] sm:$0xf] %vm959_vm2, %v1157_v32  ;;  %v1160_v40 = vpack.c.bf16 %v802_v46, %v802_v46  ;;  %v800_v61 = vmul.f32 %v1313_v51, %v1524_v48  ;;  %1340 = vpow2.f32 %v1102_v55  ;;  %v1687_v5 = vadd.f32 %v1490_v20, %v549_v59 }
  0xfc   : > { %v1317_v62 = vpop.eup %1316  ;;  %976 = vst.msk [vmem:[%s1646_s30 + $0x40] sm:$0xf] %vm959_vm2, %v1173_v36  ;;  %v1176_v44 = vpack.c.bf16 %v818_v53, %v818_v53  ;;  %v816_v3 = vmul.f32 %v1315_v58, %v1529_v52  ;;  %1342 = vpow2.f32 %v1118_v63  ;;  %v1693_v11 = vadd.f32 %v1490_v20, %v565_v2 }
  0xfd   : > { %v1319_v13 = vpop.eup %1318  ;;  %963 = vst.msk [vmem:[%s1646_s30 + $0xc] sm:$0xf] %vm959_vm2, %v1160_v40  ;;  %v1158_v48 = vpack.c.bf16 %v800_v61, %v800_v61  ;;  %v805_v55 = vmul.f32 %v1317_v62, %v1534_v56  ;;  %1344 = vpow2.f32 %v1100_v9  ;;  %v1106_v19 = vmul.f32 -1.442695, %v1675_v7 }
  0xfe   : > { %v1321_v6 = vpop.eup %1320  ;;  %979 = vst.msk [vmem:[%s1646_s30 + $0x4c] sm:$0xf] %vm959_vm2, %v1176_v44  ;;  %v1174_v52 = vpack.c.bf16 %v816_v3, %v816_v3  ;;  %v821_v63 = vmul.f32 %v1319_v13, %v1539_v60  ;;  %1346 = vpow2.f32 %v1116_v10  ;;  %v1122_v20 = vmul.f32 -1.442695, %v1681_v18 }
  0xff   : > { %v1323_v14 = vpop.eup %1322  ;;  %961 = vst.msk [vmem:[%s1646_s30 + $0x4] sm:$0xf] %vm959_vm2, %v1158_v48  ;;  %v1163_v56 = vpack.c.bf16 %v805_v55, %v805_v55  ;;  %v803_v9 = vmul.f32 %v1321_v6, %v1544_v0  ;;  %1348 = vpow2.f32 %v1105_v15  ;;  %v1104_v15 = vmul.f32 -1.442695, %v1687_v5 }
 0x100   : > { %v1325_v23 = vpop.eup %1324  ;;  %977 = vst.msk [vmem:[%s1646_s30 + $0x44] sm:$0xf] %vm959_vm2, %v1174_v52  ;;  %v1179_v25 = vpack.c.bf16 %v821_v63, %v821_v63  ;;  %v819_v60 = vmul.f32 %v1323_v14, %v1549_v4  ;;  %1350 = vpow2.f32 %v1639_v17  ;;  %v1120_v30 = vmul.f32 -1.442695, %v1693_v11 }
 0x101   : > { %v1327_v10 = vpop.eup %1326  ;;  %966 = vst.msk [vmem:[%s1646_s30 + $0x18] sm:$0xf] %vm959_vm2, %v1163_v56  ;;  %v1161_v26 = vpack.c.bf16 %v803_v9, %v803_v9  ;;  %v806_v0 = vmul.f32 %v1325_v23, %v1554_v8  ;;  %1352 = vpow2.f32 %v1650_v24 }
 0x102   : > { %v1329_v27 = vpop.eup %1328  ;;  %982 = vst.msk [vmem:[%s1646_s30 + $0x58] sm:$0xf] %vm959_vm2, %v1179_v25  ;;  %v1177_v4 = vpack.c.bf16 %v819_v60, %v819_v60  ;;  %v822_v17 = vmul.f32 %v1327_v10, %v1559_v12  ;;  %1354 = vpow2.f32 %v1656_v33 }
 0x103   : > { %v1331_v31 = vpop.eup %1330  ;;  %964 = vst.msk [vmem:[%s1646_s30 + $0x10] sm:$0xf] %vm959_vm2, %v1161_v26  ;;  %v1164_v8 = vpack.c.bf16 %v806_v0, %v806_v0  ;;  %v804_v24 = vmul.f32 %v1329_v27, %v1564_v16  ;;  %1356 = vpow2.f32 %v1106_v19 }
 0x104   : > { %v1333_v35 = vpop.eup %1332  ;;  %980 = vst.msk [vmem:[%s1646_s30 + $0x50] sm:$0xf] %vm959_vm2, %v1177_v4  ;;  %v1180_v28 = vpack.c.bf16 %v822_v17, %v822_v17  ;;  %v820_v37 = vmul.f32 %v1331_v31, %v1569_v22  ;;  %1358 = vpow2.f32 %v1122_v20 }
 0x105   : > { %v1335_v12 = vpop.eup %1334  ;;  %967 = vst.msk [vmem:[%s1646_s30 + $0x1c] sm:$0xf] %vm959_vm2, %v1164_v8  ;;  %v1162_v33 = vpack.c.bf16 %v804_v24, %v804_v24  ;;  %v713_v39 = vadd.f32 1.0, %v1333_v35  ;;  %1360 = vpow2.f32 %v1104_v15 }
 0x106   : > { %v1337_v42 = vpop.eup %1336  ;;  %983 = vst.msk [vmem:[%s1646_s30 + $0x5c] sm:$0xf] %vm959_vm2, %v1180_v28  ;;  %v1178_v16 = vpack.c.bf16 %v820_v37, %v820_v37  ;;  %v729_v45 = vadd.f32 1.0, %v1335_v12  ;;  %1362 = vpow2.f32 %v1120_v30 }
 0x107   : > { %v1339_v32 = vpop.eup %1338  ;;  %965 = vst.msk [vmem:[%s1646_s30 + $0x14] sm:$0xf] %vm959_vm2, %v1162_v33  ;;  %1364 = vrcp.f32 %v713_v39  ;;  %v711_v46 = vadd.f32 1.0, %v1337_v42 }
 0x108   : > { %v1341_v22 = vpop.eup %1340  ;;  %981 = vst.msk [vmem:[%s1646_s30 + $0x54] sm:$0xf] %vm959_vm2, %v1178_v16  ;;  %1366 = vrcp.f32 %v729_v45  ;;  %v727_v59 = vadd.f32 1.0, %v1339_v32 }
 0x109   : > { %v1343_v51 = vpop.eup %1342  ;;  %1368 = vrcp.f32 %v711_v46  ;;  %v714_v36 = vadd.f32 1.0, %v1341_v22 }
 0x10a   : > { %v1345_v53 = vpop.eup %1344  ;;  %1370 = vrcp.f32 %v727_v59  ;;  %v730_v2 = vadd.f32 1.0, %v1343_v51 }
 0x10b   : > { %v1347_v58 = vpop.eup %1346  ;;  %1372 = vrcp.f32 %v714_v36  ;;  %v712_v40 = vadd.f32 1.0, %v1345_v53 }
 0x10c   : > { %v1349_v61 = vpop.eup %1348  ;;  %1374 = vrcp.f32 %v730_v2  ;;  %v728_v62 = vadd.f32 1.0, %v1347_v58 }
 0x10d   : > { %v1351_v44 = vpop.eup %1350  ;;  %1376 = vrcp.f32 %v712_v40  ;;  %v717_v3 = vadd.f32 1.0, %v1349_v61 }
 0x10e   : > { %v1353_v13 = vpop.eup %1352  ;;  %1378 = vrcp.f32 %v728_v62  ;;  %v733_v48 = vadd.f32 1.0, %v1351_v44 }
 0x10f   : > { %v1355_v55 = vpop.eup %1354  ;;  %1380 = vrcp.f32 %v717_v3  ;;  %v715_v6 = vadd.f32 1.0, %v1353_v13 }
 0x110   : > { %v1357_v52 = vpop.eup %1356  ;;  %1382 = vrcp.f32 %v733_v48  ;;  %v731_v63 = vadd.f32 1.0, %v1355_v55 }
 0x111   : > { %v1359_v14 = vpop.eup %1358  ;;  %1384 = vrcp.f32 %v715_v6  ;;  %v718_v56 = vadd.f32 1.0, %v1357_v52 }
 0x112   : > { %v1361_v9 = vpop.eup %1360  ;;  %1386 = vrcp.f32 %v731_v63  ;;  %v734_v19 = vadd.f32 1.0, %v1359_v14 }
 0x113   : > { %v1363_v23 = vpop.eup %1362  ;;  %1388 = vrcp.f32 %v718_v56  ;;  %v716_v25 = vadd.f32 1.0, %v1361_v9 }
 0x114   : > { %v1365_v60 = vpop.eup %1364  ;;  %1390 = vrcp.f32 %v734_v19  ;;  %v732_v20 = vadd.f32 1.0, %v1363_v23 }
 0x115   : > { %v1367_v10 = vpop.eup %1366  ;;  %v809_v26 = vmul.f32 %v1365_v60, %v1577_v38  ;;  %1392 = vrcp.f32 %v716_v25 }
 0x116   : > { %v1369_v0 = vpop.eup %1368  ;;  %v825_v15 = vmul.f32 %v1367_v10, %v1580_v43  ;;  %1394 = vrcp.f32 %v732_v20 }
 0x117   : > { %v1371_v27 = vpop.eup %1370  ;;  %v1167_v4 = vpack.c.bf16 %v809_v26, %v809_v26  ;;  %v807_v17 = vmul.f32 %v1369_v0, %v1583_v49 }
 0x118   : > { %v1373_v30 = vpop.eup %1372  ;;  %v1183_v31 = vpack.c.bf16 %v825_v15, %v825_v15  ;;  %v823_v8 = vmul.f32 %v1371_v27, %v1586_v54 }
 0x119   : > { %v1375_v24 = vpop.eup %1374  ;;  %970 = vst.msk [vmem:[%s1646_s30 + $0x28] sm:$0xf] %vm959_vm2, %v1167_v4  ;;  %v1165_v38 = vpack.c.bf16 %v807_v17, %v807_v17  ;;  %v810_v35 = vmul.f32 %v1373_v30, %v1605_v21 }
 0x11a   : > { %v1377_v28 = vpop.eup %1376  ;;  %986 = vst.msk [vmem:[%s1646_s30 + $0x68] sm:$0xf] %vm959_vm2, %v1183_v31  ;;  %v1181_v43 = vpack.c.bf16 %v823_v8, %v823_v8  ;;  %v826_v37 = vmul.f32 %v1375_v24, %v1609_v29 }
 0x11b   : > { %v1379_v49 = vpop.eup %1378  ;;  %968 = vst.msk [vmem:[%s1646_s30 + $0x20] sm:$0xf] %vm959_vm2, %v1165_v38  ;;  %v1168_v12 = vpack.c.bf16 %v810_v35, %v810_v35  ;;  %v808_v54 = vmul.f32 %v1377_v28, %v1613_v34 }
 0x11c   : > { %v1381_v33 = vpop.eup %1380  ;;  %984 = vst.msk [vmem:[%s1646_s30 + $0x60] sm:$0xf] %vm959_vm2, %v1181_v43  ;;  %v1184_v39 = vpack.c.bf16 %v826_v37, %v826_v37  ;;  %v824_v21 = vmul.f32 %v1379_v49, %v1617_v41 }
 0x11d   : > { %v1383_v42 = vpop.eup %1382  ;;  %971 = vst.msk [vmem:[%s1646_s30 + $0x2c] sm:$0xf] %vm959_vm2, %v1168_v12  ;;  %v1166_v16 = vpack.c.bf16 %v808_v54, %v808_v54  ;;  %v813_v29 = vmul.f32 %v1381_v33, %v1621_v47 }
 0x11e   : > { %v1385_v45 = vpop.eup %1384  ;;  %987 = vst.msk [vmem:[%s1646_s30 + $0x6c] sm:$0xf] %vm959_vm2, %v1184_v39  ;;  %v1182_v32 = vpack.c.bf16 %v824_v21, %v824_v21  ;;  %v829_v34 = vmul.f32 %v1383_v42, %v1624_v50 }
 0x11f   : > { %v1387_v46 = vpop.eup %1386  ;;  %969 = vst.msk [vmem:[%s1646_s30 + $0x24] sm:$0xf] %vm959_vm2, %v1166_v16  ;;  %v1171_v22 = vpack.c.bf16 %v813_v29, %v813_v29  ;;  %v811_v41 = vmul.f32 %v1385_v45, %v1628_v57 }
 0x120   : > { %v1389_v59 = vpop.eup %1388  ;;  %985 = vst.msk [vmem:[%s1646_s30 + $0x64] sm:$0xf] %vm959_vm2, %v1182_v32  ;;  %v1187_v51 = vpack.c.bf16 %v829_v34, %v829_v34  ;;  %v827_v47 = vmul.f32 %v1387_v46, %v1632_v1 }
 0x121   : > { %v1391_v36 = vpop.eup %1390  ;;  %974 = vst.msk [vmem:[%s1646_s30 + $0x38] sm:$0xf] %vm959_vm2, %v1171_v22  ;;  %v1169_v50 = vpack.c.bf16 %v811_v41, %v811_v41  ;;  %v814_v53 = vmul.f32 %v1389_v59, %v1675_v7 }
 0x122   : > { %v1393_v2 = vpop.eup %1392  ;;  %990 = vst.msk [vmem:[%s1646_s30 + $0x78] sm:$0xf] %vm959_vm2, %v1187_v51  ;;  %v1185_v57 = vpack.c.bf16 %v827_v47, %v827_v47  ;;  %v830_v58 = vmul.f32 %v1391_v36, %v1681_v18 }
 0x123   : > { %v1395_v40 = vpop.eup %1394  ;;  %972 = vst.msk [vmem:[%s1646_s30 + $0x30] sm:$0xf] %vm959_vm2, %v1169_v50  ;;  %v1172_v1 = vpack.c.bf16 %v814_v53, %v814_v53  ;;  %v812_v61 = vmul.f32 %v1393_v2, %v1687_v5 }
 0x124   : > { %988 = vst.msk [vmem:[%s1646_s30 + $0x70] sm:$0xf] %vm959_vm2, %v1185_v57  ;;  %v1188_v62 = vpack.c.bf16 %v830_v58, %v830_v58  ;;  %v828_v44 = vmul.f32 %v1395_v40, %v1693_v11 }
 0x125   : > { %975 = vst.msk [vmem:[%s1646_s30 + $0x3c] sm:$0xf] %vm959_vm2, %v1172_v1  ;;  %v1170_v7 = vpack.c.bf16 %v812_v61, %v812_v61 }
 0x126   : > { %991 = vst.msk [vmem:[%s1646_s30 + $0x7c] sm:$0xf] %vm959_vm2, %v1188_v62  ;;  %v1186_v3 = vpack.c.bf16 %v828_v44, %v828_v44 }
 0x127   : > { %973 = vst.msk [vmem:[%s1646_s30 + $0x34] sm:$0xf] %vm959_vm2, %v1170_v7 }
 0x128   : > { %989 = vst.msk [vmem:[%s1646_s30 + $0x74] sm:$0xf] %vm959_vm2, %v1186_v3 }
 0x129 PF: > { %s14_s15 = sadd.s32 1, %s1402_s15  }
 0x12a   : > { %p11_p4 = scmp.ge.s32.totalorder %s14_s15, 4  }
 0x12c   :  { %13 = sbr.rel (!%p11_p4) target bundleno = 1 (0x1), region = 66 }

// kernel: sppf_forward.3
= control target key start
LH: loop header
LB: loop body
LE: loop exit
PB: predicated region body
PF: predicated region fallthrough
CT: control target
= control target key end

     0   :  { %s5609_s15 = smov 0   ;;  %s5611_s16 = smov 0   ;;  %s8116_s0 = inlined_call_operand.vmem [shape: bf16[2,16,16,2], index: 0, kind: input, shape index: {}]   ;;  %s8117_s1 = inlined_call_operand.vmem [shape: bf16[4,2,8], index: 1, kind: input, shape index: {}]   ;;  %s8118_s2 = inlined_call_operand.vmem [shape: f32[1,8], index: 2, kind: input, shape index: {}]   ;;  %s8119_s3 = inlined_call_operand.vmem [shape: f32[1,8], index: 3, kind: input, shape index: {}]   ;;  %s8120_s4 = inlined_call_operand.vmem [shape: f32[2,256,8], index: 4, kind: output, shape index: {}]  }
   0x1   :  { %s5613_s17 = smov 0  }
   0x2 LB: > { %s26_s18 = sadd.s32 1, %s5576_s16  ;;  %p5037_p0 = scmp.ge.s32.totalorder %s5580_s17, 1  ;;  %s5580_s17 = sphi %s5613_s17, %s14_s17   ;;  %s5576_s16 = sphi %s5611_s16, %s8186_s16   ;;  %s5572_s15 = sphi %s5609_s15, %s8185_s15  }
   0x3   : > { %p28_p1 = scmp.ge.s32.totalorder %s26_s18, 2  ;;  %p187_p2 = scmp.lt.s32.totalorder %s5580_s17, 3 }
   0x5   : > { %s8188_s18 = smov (%p28_p1, %s26_s18), 0  ;;  %p188_p3 = pnand %p5037_p0, %p187_p2 }
   0x7   : > { %191 = sbr.rel (%p188_p3) target bundleno = 827 (0x33b), region = 36 }
   0xc   : > { %v399_v0 = vld [vmem:[%s8117_s1] sm:$0x1]  ;;  %vm528_vm0 = vcmask 1040384   ;;  %p219_p4 = scmp.lt.s32.totalorder %s5572_s15, 1  ;;  %vm273_vm1 = vcmask 15360   ;;  %vm276_vm2 = vcmask 11264  }
   0xd   : > { %5367 = vmatprep.subr.msk.bf16.mxu0 %vm528_vm0, %v399_v0  ;;  %v530_v1 = vsel %vm528_vm0, %v399_v0, 0  ;;  %v5582_v2 = vmov -inf   ;;  %v5074_v3 = vld [vmem:[%s8117_s1 + $0x1] sm:$0x1]  ;;  %v5091_v4 = vld [vmem:[%s8117_s1 + $0x2] sm:$0x1] }
   0xe   : > { %281 = vst.msk [vmem:[#allocation2 + $0x30] sm:$0xff] %vm273_vm1, %v5582_v2  ;;  %282 = vst.msk [vmem:[#allocation2 + $0x38] sm:$0xff] %vm273_vm1, %v5582_v2  ;;  %5232 = vmatpush3.bf16.msra.mxu0 %v530_v1  ;;  %s8190_s15 = smov (!%p219_p4, %s5572_s15), 1  ;;  %5368 = vmatprep.subr.msk.bf16.mxu1 %vm528_vm0, %v5074_v3  ;;  %v1829_v5 = vsel %vm528_vm0, %v5074_v3, 0  ;;  %v5108_v6 = vld [vmem:[%s8117_s1 + $0x3] sm:$0x1] }
   0xf   : > { %274 = vst.msk [vmem:[#allocation2] sm:$0xff] %vm273_vm1, %v5582_v2  ;;  %275 = vst.msk [vmem:[#allocation2 + $0x8] sm:$0xff] %vm273_vm1, %v5582_v2  ;;  %5266 = vmatpush3.bf16.msra.mxu1 %v1829_v5  ;;  %5369 = vmatprep.subr.msk.bf16.mxu0 %vm528_vm0, %v5091_v4  ;;  %s5161_s27 = sshll.u32 %s8190_s15, 7  ;;  %v3091_v10 = vsel %vm528_vm0, %v5091_v4, 0  ;;  %vm910_vm3 = vcmask 1046528   ;;  %v5784_v11 = vsel %vm528_vm0, %v5108_v6, 0 }
  0x10   : > { %278 = vst.msk [vmem:[#allocation2 + $0x18] sm:$0xff] %vm273_vm1, %v5582_v2  ;;  %279 = vst.msk [vmem:[#allocation2 + $0x20] sm:$0xff] %vm273_vm1, %v5582_v2  ;;  %5370 = vmatprep.subr.msk.bf16.mxu1 %vm528_vm0, %v5108_v6  ;;  %s5777_s30 = scalar_lea.vmem %s8116_s0, %s5161_s27  ;;  %vm1091_vm4 = vcmask 1045504   ;;  %vm1272_vm5 = vcmask 1044480   ;;  %vm1453_vm6 = vcmask 1043456   ;;  %vm240_vm7 = vcmask 64512  }
  0x11   : > { %284 = vst.msk [vmem:[#allocation2 + $0x48] sm:$0xff] %vm273_vm1, %v5582_v2  ;;  %285 = vst.msk [vmem:[#allocation2 + $0x50] sm:$0xff] %vm273_vm1, %v5582_v2  ;;  %v335_v7 = vld [vmem:[%s5777_s30] sm:$0xff]   ;;  %v337_v8 = vld [vmem:[%s5777_s30 + $0x8] sm:$0xff]   ;;  %s5162_s9 = sshll.u32 %s8190_s15, 8 }
  0x12   : > { %287 = vst.msk [vmem:[#allocation2 + $0x60] sm:$0xff] %vm273_vm1, %v5582_v2  ;;  %288 = vst.msk [vmem:[#allocation2 + $0x68] sm:$0xff] %vm273_vm1, %v5582_v2  ;;  %v339_v9 = vld [vmem:[%s5777_s30 + $0x10] sm:$0xff]   ;;  %v725_v12 = vunpack.c.l.bf16 %v335_v7  ;;  %v726_v13 = vunpack.c.h.bf16 %v335_v7  ;;  %v5787_v14 = vld [vmem:[%s5777_s30 + $0x18] sm:$0xff]   ;;  %v727_v16 = vunpack.c.l.bf16 %v337_v8  ;;  %v728_v17 = vunpack.c.h.bf16 %v337_v8  ;;  %5233 = vmatprep.mubr.msk.bf16.mxu0 %vm273_vm1, %v335_v7  ;;  %s7820_s12 = scalar_lea.vmem %s8120_s4, %s5162_s9 }
  0x13   : > { %290 = vst.msk [vmem:[#allocation2 + $0x78] sm:$0xff] %vm273_vm1, %v5582_v2  ;;  %291 = vst.msk [vmem:[#allocation2 + $0x80] sm:$0xff] %vm273_vm1, %v5582_v2  ;;  %v5790_v15 = vld [vmem:[%s5777_s30 + $0x20] sm:$0xff]   ;;  %v729_v18 = vunpack.c.l.bf16 %v339_v9  ;;  %v5793_v19 = vld [vmem:[%s5777_s30 + $0x28] sm:$0xff]   ;;  %v730_v21 = vunpack.c.h.bf16 %v339_v9  ;;  %v731_v22 = vunpack.c.l.bf16 %v5787_v14  ;;  %v732_v23 = vunpack.c.h.bf16 %v5787_v14  ;;  %5234 = vmatmul.mubr.msk.bf16.vlgmr.msra.gmra.mxu0 %vm273_vm1, %v337_v8 }
  0x14   : > { %293 = vst.msk [vmem:[#allocation2 + $0x90] sm:$0xff] %vm273_vm1, %v5582_v2  ;;  %294 = vst.msk [vmem:[#allocation2 + $0x98] sm:$0xff] %vm273_vm1, %v5582_v2  ;;  %v5796_v20 = vld [vmem:[%s5777_s30 + $0x30] sm:$0xff]   ;;  %v5804_v24 = vld [vmem:[%s5777_s30 + $0x38] sm:$0xff]   ;;  %v733_v26 = vunpack.c.l.bf16 %v5790_v15  ;;  %v734_v27 = vunpack.c.h.bf16 %v5790_v15  ;;  %5237 = vmatprep.mubr.msk.bf16.mxu0 %vm273_vm1, %v339_v9  ;;  %v735_v31 = vunpack.c.l.bf16 %v5793_v19  ;;  %v736_v32 = vunpack.c.h.bf16 %v5793_v19  ;;  %5300 = vmatpush3.bf16.msra.mxu0 %v3091_v10 }
  0x15   : > { %296 = vst.msk [vmem:[#allocation2 + $0xa8] sm:$0xff] %vm273_vm1, %v5582_v2  ;;  %297 = vst.msk [vmem:[#allocation2 + $0xb0] sm:$0xff] %vm273_vm1, %v5582_v2  ;;  %v737_v33 = vunpack.c.l.bf16 %v5796_v20  ;;  %v738_v36 = vunpack.c.h.bf16 %v5796_v20  ;;  %v739_v37 = vunpack.c.l.bf16 %v5804_v24  ;;  %v740_v38 = vunpack.c.h.bf16 %v5804_v24 }
  0x16   : > { %299 = vst.msk [vmem:[#allocation2 + $0xc0] sm:$0xff] %vm273_vm1, %v5582_v2  ;;  %300 = vst.msk [vmem:[#allocation2 + $0xc8] sm:$0xff] %vm273_vm1, %v5582_v2  ;;  %v5806_v25 = vld [vmem:[#allocation2] sm:$0xff]  ;;  %v5814_v28 = vld [vmem:[#allocation2 + $0x8] sm:$0xff] }
  0x17   : > { %302 = vst.msk [vmem:[#allocation2 + $0xd8] sm:$0xff] %vm273_vm1, %v5582_v2  ;;  %303 = vst.msk [vmem:[#allocation2 + $0xe0] sm:$0xff] %vm273_vm1, %v5582_v2  ;;  %v5818_v30 = vld [vmem:[#allocation2 + $0x18] sm:$0xff]  ;;  %v5827_v34 = vld [vmem:[#allocation2 + $0x20] sm:$0xff]  ;;  %v911_v39 = vrot.slane %v5806_v25, 1  ;;  %v912_v40 = vrot.slane %v5814_v28, 1 }
  0x18   : > { %305 = vst.msk [vmem:[#allocation2 + $0xf0] sm:$0xff] %vm273_vm1, %v5582_v2  ;;  %306 = vst.msk [vmem:[#allocation2 + $0xf8] sm:$0xff] %vm273_vm1, %v5582_v2  ;;  %v916_v42 = vrot.slane %v5818_v30, 1  ;;  %v917_v43 = vrot.slane %v5827_v34, 1  ;;  %v1092_v45 = vrot.slane %v5806_v25, 2  ;;  %v1093_v46 = vrot.slane %v5814_v28, 2 }
  0x19   : > { %308 = vst.msk [vmem:[#allocation2 + $0x108] sm:$0xff] %vm273_vm1, %v5582_v2  ;;  %309 = vst.msk [vmem:[#allocation2 + $0x110] sm:$0xff] %vm273_vm1, %v5582_v2  ;;  %v5851_v47 = vsel %vm910_vm3, %v911_v39, %v912_v40  ;;  %v1097_v50 = vrot.slane %v5818_v30, 2 }
  0x1a   : > { %311 = vst.msk [vmem:[#allocation2 + $0x120] sm:$0xff] %vm273_vm1, %v5582_v2  ;;  %312 = vst.msk [vmem:[#allocation2 + $0x128] sm:$0xff] %vm273_vm1, %v5582_v2  ;;  %v918_v54 = vsel %vm910_vm3, %v916_v42, %v917_v43  ;;  %v1051_v56 = vmax.f32 %v5806_v25, %v5851_v47  ;;  %v1094_v6 = vsel %vm1091_vm4, %v1092_v45, %v1093_v46 }
  0x1b   : > { %314 = vst.msk [vmem:[#allocation2 + $0x138] sm:$0xff] %vm273_vm1, %v5582_v2  ;;  %315 = vst.msk [vmem:[#allocation2 + $0x140] sm:$0xff] %vm273_vm1, %v5582_v2  ;;  %v1053_v63 = vmax.f32 %v5818_v30, %v918_v54  ;;  %5238 = vmatmul.mubr.msk.bf16.gmra.mxu0 %vm273_vm1, %v5787_v14 }
  0x1c   : > { %317 = vst.msk [vmem:[#allocation2 + $0x150] sm:$0xff] %vm273_vm1, %v5582_v2  ;;  %318 = vst.msk [vmem:[#allocation2 + $0x158] sm:$0xff] %vm273_vm1, %v5582_v2  ;;  %5241 = vmatprep.mubr.msk.bf16.mxu0 %vm273_vm1, %v5790_v15 }
  0x1d   : > { %320 = vst.msk [vmem:[#allocation2 + $0x168] sm:$0xff] %vm273_vm1, %v5582_v2  ;;  %321 = vst.msk [vmem:[#allocation2 + $0x170] sm:$0xff] %vm273_vm1, %v5582_v2 }
  0x1e   : > { %323 = vst.msk [vmem:[#allocation2 + $0x180] sm:$0xff] %vm273_vm1, %v5582_v2  ;;  %324 = vst.msk [vmem:[#allocation2 + $0x188] sm:$0xff] %vm273_vm1, %v5582_v2 }
  0x1f   : > { %326 = vst.msk [vmem:[#allocation2 + $0x198] sm:$0xff] %vm273_vm1, %v5582_v2  ;;  %327 = vst.msk [vmem:[#allocation2 + $0x1a0] sm:$0xff] %vm273_vm1, %v5582_v2 }
  0x20   : > { %329 = vst.msk [vmem:[#allocation2 + $0x1b0] sm:$0xff] %vm273_vm1, %v5582_v2  ;;  %330 = vst.msk [vmem:[#allocation2 + $0x1b8] sm:$0xff] %vm273_vm1, %v5582_v2 }
  0x21   : > { %332 = vst.msk [vmem:[#allocation2 + $0x1c8] sm:$0xff] %vm273_vm1, %v5582_v2  ;;  %333 = vst.msk [vmem:[#allocation2 + $0x1d0] sm:$0xff] %vm273_vm1, %v5582_v2 }
  0x22   : > { %283 = vst.msk [vmem:[#allocation2 + $0x40] sm:$0xf] %vm276_vm2, %v5582_v2  ;;  %277 = vst.msk [vmem:[#allocation2 + $0x10] sm:$0xf] %vm276_vm2, %v5582_v2 }
  0x23   : > { %280 = vst.msk [vmem:[#allocation2 + $0x28] sm:$0xf] %vm276_vm2, %v5582_v2  ;;  %286 = vst.msk [vmem:[#allocation2 + $0x58] sm:$0xf] %vm276_vm2, %v5582_v2  ;;  %5242 = vmatmul.mubr.msk.bf16.gmra.mxu0 %vm273_vm1, %v5793_v19 }
  0x24   : > { %289 = vst.msk [vmem:[#allocation2 + $0x70] sm:$0xf] %vm276_vm2, %v5582_v2  ;;  %292 = vst.msk [vmem:[#allocation2 + $0x88] sm:$0xf] %vm276_vm2, %v5582_v2  ;;  %5245 = vmatprep.mubr.msk.bf16.mxu0 %vm273_vm1, %v5796_v20 }
  0x25   : > { %295 = vst.msk [vmem:[#allocation2 + $0xa0] sm:$0xf] %vm276_vm2, %v5582_v2  ;;  %298 = vst.msk [vmem:[#allocation2 + $0xb8] sm:$0xf] %vm276_vm2, %v5582_v2 }
  0x26   : > { %301 = vst.msk [vmem:[#allocation2 + $0xd0] sm:$0xf] %vm276_vm2, %v5582_v2  ;;  %304 = vst.msk [vmem:[#allocation2 + $0xe8] sm:$0xf] %vm276_vm2, %v5582_v2 }
  0x27   : > { %307 = vst.msk [vmem:[#allocation2 + $0x100] sm:$0xf] %vm276_vm2, %v5582_v2  ;;  %310 = vst.msk [vmem:[#allocation2 + $0x118] sm:$0xf] %vm276_vm2, %v5582_v2 }
  0x28   : > { %313 = vst.msk [vmem:[#allocation2 + $0x130] sm:$0xf] %vm276_vm2, %v5582_v2  ;;  %316 = vst.msk [vmem:[#allocation2 + $0x148] sm:$0xf] %vm276_vm2, %v5582_v2 }
  0x29   : > { %319 = vst.msk [vmem:[#allocation2 + $0x160] sm:$0xf] %vm276_vm2, %v5582_v2  ;;  %322 = vst.msk [vmem:[#allocation2 + $0x178] sm:$0xf] %vm276_vm2, %v5582_v2  ;;  %v5816_v29 = vld [vmem:[#allocation2 + $0x10] sm:$0xf] }
  0x2a   : > { %325 = vst.msk [vmem:[#allocation2 + $0x190] sm:$0xf] %vm276_vm2, %v5582_v2  ;;  %328 = vst.msk [vmem:[#allocation2 + $0x1a8] sm:$0xf] %vm276_vm2, %v5582_v2  ;;  %v5829_v35 = vld [vmem:[#allocation2 + $0x28] sm:$0xf] }
  0x2b   : > { %331 = vst.msk [vmem:[#allocation2 + $0x1c0] sm:$0xf] %vm276_vm2, %v5582_v2  ;;  %334 = vst.msk [vmem:[#allocation2 + $0x1d8] sm:$0xf] %vm276_vm2, %v5582_v2  ;;  %v914_v41 = vrot.slane %v5816_v29, 1  ;;  %v919_v44 = vrot.slane %v5829_v35, 1  ;;  %5246 = vmatmul.mubr.msk.bf16.gmra.mxu0 %vm273_vm1, %v5804_v24 }
  0x2c   : > { %758 = vst.msk [vmem:[#allocation2 + $0x32] sm:$0xff] %vm273_vm1, %v725_v12  ;;  %759 = vst.msk [vmem:[#allocation2 + $0x3a] sm:$0xff] %vm273_vm1, %v726_v13  ;;  %v1095_v49 = vrot.slane %v5816_v29, 2 }
  0x2d   : > { %760 = vst.msk [vmem:[#allocation2 + $0x4a] sm:$0xff] %vm273_vm1, %v727_v16  ;;  %761 = vst.msk [vmem:[#allocation2 + $0x52] sm:$0xff] %vm273_vm1, %v728_v17  ;;  %v5854_v48 = vsel %vm910_vm3, %v912_v40, %v914_v41  ;;  %v920_v55 = vsel %vm910_vm3, %v917_v43, %v919_v44 }
  0x2e   : > { %762 = vst.msk [vmem:[#allocation2 + $0x62] sm:$0xff] %vm273_vm1, %v729_v18  ;;  %763 = vst.msk [vmem:[#allocation2 + $0x6a] sm:$0xff] %vm273_vm1, %v730_v21  ;;  %v1052_v57 = vmax.f32 %v5814_v28, %v5854_v48  ;;  %v1054_v0 = vmax.f32 %v5827_v34, %v920_v55  ;;  %v1096_v7 = vsel %vm1091_vm4, %v1093_v46, %v1095_v49 }
  0x2f   : > { %764 = vst.msk [vmem:[#allocation2 + $0x7a] sm:$0xff] %vm273_vm1, %v731_v22  ;;  %765 = vst.msk [vmem:[#allocation2 + $0x82] sm:$0xff] %vm273_vm1, %v732_v23  ;;  %v1098_v22 = vrot.slane %v5827_v34, 2  ;;  %v5932_v55 = vmax.f32 %v1051_v56, %v1094_v6  ;;  %v1273_v6 = vrot.slane %v5806_v25, 3 }
  0x30   : > { %766 = vst.msk [vmem:[#allocation2 + $0x92] sm:$0xff] %vm273_vm1, %v733_v26  ;;  %767 = vst.msk [vmem:[#allocation2 + $0x9a] sm:$0xff] %vm273_vm1, %v734_v27 }
  0x31   : > { %768 = vst.msk [vmem:[#allocation2 + $0xaa] sm:$0xff] %vm273_vm1, %v735_v31  ;;  %769 = vst.msk [vmem:[#allocation2 + $0xb2] sm:$0xff] %vm273_vm1, %v736_v32 }
  0x32   : > { %770 = vst.msk [vmem:[#allocation2 + $0xc2] sm:$0xff] %vm273_vm1, %v737_v33  ;;  %771 = vst.msk [vmem:[#allocation2 + $0xca] sm:$0xff] %vm273_vm1, %v738_v36  ;;  %v1099_v36 = vsel %vm1091_vm4, %v1097_v50, %v1098_v22 }
  0x33   : > { %772 = vst.msk [vmem:[#allocation2 + $0xda] sm:$0xff] %vm273_vm1, %v739_v37  ;;  %773 = vst.msk [vmem:[#allocation2 + $0xe2] sm:$0xff] %vm273_vm1, %v740_v38  ;;  %v5858_v51 = vld [vmem:[#allocation2 + $0x30] sm:$0xff]  ;;  %v5860_v52 = vld [vmem:[#allocation2 + $0x38] sm:$0xff]  ;;  %v1100_v37 = vrot.slane %v5829_v35, 2 }
  0x34   : > { %v5862_v53 = vld [vmem:[#allocation2 + $0x40] sm:$0xf]  ;;  %v5870_v58 = vld [vmem:[#allocation2 + $0x48] sm:$0xff]  ;;  %v5872_v59 = vld [vmem:[#allocation2 + $0x50] sm:$0xff]  ;;  %v921_v61 = vrot.slane %v5858_v51, 1  ;;  %v922_v62 = vrot.slane %v5860_v52, 1 }
  0x35   : > { %v5874_v60 = vld [vmem:[#allocation2 + $0x58] sm:$0xf]  ;;  %v5882_v1 = vld [vmem:[#allocation2 + $0x60] sm:$0xff]  ;;  %v5884_v2 = vld [vmem:[#allocation2 + $0x68] sm:$0xff]  ;;  %v924_v4 = vrot.slane %v5862_v53, 1  ;;  %v926_v5 = vrot.slane %v5870_v58, 1  ;;  %v1101_v42 = vsel %vm1091_vm4, %v1098_v22, %v1100_v37 }
  0x36   : > { %v5886_v3 = vld [vmem:[#allocation2 + $0x70] sm:$0xf]  ;;  %v923_v8 = vsel %vm910_vm3, %v921_v61, %v922_v62  ;;  %v927_v9 = vrot.slane %v5872_v59, 1  ;;  %v929_v10 = vrot.slane %v5874_v60, 1  ;;  %v931_v12 = vrot.slane %v5882_v1, 1 }
  0x37   : > { %v925_v13 = vsel %vm910_vm3, %v922_v62, %v924_v4  ;;  %v932_v14 = vrot.slane %v5884_v2, 1  ;;  %v934_v16 = vrot.slane %v5886_v3, 1  ;;  %v1055_v17 = vmax.f32 %v5858_v51, %v923_v8 }
  0x38   : > { %v928_v18 = vsel %vm910_vm3, %v926_v5, %v927_v9  ;;  %v930_v15 = vsel %vm910_vm3, %v927_v9, %v929_v10  ;;  %v1056_v21 = vmax.f32 %v5860_v52, %v925_v13  ;;  %v1102_v38 = vrot.slane %v5858_v51, 2 }
  0x39   : > { %v933_v23 = vsel %vm910_vm3, %v931_v12, %v932_v14  ;;  %v935_v26 = vsel %vm910_vm3, %v932_v14, %v934_v16  ;;  %v1057_v27 = vmax.f32 %v5870_v58, %v928_v18  ;;  %v1058_v31 = vmax.f32 %v5872_v59, %v930_v15 }
  0x3a   : > { %v1059_v32 = vmax.f32 %v5882_v1, %v933_v23  ;;  %v1060_v33 = vmax.f32 %v5884_v2, %v935_v26  ;;  %v1103_v39 = vrot.slane %v5860_v52, 2  ;;  %v1105_v40 = vrot.slane %v5862_v53, 2 }
  0x3b   : > { %v1107_v41 = vrot.slane %v5870_v58, 2  ;;  %v1108_v43 = vrot.slane %v5872_v59, 2  ;;  %v1110_v44 = vrot.slane %v5874_v60, 2  ;;  %v1112_v45 = vrot.slane %v5882_v1, 2 }
  0x3c   : > { %v1104_v46 = vsel %vm1091_vm4, %v1102_v38, %v1103_v39  ;;  %v1106_v47 = vsel %vm1091_vm4, %v1103_v39, %v1105_v40  ;;  %v1113_v48 = vrot.slane %v5884_v2, 2  ;;  %v1115_v49 = vrot.slane %v5886_v3, 2 }
  0x3d   : > { %v1109_v50 = vsel %vm1091_vm4, %v1107_v41, %v1108_v43  ;;  %v1111_v54 = vsel %vm1091_vm4, %v1108_v43, %v1110_v44  ;;  %v5934_v61 = vmax.f32 %v1052_v57, %v1096_v7  ;;  %v5938_v4 = vmax.f32 %v1053_v63, %v1099_v36 }
  0x3e   : > { %v1114_v19 = vsel %vm1091_vm4, %v1112_v45, %v1113_v48  ;;  %v1116_v62 = vsel %vm1091_vm4, %v1113_v48, %v1115_v49  ;;  %v5940_v5 = vmax.f32 %v1054_v0, %v1101_v42  ;;  %v5942_v8 = vmax.f32 %v1055_v17, %v1104_v46 }
  0x3f   : > { %v5944_v9 = vmax.f32 %v1056_v21, %v1106_v47  ;;  %v5946_v20 = vmax.f32 %v1057_v27, %v1109_v50  ;;  %v5948_v10 = vmax.f32 %v1058_v31, %v1111_v54  ;;  %v5950_v56 = vmax.f32 %v1059_v32, %v1114_v19 }
  0x40   : > { %v5952_v57 = vmax.f32 %v1060_v33, %v1116_v62  ;;  %v1274_v7 = vrot.slane %v5814_v28, 3  ;;  %v1276_v63 = vrot.slane %v5816_v29, 3  ;;  %v1278_v0 = vrot.slane %v5818_v30, 3 }
  0x41   : > { %v1279_v12 = vrot.slane %v5827_v34, 3  ;;  %v1281_v13 = vrot.slane %v5829_v35, 3  ;;  %v1283_v16 = vrot.slane %v5858_v51, 3  ;;  %v1284_v17 = vrot.slane %v5860_v52, 3 }
  0x42   : > { %v1275_v14 = vsel %vm1272_vm5, %v1273_v6, %v1274_v7  ;;  %v1286_v18 = vrot.slane %v5862_v53, 3  ;;  %v1277_v15 = vsel %vm1272_vm5, %v1274_v7, %v1276_v63  ;;  %v1288_v23 = vrot.slane %v5870_v58, 3 }
  0x43   : > { %v1280_v21 = vsel %vm1272_vm5, %v1278_v0, %v1279_v12  ;;  %v1282_v22 = vsel %vm1272_vm5, %v1279_v12, %v1281_v13  ;;  %v1285_v26 = vsel %vm1272_vm5, %v1283_v16, %v1284_v17  ;;  %v1289_v31 = vrot.slane %v5872_v59, 3  ;;  %v807_v16 = vld [vmem:[#allocation2 + $0x88] sm:$0xf] }
  0x44   : > { %v1287_v27 = vsel %vm1272_vm5, %v1284_v17, %v1286_v18  ;;  %v1291_v32 = vrot.slane %v5874_v60, 3  ;;  %v1293_v33 = vrot.slane %v5882_v1, 3  ;;  %v1294_v36 = vrot.slane %v5884_v2, 3 }
  0x45   : > { %v1296_v37 = vrot.slane %v5886_v3, 3  ;;  %v1413_v38 = vmax.f32 %v5932_v55, %v1275_v14  ;;  %v1290_v39 = vsel %vm1272_vm5, %v1288_v23, %v1289_v31  ;;  %v1414_v40 = vmax.f32 %v5934_v61, %v1277_v15  ;;  %v806_v14 = vld [vmem:[#allocation2 + $0x80] sm:$0xff] }
  0x46   : > { %v1292_v24 = vsel %vm1272_vm5, %v1289_v31, %v1291_v32  ;;  %v1415_v41 = vmax.f32 %v5938_v4, %v1280_v21  ;;  %v1295_v42 = vsel %vm1272_vm5, %v1293_v33, %v1294_v36  ;;  %v1416_v44 = vmax.f32 %v5940_v5, %v1282_v22 }
  0x47   : > { %v1297_v43 = vsel %vm1272_vm5, %v1294_v36, %v1296_v37  ;;  %v1417_v45 = vmax.f32 %v5942_v8, %v1285_v26  ;;  %v1418_v46 = vmax.f32 %v5944_v9, %v1287_v27  ;;  %v1419_v47 = vmax.f32 %v5946_v20, %v1290_v39 }
  0x48   : > { %v1420_v48 = vmax.f32 %v5948_v10, %v1292_v24  ;;  %v1421_v49 = vmax.f32 %v5950_v56, %v1295_v42  ;;  %v1422_v50 = vmax.f32 %v5952_v57, %v1297_v43  ;;  %v1454_v54 = vrot.slane %v5806_v25, 4 }
  0x49   : > { %v1455_v55 = vrot.slane %v5814_v28, 4  ;;  %v1457_v61 = vrot.slane %v5816_v29, 4  ;;  %v1459_v19 = vrot.slane %v5818_v30, 4  ;;  %v1460_v62 = vrot.slane %v5827_v34, 4 }
  0x4a   : > { %v1462_v4 = vrot.slane %v5829_v35, 4  ;;  %v1464_v5 = vrot.slane %v5858_v51, 4  ;;  %v1465_v20 = vrot.slane %v5860_v52, 4  ;;  %v1467_v25 = vrot.slane %v5862_v53, 4 }
  0x4b   : > { %v1456_v8 = vsel %vm1453_vm6, %v1454_v54, %v1455_v55  ;;  %v1458_v9 = vsel %vm1453_vm6, %v1455_v55, %v1457_v61  ;;  %v1461_v28 = vsel %vm1453_vm6, %v1459_v19, %v1460_v62  ;;  %v1469_v30 = vrot.slane %v5870_v58, 4 }
  0x4c   : > { %v1463_v29 = vsel %vm1453_vm6, %v1460_v62, %v1462_v4  ;;  %v1470_v34 = vrot.slane %v5872_v59, 4  ;;  %v1466_v35 = vsel %vm1453_vm6, %v1464_v5, %v1465_v20  ;;  %v1468_v51 = vsel %vm1453_vm6, %v1465_v20, %v1467_v25 }
  0x4d   : > { %v1472_v10 = vrot.slane %v5874_v60, 4  ;;  %v1474_v56 = vrot.slane %v5882_v1, 4  ;;  %v1475_v53 = vrot.slane %v5884_v2, 4  ;;  %v1477_v57 = vrot.slane %v5886_v3, 4  ;;  %v805_v1 = vld [vmem:[#allocation2 + $0x78] sm:$0xff] }
  0x4e   : > { %v1471_v52 = vsel %vm1453_vm6, %v1469_v30, %v1470_v34  ;;  %v1594_v6 = vmax.f32 %v1413_v38, %v1456_v8  ;;  %v1595_v58 = vmax.f32 %v1414_v40, %v1458_v9  ;;  %v1596_v63 = vmax.f32 %v1415_v41, %v1461_v28  ;;  %v351_v8 = vld [vmem:[%s5777_s30 + $0x40] sm:$0xff]  }
  0x4f   : > { %v1473_v7 = vsel %vm1453_vm6, %v1470_v34, %v1472_v10  ;;  %v1597_v59 = vmax.f32 %v1416_v44, %v1463_v29  ;;  %v1476_v0 = vsel %vm1453_vm6, %v1474_v56, %v1475_v53  ;;  %v1478_v12 = vsel %vm1453_vm6, %v1475_v53, %v1477_v57  ;;  %v353_v29 = vld [vmem:[%s5777_s30 + $0x48] sm:$0xff]   ;;  %v809_v10 = vld [vmem:[#allocation2 + $0x98] sm:$0xff]  ;;  %5249 = vmatprep.mubr.msk.bf16.mxu0 %vm273_vm1, %v351_v8 }
  0x50   : > { %v6016_v13 = vmax.f32 %v1417_v45, %v1466_v35  ;;  %v6018_v60 = vmax.f32 %v1418_v46, %v1468_v51  ;;  %v6020_v2 = vmax.f32 %v1419_v47, %v1471_v52  ;;  %v6022_v3 = vmax.f32 %v1420_v48, %v1473_v7  ;;  %v808_v51 = vld [vmem:[#allocation2 + $0x90] sm:$0xff]  ;;  %5250 = vmatmul.mubr.msk.bf16.gmra.mxu0 %vm273_vm1, %v353_v29 }
  0x51   : > { %v6024_v17 = vmax.f32 %v1421_v49, %v1476_v0  ;;  %v6026_v18 = vmax.f32 %v1422_v50, %v1478_v12  ;;  %v1634_v15 = vmax.f32 %v1594_v6, %v1596_v63  ;;  %v1635_v21 = vmax.f32 %v1595_v58, %v1597_v59  ;;  %v810_v6 = vld [vmem:[#allocation2 + $0xa0] sm:$0xf] }
  0x52   : > { %v1636_v22 = vmax.f32 %v1596_v63, %v6016_v13  ;;  %v1637_v23 = vmax.f32 %v1597_v59, %v6018_v60  ;;  %v936_v26 = vrot.slane %v805_v1, 1  ;;  %v937_v27 = vrot.slane %v806_v14, 1 }
  0x53   : > { %v939_v31 = vrot.slane %v807_v16, 1  ;;  %v1117_v32 = vrot.slane %v805_v1, 2  ;;  %v1666_v33 = vmax.f32 %v1634_v15, %v6016_v13  ;;  %v1667_v36 = vmax.f32 %v1635_v21, %v6018_v60 }
  0x54   : > { %v1118_v37 = vrot.slane %v806_v14, 2  ;;  %v1120_v38 = vrot.slane %v807_v16, 2  ;;  %v938_v39 = vsel %vm910_vm3, %v936_v26, %v937_v27  ;;  %v1298_v40 = vrot.slane %v805_v1, 3 }
  0x55   : > { %v940_v24 = vsel %vm910_vm3, %v937_v27, %v939_v31  ;;  %v1299_v41 = vrot.slane %v806_v14, 3  ;;  %v1698_v42 = vmax.f32 %v1666_v33, %v6020_v2  ;;  %v1699_v43 = vmax.f32 %v1667_v36, %v6022_v3 }
  0x56   : > { %v1061_v44 = vmax.f32 %v805_v1, %v938_v39  ;;  %v1062_v45 = vmax.f32 %v806_v14, %v940_v24  ;;  %v1119_v46 = vsel %vm1091_vm4, %v1117_v32, %v1118_v37  ;;  %v1121_v47 = vsel %vm1091_vm4, %v1118_v37, %v1120_v38 }
  0x57   : > { %v1300_v48 = vsel %vm1272_vm5, %v1298_v40, %v1299_v41  ;;  %v1301_v49 = vrot.slane %v807_v16, 3  ;;  %v1730_v50 = vmax.f32 %v1698_v42, %v6024_v17  ;;  %v1731_v54 = vmax.f32 %v1699_v43, %v6026_v18  ;;  %v811_v40 = vld [vmem:[#allocation2 + $0xa8] sm:$0xff] }
  0x58   : > { %v1242_v55 = vmax.f32 %v1061_v44, %v1119_v46  ;;  %v1243_v61 = vmax.f32 %v1062_v45, %v1121_v47  ;;  %v1479_v62 = vrot.slane %v805_v1, 4  ;;  %v1480_v4 = vrot.slane %v806_v14, 4  ;;  %v812_v45 = vld [vmem:[#allocation2 + $0xb0] sm:$0xff] }
  0x59   : > { %v1302_v19 = vsel %vm1272_vm5, %v1299_v41, %v1301_v49  ;;  %v1482_v5 = vrot.slane %v807_v16, 4  ;;  %v1762_v9 = vpack.c.bf16 %v1731_v54, %v1730_v50  ;;  %2024 = vst.msk [vmem:[#allocation2 + $0x32] sm:$0xff] %vm273_vm1, %v1730_v50  ;;  %2025 = vst.msk [vmem:[#allocation2 + $0x3a] sm:$0xff] %vm273_vm1, %v1731_v54  ;;  %v1668_v28 = vmax.f32 %v1636_v22, %v6020_v2  ;;  %v813_v50 = vld [vmem:[#allocation2 + $0xb8] sm:$0xf] }
  0x5a   : > { %v1423_v20 = vmax.f32 %v1242_v55, %v1300_v48  ;;  %v1424_v25 = vmax.f32 %v1243_v61, %v1302_v19  ;;  %v1481_v30 = vsel %vm1453_vm6, %v1479_v62, %v1480_v4  ;;  %v1669_v35 = vmax.f32 %v1637_v23, %v6022_v3 }
  0x5b   : > { %v1483_v34 = vsel %vm1453_vm6, %v1480_v4, %v1482_v5  ;;  %5267 = vmatprep.mubr.msk.bf16.mxu1 %vm273_vm1, %v1762_v9  ;;  %v1700_v53 = vmax.f32 %v1668_v28, %v6024_v17  ;;  %v741_v57 = vunpack.c.l.bf16 %v351_v8  ;;  %v742_v58 = vunpack.c.h.bf16 %v351_v8 }
  0x5c   : > { %v6051_v56 = vmax.f32 %v1423_v20, %v1481_v30  ;;  %v6053_v52 = vmax.f32 %v1424_v25, %v1483_v34  ;;  %v1701_v7 = vmax.f32 %v1669_v35, %v6026_v18  ;;  %v743_v63 = vunpack.c.l.bf16 %v353_v29 }
  0x5d   : > { %774 = vst.msk [vmem:[#allocation2 + $0xf2] sm:$0xff] %vm273_vm1, %v741_v57  ;;  %v744_v0 = vunpack.c.h.bf16 %v353_v29  ;;  %v941_v12 = vrot.slane %v808_v51, 1  ;;  %v942_v1 = vrot.slane %v809_v10, 1  ;;  %775 = vst.msk [vmem:[#allocation2 + $0xfa] sm:$0xff] %vm273_vm1, %v742_v58  ;;  %v944_v16 = vrot.slane %v810_v6, 1 }
  0x5e   : > { %v1732_v59 = vmax.f32 %v1700_v53, %v6051_v56  ;;  %v1733_v14 = vmax.f32 %v1701_v7, %v6053_v52  ;;  %776 = vst.msk [vmem:[#allocation2 + $0x10a] sm:$0xff] %vm273_vm1, %v743_v63  ;;  %v1122_v15 = vrot.slane %v808_v51, 2  ;;  %v1123_v21 = vrot.slane %v809_v10, 2 }
  0x5f   : > { %777 = vst.msk [vmem:[#allocation2 + $0x112] sm:$0xff] %vm273_vm1, %v744_v0  ;;  %v943_v22 = vsel %vm910_vm3, %v941_v12, %v942_v1  ;;  %v1125_v23 = vrot.slane %v810_v6, 2  ;;  %v1303_v26 = vrot.slane %v808_v51, 3  ;;  %v1304_v27 = vrot.slane %v809_v10, 3 }
  0x60   : > { %2026 = vst.msk [vmem:[#allocation2 + $0x4a] sm:$0xff] %vm273_vm1, %v1732_v59  ;;  %v1763_v31 = vpack.c.bf16 %v1733_v14, %v1732_v59  ;;  %2027 = vst.msk [vmem:[#allocation2 + $0x52] sm:$0xff] %vm273_vm1, %v1733_v14  ;;  %v945_v32 = vsel %vm910_vm3, %v942_v1, %v944_v16  ;;  %v1063_v33 = vmax.f32 %v808_v51, %v943_v22  ;;  %v1306_v24 = vrot.slane %v810_v6, 3  ;;  %v355_v16 = vld [vmem:[%s5777_s30 + $0x50] sm:$0xff]  }
  0x61   : > { %v1124_v36 = vsel %vm1091_vm4, %v1122_v15, %v1123_v21  ;;  %v1064_v37 = vmax.f32 %v809_v10, %v945_v32  ;;  %v1126_v38 = vsel %vm1091_vm4, %v1123_v21, %v1125_v23  ;;  %v1305_v39 = vsel %vm1272_vm5, %v1303_v26, %v1304_v27  ;;  %5253 = vmatprep.mubr.msk.bf16.mxu0 %vm273_vm1, %v355_v16 }
  0x62   : > { %5268 = vmatmul.mubr.msk.bf16.vlgmr.msra.gmra.mxu1 %vm273_vm1, %v1763_v31  ;;  %v1244_v41 = vmax.f32 %v1063_v33, %v1124_v36  ;;  %v1484_v42 = vrot.slane %v808_v51, 4  ;;  %v1485_v43 = vrot.slane %v809_v10, 4  ;;  %v1487_v44 = vrot.slane %v810_v6, 4  ;;  %v357_v33 = vld [vmem:[%s5777_s30 + $0x58] sm:$0xff]  }
  0x63   : > { %5334 = vmatpush3.bf16.msra.mxu1 %v5784_v11  ;;  %v1245_v46 = vmax.f32 %v1064_v37, %v1126_v38  ;;  %v1307_v47 = vsel %vm1272_vm5, %v1304_v27, %v1306_v24  ;;  %v1638_v48 = vmax.f32 %v6016_v13, %v6020_v2  ;;  %v1639_v49 = vmax.f32 %v6018_v60, %v6022_v3  ;;  %v815_v24 = vld [vmem:[#allocation2 + $0xc8] sm:$0xff] }
  0x64   : > { %v1425_v54 = vmax.f32 %v1244_v41, %v1305_v39  ;;  %v1486_v55 = vsel %vm1453_vm6, %v1484_v42, %v1485_v43  ;;  %v1488_v61 = vsel %vm1453_vm6, %v1485_v43, %v1487_v44  ;;  %v946_v19 = vrot.slane %v811_v40, 1  ;;  %v814_v39 = vld [vmem:[#allocation2 + $0xc0] sm:$0xff]  ;;  %5254 = vmatmul.mubr.msk.bf16.gmra.mxu0 %vm273_vm1, %v357_v33 }
  0x65   : > { %v1426_v62 = vmax.f32 %v1245_v46, %v1307_v47  ;;  %v1670_v4 = vmax.f32 %v1638_v48, %v6024_v17  ;;  %v1671_v11 = vmax.f32 %v1639_v49, %v6026_v18  ;;  %v947_v5 = vrot.slane %v812_v45, 1 }
  0x66   : > { %v6083_v8 = vmax.f32 %v1425_v54, %v1486_v55  ;;  %v949_v9 = vrot.slane %v813_v50, 1  ;;  %v1127_v13 = vrot.slane %v811_v40, 2  ;;  %v1128_v20 = vrot.slane %v812_v45, 2 }
  0x67   : > { %v6085_v25 = vmax.f32 %v1426_v62, %v1488_v61  ;;  %v1702_v60 = vmax.f32 %v1670_v4, %v6051_v56  ;;  %v1703_v28 = vmax.f32 %v1671_v11, %v6053_v52  ;;  %v948_v29 = vsel %vm910_vm3, %v946_v19, %v947_v5 }
  0x68   : > { %v950_v30 = vsel %vm910_vm3, %v947_v5, %v949_v9  ;;  %v1065_v34 = vmax.f32 %v811_v40, %v948_v29  ;;  %v1129_v35 = vsel %vm1091_vm4, %v1127_v13, %v1128_v20  ;;  %v1130_v51 = vrot.slane %v813_v50, 2 }
  0x69   : > { %v1734_v10 = vmax.f32 %v1702_v60, %v6083_v8  ;;  %v1735_v53 = vmax.f32 %v1703_v28, %v6085_v25  ;;  %v1066_v57 = vmax.f32 %v812_v45, %v950_v30  ;;  %v1308_v6 = vrot.slane %v811_v40, 3 }
  0x6a   : > { %v1131_v7 = vsel %vm1091_vm4, %v1128_v20, %v1130_v51  ;;  %v1246_v58 = vmax.f32 %v1065_v34, %v1129_v35  ;;  %v1309_v63 = vrot.slane %v812_v45, 3  ;;  %v1311_v59 = vrot.slane %v813_v50, 3 }
  0x6b   : > { %v1764_v0 = vpack.c.bf16 %v1735_v53, %v1734_v10  ;;  %2028 = vst.msk [vmem:[#allocation2 + $0x62] sm:$0xff] %vm273_vm1, %v1734_v10  ;;  %2029 = vst.msk [vmem:[#allocation2 + $0x6a] sm:$0xff] %vm273_vm1, %v1735_v53  ;;  %v1247_v12 = vmax.f32 %v1066_v57, %v1131_v7  ;;  %v1489_v1 = vrot.slane %v811_v40, 4  ;;  %v1490_v14 = vrot.slane %v812_v45, 4  ;;  %v816_v40 = vld [vmem:[#allocation2 + $0xd0] sm:$0xf] }
  0x6c   : > { %v1310_v15 = vsel %vm1272_vm5, %v1308_v6, %v1309_v63  ;;  %v1312_v21 = vsel %vm1272_vm5, %v1309_v63, %v1311_v59  ;;  %v1492_v22 = vrot.slane %v813_v50, 4  ;;  %v1640_v23 = vmax.f32 %v6020_v2, %v6024_v17  ;;  %v817_v53 = vld [vmem:[#allocation2 + $0xd8] sm:$0xff]  ;;  %v818_v57 = vld [vmem:[#allocation2 + $0xe0] sm:$0xff]  ;;  %v819_v59 = vld [vmem:[#allocation2 + $0xe8] sm:$0xf] }
  0x6d   : > { %5271 = vmatprep.mubr.msk.bf16.mxu1 %vm273_vm1, %v1764_v0  ;;  %v1427_v26 = vmax.f32 %v1246_v58, %v1310_v15  ;;  %v1428_v27 = vmax.f32 %v1247_v12, %v1312_v21  ;;  %v1491_v31 = vsel %vm1453_vm6, %v1489_v1, %v1490_v14  ;;  %v1641_v32 = vmax.f32 %v6022_v3, %v6026_v18 }
  0x6e   : > { %v1493_v36 = vsel %vm1453_vm6, %v1490_v14, %v1492_v22  ;;  %v1672_v37 = vmax.f32 %v1640_v23, %v6051_v56  ;;  %v745_v38 = vunpack.c.l.bf16 %v355_v16  ;;  %v746_v43 = vunpack.c.h.bf16 %v355_v16 }
  0x6f   : > { %v6109_v41 = vmax.f32 %v1427_v26, %v1491_v31  ;;  %v6111_v2 = vmax.f32 %v1428_v27, %v1493_v36  ;;  %v1673_v42 = vmax.f32 %v1641_v32, %v6053_v52  ;;  %v747_v3 = vunpack.c.l.bf16 %v357_v33 }
  0x70   : > { %v1704_v44 = vmax.f32 %v1672_v37, %v6083_v8  ;;  %778 = vst.msk [vmem:[#allocation2 + $0x122] sm:$0xff] %vm273_vm1, %v745_v38  ;;  %v748_v45 = vunpack.c.h.bf16 %v357_v33  ;;  %779 = vst.msk [vmem:[#allocation2 + $0x12a] sm:$0xff] %vm273_vm1, %v746_v43  ;;  %v951_v47 = vrot.slane %v814_v39, 1  ;;  %v952_v48 = vrot.slane %v815_v24, 1 }
  0x71   : > { %v1705_v46 = vmax.f32 %v1673_v42, %v6085_v25  ;;  %v954_v49 = vrot.slane %v816_v40, 1  ;;  %780 = vst.msk [vmem:[#allocation2 + $0x13a] sm:$0xff] %vm273_vm1, %v747_v3  ;;  %v1132_v54 = vrot.slane %v814_v39, 2  ;;  %v1133_v55 = vrot.slane %v815_v24, 2 }
  0x72   : > { %v1736_v50 = vmax.f32 %v1704_v44, %v6109_v41  ;;  %781 = vst.msk [vmem:[#allocation2 + $0x142] sm:$0xff] %vm273_vm1, %v748_v45  ;;  %v1135_v61 = vrot.slane %v816_v40, 2  ;;  %v953_v62 = vsel %vm910_vm3, %v951_v47, %v952_v48  ;;  %v1313_v11 = vrot.slane %v814_v39, 3 }
  0x73   : > { %v1737_v19 = vmax.f32 %v1705_v46, %v6111_v2  ;;  %v955_v4 = vsel %vm910_vm3, %v952_v48, %v954_v49  ;;  %v1067_v5 = vmax.f32 %v814_v39, %v953_v62  ;;  %v1134_v13 = vsel %vm1091_vm4, %v1132_v54, %v1133_v55  ;;  %v359_v54 = vld [vmem:[%s5777_s30 + $0x60] sm:$0xff]  }
  0x74   : > { %2030 = vst.msk [vmem:[#allocation2 + $0x7a] sm:$0xff] %vm273_vm1, %v1736_v50  ;;  %v1068_v9 = vmax.f32 %v815_v24, %v955_v4  ;;  %v1136_v20 = vsel %vm1091_vm4, %v1133_v55, %v1135_v61  ;;  %v1314_v28 = vrot.slane %v815_v24, 3  ;;  %v1316_v29 = vrot.slane %v816_v40, 3  ;;  %5257 = vmatprep.mubr.msk.bf16.mxu0 %vm273_vm1, %v359_v54 }
  0x75   : > { %v1765_v60 = vpack.c.bf16 %v1737_v19, %v1736_v50  ;;  %2031 = vst.msk [vmem:[#allocation2 + $0x82] sm:$0xff] %vm273_vm1, %v1737_v19  ;;  %v1494_v30 = vrot.slane %v814_v39, 4  ;;  %v1248_v34 = vmax.f32 %v1067_v5, %v1134_v13  ;;  %v1495_v51 = vrot.slane %v815_v24, 4  ;;  %v361_v13 = vld [vmem:[%s5777_s30 + $0x68] sm:$0xff]  }
  0x76   : > { %v1249_v35 = vmax.f32 %v1068_v9, %v1136_v20  ;;  %v1497_v10 = vrot.slane %v816_v40, 4  ;;  %v1315_v6 = vsel %vm1272_vm5, %v1313_v11, %v1314_v28  ;;  %v1317_v7 = vsel %vm1272_vm5, %v1314_v28, %v1316_v29  ;;  %v820_v29 = vld [vmem:[#allocation2 + $0xf0] sm:$0xff]  ;;  %5258 = vmatmul.mubr.msk.bf16.gmra.mxu0 %vm273_vm1, %v361_v13 }
  0x77   : > { %5272 = vmatmul.mubr.msk.bf16.gmra.mxu1 %vm273_vm1, %v1765_v60  ;;  %v1642_v58 = vmax.f32 %v6024_v17, %v6051_v56  ;;  %v1643_v63 = vmax.f32 %v6026_v18, %v6053_v52  ;;  %v1429_v0 = vmax.f32 %v1248_v34, %v1315_v6  ;;  %v1496_v1 = vsel %vm1453_vm6, %v1494_v30, %v1495_v51  ;;  %v821_v30 = vld [vmem:[#allocation2 + $0xf8] sm:$0xff]  ;;  %v822_v34 = vld [vmem:[#allocation2 + $0x100] sm:$0xf] }
  0x78   : > { %v1430_v12 = vmax.f32 %v1249_v35, %v1317_v7  ;;  %v1498_v14 = vsel %vm1453_vm6, %v1495_v51, %v1497_v10  ;;  %v956_v21 = vrot.slane %v817_v53, 1  ;;  %v957_v22 = vrot.slane %v818_v57, 1 }
  0x79   : > { %v1674_v16 = vmax.f32 %v1642_v58, %v6083_v8  ;;  %v1675_v15 = vmax.f32 %v1643_v63, %v6085_v25  ;;  %v6141_v23 = vmax.f32 %v1429_v0, %v1496_v1  ;;  %v959_v17 = vrot.slane %v819_v59, 1 }
  0x7a   : > { %v6143_v26 = vmax.f32 %v1430_v12, %v1498_v14  ;;  %v1137_v27 = vrot.slane %v817_v53, 2  ;;  %v958_v32 = vsel %vm910_vm3, %v956_v21, %v957_v22  ;;  %v1138_v33 = vrot.slane %v818_v57, 2 }
  0x7b   : > { %v1706_v18 = vmax.f32 %v1674_v16, %v6109_v41  ;;  %v1707_v31 = vmax.f32 %v1675_v15, %v6111_v2  ;;  %v960_v36 = vsel %vm910_vm3, %v957_v22, %v959_v17  ;;  %v1069_v37 = vmax.f32 %v817_v53, %v958_v32 }
  0x7c   : > { %v1140_v38 = vrot.slane %v819_v59, 2  ;;  %v1318_v39 = vrot.slane %v817_v53, 3  ;;  %v1070_v42 = vmax.f32 %v818_v57, %v960_v36  ;;  %v1139_v43 = vsel %vm1091_vm4, %v1137_v27, %v1138_v33 }
  0x7d   : > { %v1738_v24 = vmax.f32 %v1706_v18, %v6141_v23  ;;  %v1739_v40 = vmax.f32 %v1707_v31, %v6143_v26  ;;  %v1250_v3 = vmax.f32 %v1069_v37, %v1139_v43  ;;  %v1319_v45 = vrot.slane %v818_v57, 3 }
  0x7e   : > { %v1141_v44 = vsel %vm1091_vm4, %v1138_v33, %v1140_v38  ;;  %v1321_v46 = vrot.slane %v819_v59, 3  ;;  %v1499_v49 = vrot.slane %v817_v53, 4  ;;  %v1500_v50 = vrot.slane %v818_v57, 4 }
  0x7f   : > { %v1766_v47 = vpack.c.bf16 %v1739_v40, %v1738_v24  ;;  %2032 = vst.msk [vmem:[#allocation2 + $0x92] sm:$0xff] %vm273_vm1, %v1738_v24  ;;  %2033 = vst.msk [vmem:[#allocation2 + $0x9a] sm:$0xff] %vm273_vm1, %v1739_v40  ;;  %v1251_v48 = vmax.f32 %v1070_v42, %v1141_v44  ;;  %v1320_v55 = vsel %vm1272_vm5, %v1318_v39, %v1319_v45  ;;  %v1502_v19 = vrot.slane %v819_v59, 4  ;;  %v823_v40 = vld [vmem:[#allocation2 + $0x108] sm:$0xff]  ;;  %v824_v42 = vld [vmem:[#allocation2 + $0x110] sm:$0xff] }
  0x80   : > { %v1322_v61 = vsel %vm1272_vm5, %v1319_v45, %v1321_v46  ;;  %v1644_v62 = vmax.f32 %v6051_v56, %v6083_v8  ;;  %v1431_v4 = vmax.f32 %v1250_v3, %v1320_v55  ;;  %v1501_v5 = vsel %vm1453_vm6, %v1499_v49, %v1500_v50  ;;  %v825_v46 = vld [vmem:[#allocation2 + $0x118] sm:$0xf] }
  0x81   : > { %5275 = vmatprep.mubr.msk.bf16.mxu1 %vm273_vm1, %v1766_v47  ;;  %v1432_v11 = vmax.f32 %v1251_v48, %v1322_v61  ;;  %v1645_v9 = vmax.f32 %v6053_v52, %v6085_v25  ;;  %v1503_v20 = vsel %vm1453_vm6, %v1500_v50, %v1502_v19  ;;  %v749_v28 = vunpack.c.l.bf16 %v359_v54 }
  0x82   : > { %v1676_v60 = vmax.f32 %v1644_v62, %v6109_v41  ;;  %v6167_v35 = vmax.f32 %v1431_v4, %v1501_v5  ;;  %v750_v10 = vunpack.c.h.bf16 %v359_v54  ;;  %v751_v52 = vunpack.c.l.bf16 %v361_v13 }
  0x83   : > { %v6169_v56 = vmax.f32 %v1432_v11, %v1503_v20  ;;  %v1677_v51 = vmax.f32 %v1645_v9, %v6111_v2  ;;  %782 = vst.msk [vmem:[#allocation2 + $0x152] sm:$0xff] %vm273_vm1, %v749_v28  ;;  %v752_v57 = vunpack.c.h.bf16 %v361_v13  ;;  %v961_v7 = vrot.slane %v820_v29, 1 }
  0x84   : > { %v1708_v53 = vmax.f32 %v1676_v60, %v6141_v23  ;;  %783 = vst.msk [vmem:[#allocation2 + $0x15a] sm:$0xff] %vm273_vm1, %v750_v10  ;;  %v962_v58 = vrot.slane %v821_v30, 1  ;;  %v964_v63 = vrot.slane %v822_v34, 1  ;;  %784 = vst.msk [vmem:[#allocation2 + $0x16a] sm:$0xff] %vm273_vm1, %v751_v52  ;;  %v1142_v0 = vrot.slane %v820_v29, 2 }
  0x85   : > { %v1709_v6 = vmax.f32 %v1677_v51, %v6143_v26  ;;  %785 = vst.msk [vmem:[#allocation2 + $0x172] sm:$0xff] %vm273_vm1, %v752_v57  ;;  %v1143_v12 = vrot.slane %v821_v30, 2  ;;  %v1145_v1 = vrot.slane %v822_v34, 2  ;;  %v1323_v21 = vrot.slane %v820_v29, 3 }
  0x86   : > { %v1740_v59 = vmax.f32 %v1708_v53, %v6167_v35  ;;  %v963_v16 = vsel %vm910_vm3, %v961_v7, %v962_v58  ;;  %v965_v15 = vsel %vm910_vm3, %v962_v58, %v964_v63  ;;  %v1324_v32 = vrot.slane %v821_v30, 3 }
  0x87   : > { %v1741_v14 = vmax.f32 %v1709_v6, %v6169_v56  ;;  %v1071_v22 = vmax.f32 %v820_v29, %v963_v16  ;;  %v1072_v17 = vmax.f32 %v821_v30, %v965_v15  ;;  %v1144_v27 = vsel %vm1091_vm4, %v1142_v0, %v1143_v12  ;;  %v363_v0 = vld [vmem:[%s5777_s30 + $0x70] sm:$0xff]  }
  0x88   : > { %2034 = vst.msk [vmem:[#allocation2 + $0xaa] sm:$0xff] %vm273_vm1, %v1740_v59  ;;  %v1146_v18 = vsel %vm1091_vm4, %v1143_v12, %v1145_v1  ;;  %v1326_v33 = vrot.slane %v822_v34, 3  ;;  %v1504_v36 = vrot.slane %v820_v29, 4  ;;  %v1505_v39 = vrot.slane %v821_v30, 4  ;;  %5261 = vmatprep.mubr.msk.bf16.mxu0 %vm273_vm1, %v363_v0 }
  0x89   : > { %v1767_v31 = vpack.c.bf16 %v1741_v14, %v1740_v59  ;;  %2035 = vst.msk [vmem:[#allocation2 + $0xb2] sm:$0xff] %vm273_vm1, %v1741_v14  ;;  %v1252_v37 = vmax.f32 %v1071_v22, %v1144_v27  ;;  %v1253_v38 = vmax.f32 %v1072_v17, %v1146_v18  ;;  %v1507_v24 = vrot.slane %v822_v34, 4  ;;  %v365_v27 = vld [vmem:[%s5777_s30 + $0x78] sm:$0xff]  }
  0x8a   : > { %v1325_v43 = vsel %vm1272_vm5, %v1323_v21, %v1324_v32  ;;  %v1327_v44 = vsel %vm1272_vm5, %v1324_v32, %v1326_v33  ;;  %v1646_v3 = vmax.f32 %v6083_v8, %v6109_v41  ;;  %v1647_v45 = vmax.f32 %v6085_v25, %v6111_v2  ;;  %v826_v33 = vld [vmem:[#allocation2 + $0x120] sm:$0xff]  ;;  %5262 = vmatmul.mubr.msk.bf16.gmra.mxu0 %vm273_vm1, %v365_v27 }
  0x8b   : > { %5276 = vmatmul.mubr.msk.bf16.gmra.mxu1 %vm273_vm1, %v1767_v31  ;;  %v1433_v47 = vmax.f32 %v1252_v37, %v1325_v43  ;;  %v1434_v48 = vmax.f32 %v1253_v38, %v1327_v44  ;;  %v1506_v49 = vsel %vm1453_vm6, %v1504_v36, %v1505_v39  ;;  %v1508_v50 = vsel %vm1453_vm6, %v1505_v39, %v1507_v24  ;;  %v827_v36 = vld [vmem:[#allocation2 + $0x128] sm:$0xff]  ;;  %v828_v37 = vld [vmem:[#allocation2 + $0x130] sm:$0xf] }
  0x8c   : > { %v1678_v54 = vmax.f32 %v1646_v3, %v6141_v23  ;;  %v1679_v55 = vmax.f32 %v1647_v45, %v6143_v26  ;;  %v966_v61 = vrot.slane %v823_v40, 1  ;;  %v967_v19 = vrot.slane %v824_v42, 1 }
  0x8d   : > { %v6199_v62 = vmax.f32 %v1433_v47, %v1506_v49  ;;  %v6201_v4 = vmax.f32 %v1434_v48, %v1508_v50  ;;  %v969_v8 = vrot.slane %v825_v46, 1  ;;  %v1147_v11 = vrot.slane %v823_v40, 2 }
  0x8e   : > { %v1710_v25 = vmax.f32 %v1678_v54, %v6167_v35  ;;  %v1711_v5 = vmax.f32 %v1679_v55, %v6169_v56  ;;  %v968_v9 = vsel %vm910_vm3, %v966_v61, %v967_v19  ;;  %v1148_v13 = vrot.slane %v824_v42, 2 }
  0x8f   : > { %v970_v20 = vsel %vm910_vm3, %v967_v19, %v969_v8  ;;  %v1073_v60 = vmax.f32 %v823_v40, %v968_v9  ;;  %v1150_v28 = vrot.slane %v825_v46, 2  ;;  %v1328_v29 = vrot.slane %v823_v40, 3 }
  0x90   : > { %v1742_v30 = vmax.f32 %v1710_v25, %v6199_v62  ;;  %v1743_v34 = vmax.f32 %v1711_v5, %v6201_v4  ;;  %v1074_v51 = vmax.f32 %v824_v42, %v970_v20  ;;  %v1149_v10 = vsel %vm1091_vm4, %v1147_v11, %v1148_v13 }
  0x91   : > { %v1151_v53 = vsel %vm1091_vm4, %v1148_v13, %v1150_v28  ;;  %v1254_v52 = vmax.f32 %v1073_v60, %v1149_v10  ;;  %v1329_v57 = vrot.slane %v824_v42, 3  ;;  %v1331_v6 = vrot.slane %v825_v46, 3 }
  0x92   : > { %v1768_v7 = vpack.c.bf16 %v1743_v34, %v1742_v30  ;;  %2036 = vst.msk [vmem:[#allocation2 + $0xc2] sm:$0xff] %vm273_vm1, %v1742_v30  ;;  %2037 = vst.msk [vmem:[#allocation2 + $0xca] sm:$0xff] %vm273_vm1, %v1743_v34  ;;  %v1255_v58 = vmax.f32 %v1074_v51, %v1151_v53  ;;  %v1509_v63 = vrot.slane %v823_v40, 4  ;;  %v1510_v59 = vrot.slane %v824_v42, 4  ;;  %v829_v34 = vld [vmem:[#allocation2 + $0x138] sm:$0xff]  ;;  %v830_v51 = vld [vmem:[#allocation2 + $0x140] sm:$0xff] }
  0x93   : > { %v1330_v12 = vsel %vm1272_vm5, %v1328_v29, %v1329_v57  ;;  %v1332_v1 = vsel %vm1272_vm5, %v1329_v57, %v1331_v6  ;;  %v1512_v14 = vrot.slane %v825_v46, 4  ;;  %v1648_v16 = vmax.f32 %v6109_v41, %v6141_v23  ;;  %v831_v6 = vld [vmem:[#allocation2 + $0x148] sm:$0xf] }
  0x94   : > { %5279 = vmatprep.mubr.msk.bf16.mxu1 %vm273_vm1, %v1768_v7  ;;  %v1435_v15 = vmax.f32 %v1254_v52, %v1330_v12  ;;  %v1436_v21 = vmax.f32 %v1255_v58, %v1332_v1  ;;  %v1511_v22 = vsel %vm1453_vm6, %v1509_v63, %v1510_v59  ;;  %v1649_v17 = vmax.f32 %v6111_v2, %v6143_v26 }
  0x95   : > { %v1513_v18 = vsel %vm1453_vm6, %v1510_v59, %v1512_v14  ;;  %v1680_v31 = vmax.f32 %v1648_v16, %v6167_v35  ;;  %v753_v32 = vunpack.c.l.bf16 %v363_v0  ;;  %v754_v24 = vunpack.c.h.bf16 %v363_v0 }
  0x96   : > { %v6225_v38 = vmax.f32 %v1435_v15, %v1511_v22  ;;  %v6227_v41 = vmax.f32 %v1436_v21, %v1513_v18  ;;  %v1681_v39 = vmax.f32 %v1649_v17, %v6169_v56  ;;  %v755_v2 = vunpack.c.l.bf16 %v365_v27 }
  0x97   : > { %v1712_v40 = vmax.f32 %v1680_v31, %v6199_v62  ;;  %786 = vst.msk [vmem:[#allocation2 + $0x182] sm:$0xff] %vm273_vm1, %v753_v32  ;;  %v756_v42 = vunpack.c.h.bf16 %v365_v27  ;;  %787 = vst.msk [vmem:[#allocation2 + $0x18a] sm:$0xff] %vm273_vm1, %v754_v24  ;;  %v971_v44 = vrot.slane %v826_v33, 1  ;;  %v972_v3 = vrot.slane %v827_v36, 1 }
  0x98   : > { %v1713_v43 = vmax.f32 %v1681_v39, %v6201_v4  ;;  %v974_v45 = vrot.slane %v828_v37, 1  ;;  %788 = vst.msk [vmem:[#allocation2 + $0x19a] sm:$0xff] %vm273_vm1, %v755_v2  ;;  %v1152_v47 = vrot.slane %v826_v33, 2  ;;  %v1153_v48 = vrot.slane %v827_v36, 2 }
  0x99   : > { %v1744_v46 = vmax.f32 %v1712_v40, %v6225_v38  ;;  %789 = vst.msk [vmem:[#allocation2 + $0x1a2] sm:$0xff] %vm273_vm1, %v756_v42  ;;  %v1155_v49 = vrot.slane %v828_v37, 2  ;;  %v973_v54 = vsel %vm910_vm3, %v971_v44, %v972_v3  ;;  %v1333_v61 = vrot.slane %v826_v33, 3 }
  0x9a   : > { %v1745_v50 = vmax.f32 %v1713_v43, %v6227_v41  ;;  %v975_v55 = vsel %vm910_vm3, %v972_v3, %v974_v45  ;;  %v1075_v19 = vmax.f32 %v826_v33, %v973_v54  ;;  %v1154_v11 = vsel %vm1091_vm4, %v1152_v47, %v1153_v48  ;;  %v6271_v47 = vld [vmem:[#allocation2] sm:$0xff] }
  0x9b   : > { %2038 = vst.msk [vmem:[#allocation2 + $0xda] sm:$0xff] %vm273_vm1, %v1744_v46  ;;  %v1076_v8 = vmax.f32 %v827_v36, %v975_v55  ;;  %v1156_v25 = vsel %vm1091_vm4, %v1153_v48, %v1155_v49  ;;  %v1334_v9 = vrot.slane %v827_v36, 3  ;;  %v1336_v13 = vrot.slane %v828_v37, 3  ;;  %v6273_v48 = vld [vmem:[#allocation2 + $0x8] sm:$0xff] }
  0x9c   : > { %v1769_v5 = vpack.c.bf16 %v1745_v50, %v1744_v46  ;;  %2039 = vst.msk [vmem:[#allocation2 + $0xe2] sm:$0xff] %vm273_vm1, %v1745_v50  ;;  %v1514_v20 = vrot.slane %v826_v33, 4  ;;  %v1256_v60 = vmax.f32 %v1075_v19, %v1154_v11  ;;  %v1515_v29 = vrot.slane %v827_v36, 4 }
  0x9d   : > { %v1257_v28 = vmax.f32 %v1076_v8, %v1156_v25  ;;  %v1517_v30 = vrot.slane %v828_v37, 4  ;;  %v1335_v10 = vsel %vm1272_vm5, %v1333_v61, %v1334_v9  ;;  %v1337_v53 = vsel %vm1272_vm5, %v1334_v9, %v1336_v13  ;;  %v6279_v61 = vld [vmem:[#allocation2 + $0x10] sm:$0xf]  ;;  %v6287_v9 = vld [vmem:[#allocation2 + $0x20] sm:$0xff] }
  0x9e   : > { %5280 = vmatmul.mubr.msk.bf16.gmra.mxu1 %vm273_vm1, %v1769_v5  ;;  %v1650_v52 = vmax.f32 %v6141_v23, %v6167_v35  ;;  %v1651_v57 = vmax.f32 %v6143_v26, %v6169_v56  ;;  %v1437_v7 = vmax.f32 %v1256_v60, %v1335_v10  ;;  %v1516_v63 = vsel %vm1453_vm6, %v1514_v20, %v1515_v29  ;;  %v6285_v5 = vld [vmem:[#allocation2 + $0x18] sm:$0xff]  ;;  %v6293_v60 = vld [vmem:[#allocation2 + $0x30] sm:$0xff]  ;;  %v6304_v10 = vld [vmem:[#allocation2 + $0x40] sm:$0xf] }
  0x9f   : > { %v1438_v58 = vmax.f32 %v1257_v28, %v1337_v53  ;;  %v1518_v59 = vsel %vm1453_vm6, %v1515_v29, %v1517_v30  ;;  %v976_v1 = vrot.slane %v829_v34, 1  ;;  %v977_v14 = vrot.slane %v830_v51, 1 }
  0xa0   : > { %v1682_v0 = vmax.f32 %v1650_v52, %v6199_v62  ;;  %v1683_v12 = vmax.f32 %v1651_v57, %v6201_v4  ;;  %v6257_v16 = vmax.f32 %v1437_v7, %v1516_v63  ;;  %v979_v23 = vrot.slane %v831_v6, 1  ;;  %v6308_v57 = vld [vmem:[#allocation2 + $0x48] sm:$0xff] }
  0xa1   : > { %v6259_v15 = vmax.f32 %v1438_v58, %v1518_v59  ;;  %v1157_v21 = vrot.slane %v829_v34, 2  ;;  %v978_v17 = vsel %vm910_vm3, %v976_v1, %v977_v14  ;;  %v1158_v27 = vrot.slane %v830_v51, 2 }
  0xa2   : > { %v1714_v26 = vmax.f32 %v1682_v0, %v6225_v38  ;;  %v1715_v22 = vmax.f32 %v1683_v12, %v6227_v41  ;;  %v980_v18 = vsel %vm910_vm3, %v977_v14, %v979_v23  ;;  %v1077_v31 = vmax.f32 %v829_v34, %v978_v17  ;;  %v6318_v0 = vld [vmem:[#allocation2 + $0x58] sm:$0xf]  ;;  %v6320_v12 = vld [vmem:[#allocation2 + $0x60] sm:$0xff] }
  0xa3   : > { %v1160_v32 = vrot.slane %v831_v6, 2  ;;  %v1338_v33 = vrot.slane %v829_v34, 3  ;;  %v1078_v39 = vmax.f32 %v830_v51, %v980_v18  ;;  %v1159_v24 = vsel %vm1091_vm4, %v1157_v21, %v1158_v27 }
  0xa4   : > { %v1746_v36 = vmax.f32 %v1714_v26, %v6257_v16  ;;  %v1747_v37 = vmax.f32 %v1715_v22, %v6259_v15  ;;  %v1258_v2 = vmax.f32 %v1077_v31, %v1159_v24  ;;  %v1339_v42 = vrot.slane %v830_v51, 3  ;;  %v6326_v26 = vld [vmem:[#allocation2 + $0x68] sm:$0xff]  ;;  %v6328_v22 = vld [vmem:[#allocation2 + $0x70] sm:$0xf] }
  0xa5   : > { %v1161_v40 = vsel %vm1091_vm4, %v1158_v27, %v1160_v32  ;;  %v1341_v43 = vrot.slane %v831_v6, 3  ;;  %v1519_v45 = vrot.slane %v829_v34, 4  ;;  %v1520_v46 = vrot.slane %v830_v51, 4  ;;  %v6302_v51 = vld [vmem:[#allocation2 + $0x38] sm:$0xff] }
  0xa6   : > { %v1770_v44 = vpack.c.bf16 %v1747_v37, %v1746_v36  ;;  %2040 = vst.msk [vmem:[#allocation2 + $0xf2] sm:$0xff] %vm273_vm1, %v1746_v36  ;;  %2041 = vst.msk [vmem:[#allocation2 + $0xfa] sm:$0xff] %vm273_vm1, %v1747_v37  ;;  %v1259_v3 = vmax.f32 %v1078_v39, %v1161_v40  ;;  %v1340_v49 = vsel %vm1272_vm5, %v1338_v33, %v1339_v42  ;;  %v1522_v54 = vrot.slane %v831_v6, 4  ;;  %v6310_v6 = vld [vmem:[#allocation2 + $0x50] sm:$0xff] }
  0xa7   : > { %v1342_v50 = vsel %vm1272_vm5, %v1339_v42, %v1341_v43  ;;  %v1652_v55 = vmax.f32 %v6167_v35, %v6199_v62  ;;  %v1439_v19 = vmax.f32 %v1258_v2, %v1340_v49  ;;  %v1521_v11 = vsel %vm1453_vm6, %v1519_v45, %v1520_v46  ;;  %v6291_v35 = vld [vmem:[#allocation2 + $0x28] sm:$0xf] }
  0xa8   : > { %5283 = vmatprep.mubr.msk.bf16.mxu1 %vm273_vm1, %v1770_v44  ;;  %v1440_v8 = vmax.f32 %v1259_v3, %v1342_v50  ;;  %v1653_v25 = vmax.f32 %v6169_v56, %v6201_v4  ;;  %v1523_v13 = vsel %vm1453_vm6, %v1520_v46, %v1522_v54  ;;  %v2176_v28 = vrot.slane %v6271_v47, 1 }
  0xa9   : > { %v1684_v20 = vmax.f32 %v1652_v55, %v6225_v38  ;;  %v2177_v29 = vrot.slane %v6273_v48, 1  ;;  %v6297_v30 = vmax.f32 %v1439_v19, %v1521_v11  ;;  %v2179_v53 = vrot.slane %v6279_v61, 1 }
  0xaa   : > { %v6299_v34 = vmax.f32 %v1440_v8, %v1523_v13  ;;  %v1685_v56 = vmax.f32 %v1653_v25, %v6227_v41  ;;  %v2181_v58 = vrot.slane %v6285_v5, 1  ;;  %v2182_v63 = vrot.slane %v6287_v9, 1 }
  0xab   : > { %v1716_v52 = vmax.f32 %v1684_v20, %v6257_v16  ;;  %v6313_v7 = vsel %vm910_vm3, %v2176_v28, %v2177_v29  ;;  %v2180_v1 = vsel %vm910_vm3, %v2177_v29, %v2179_v53  ;;  %v2184_v14 = vrot.slane %v6291_v35, 1 }
  0xac   : > { %v1717_v59 = vmax.f32 %v1685_v56, %v6259_v15  ;;  %v2186_v23 = vrot.slane %v6293_v60, 1  ;;  %v2183_v17 = vsel %vm910_vm3, %v2181_v58, %v2182_v63  ;;  %v2187_v27 = vrot.slane %v6302_v51, 1 }
  0xad   : > { %v1748_v21 = vmax.f32 %v1716_v52, %v6297_v30  ;;  %v2189_v18 = vrot.slane %v6304_v10, 1  ;;  %v2185_v32 = vsel %vm910_vm3, %v2182_v63, %v2184_v14  ;;  %v2191_v33 = vrot.slane %v6308_v57, 1 }
  0xae   : > { %v1749_v31 = vmax.f32 %v1717_v59, %v6299_v34  ;;  %v2192_v36 = vrot.slane %v6310_v6, 1  ;;  %v2188_v37 = vsel %vm910_vm3, %v2186_v23, %v2187_v27  ;;  %v2194_v24 = vrot.slane %v6318_v0, 1 }
  0xaf   : > { %2042 = vst.msk [vmem:[#allocation2 + $0x10a] sm:$0xff] %vm273_vm1, %v1748_v21  ;;  %v2190_v39 = vsel %vm910_vm3, %v2187_v27, %v2189_v18  ;;  %v2196_v40 = vrot.slane %v6320_v12, 1  ;;  %v2197_v43 = vrot.slane %v6326_v26, 1  ;;  %v2199_v44 = vrot.slane %v6328_v22, 1 }
  0xb0   : > { %v1771_v2 = vpack.c.bf16 %v1749_v31, %v1748_v21  ;;  %2043 = vst.msk [vmem:[#allocation2 + $0x112] sm:$0xff] %vm273_vm1, %v1749_v31  ;;  %v2193_v42 = vsel %vm910_vm3, %v2191_v33, %v2192_v36  ;;  %v2195_v3 = vsel %vm910_vm3, %v2192_v36, %v2194_v24  ;;  %v2316_v45 = vmax.f32 %v6271_v47, %v6313_v7 }
  0xb1   : > { %v2317_v46 = vmax.f32 %v6273_v48, %v2180_v1  ;;  %v2318_v49 = vmax.f32 %v6285_v5, %v2183_v17  ;;  %v2198_v50 = vsel %vm910_vm3, %v2196_v40, %v2197_v43  ;;  %v2200_v54 = vsel %vm910_vm3, %v2197_v43, %v2199_v44 }
  0xb2   : > { %5284 = vmatmul.mubr.msk.bf16.gmra.mxu1 %vm273_vm1, %v1771_v2  ;;  %v2319_v55 = vmax.f32 %v6287_v9, %v2185_v32  ;;  %v2320_v19 = vmax.f32 %v6293_v60, %v2188_v37  ;;  %v2321_v8 = vmax.f32 %v6302_v51, %v2190_v39  ;;  %v2322_v11 = vmax.f32 %v6308_v57, %v2193_v42 }
  0xb3   : > { %v2323_v25 = vmax.f32 %v6310_v6, %v2195_v3  ;;  %v2324_v13 = vmax.f32 %v6320_v12, %v2198_v50  ;;  %v2325_v20 = vmax.f32 %v6326_v26, %v2200_v54  ;;  %v2356_v28 = vrot.slane %v6271_v47, 2 }
  0xb4   : > { %v2357_v29 = vrot.slane %v6273_v48, 2  ;;  %v2359_v56 = vrot.slane %v6279_v61, 2  ;;  %v2361_v53 = vrot.slane %v6285_v5, 2  ;;  %v2362_v52 = vrot.slane %v6287_v9, 2 }
  0xb5   : > { %v2364_v7 = vrot.slane %v6291_v35, 2  ;;  %v2366_v58 = vrot.slane %v6293_v60, 2  ;;  %v2367_v1 = vrot.slane %v6302_v51, 2  ;;  %v2369_v14 = vrot.slane %v6304_v10, 2 }
  0xb6   : > { %v2358_v63 = vsel %vm1091_vm4, %v2356_v28, %v2357_v29  ;;  %v2360_v59 = vsel %vm1091_vm4, %v2357_v29, %v2359_v56  ;;  %v2363_v23 = vsel %vm1091_vm4, %v2361_v53, %v2362_v52  ;;  %v2371_v17 = vrot.slane %v6308_v57, 2 }
  0xb7   : > { %v2365_v21 = vsel %vm1091_vm4, %v2362_v52, %v2364_v7  ;;  %v2372_v27 = vrot.slane %v6310_v6, 2  ;;  %v2368_v18 = vsel %vm1091_vm4, %v2366_v58, %v2367_v1  ;;  %v2370_v31 = vsel %vm1091_vm4, %v2367_v1, %v2369_v14 }
  0xb8   : > { %v2374_v32 = vrot.slane %v6318_v0, 2  ;;  %v2376_v33 = vrot.slane %v6320_v12, 2  ;;  %v2377_v37 = vrot.slane %v6326_v26, 2  ;;  %v2379_v39 = vrot.slane %v6328_v22, 2 }
  0xb9   : > { %v2373_v36 = vsel %vm1091_vm4, %v2371_v17, %v2372_v27  ;;  %v6383_v24 = vmax.f32 %v2316_v45, %v2358_v63  ;;  %v6386_v2 = vmax.f32 %v2317_v46, %v2360_v59  ;;  %v6388_v42 = vmax.f32 %v2318_v49, %v2363_v23 }
  0xba   : > { %v2375_v40 = vsel %vm1091_vm4, %v2372_v27, %v2374_v32  ;;  %v6390_v43 = vmax.f32 %v2319_v55, %v2365_v21  ;;  %v2378_v44 = vsel %vm1091_vm4, %v2376_v33, %v2377_v37  ;;  %v2380_v3 = vsel %vm1091_vm4, %v2377_v37, %v2379_v39 }
  0xbb   : > { %v6394_v50 = vmax.f32 %v2320_v19, %v2368_v18  ;;  %v6396_v54 = vmax.f32 %v2321_v8, %v2370_v31  ;;  %v6398_v28 = vmax.f32 %v2322_v11, %v2373_v36  ;;  %v6400_v45 = vmax.f32 %v2323_v25, %v2375_v40 }
  0xbc   : > { %v6402_v29 = vmax.f32 %v2324_v13, %v2378_v44  ;;  %v6404_v46 = vmax.f32 %v2325_v20, %v2380_v3  ;;  %v2536_v49 = vrot.slane %v6271_v47, 3  ;;  %v2537_v55 = vrot.slane %v6273_v48, 3 }
  0xbd   : > { %v2539_v56 = vrot.slane %v6279_v61, 3  ;;  %v2541_v53 = vrot.slane %v6285_v5, 3  ;;  %v2542_v19 = vrot.slane %v6287_v9, 3  ;;  %v2544_v8 = vrot.slane %v6291_v35, 3 }
  0xbe   : > { %v2546_v11 = vrot.slane %v6293_v60, 3  ;;  %v2547_v25 = vrot.slane %v6302_v51, 3  ;;  %v2538_v13 = vsel %vm1272_vm5, %v2536_v49, %v2537_v55  ;;  %v2549_v52 = vrot.slane %v6304_v10, 3 }
  0xbf   : > { %v2540_v20 = vsel %vm1272_vm5, %v2537_v55, %v2539_v56  ;;  %v2551_v7 = vrot.slane %v6308_v57, 3  ;;  %v2543_v58 = vsel %vm1272_vm5, %v2541_v53, %v2542_v19  ;;  %v2545_v63 = vsel %vm1272_vm5, %v2542_v19, %v2544_v8 }
  0xc0   : > { %v2548_v59 = vsel %vm1272_vm5, %v2546_v11, %v2547_v25  ;;  %v2552_v1 = vrot.slane %v6310_v6, 3  ;;  %v2550_v14 = vsel %vm1272_vm5, %v2547_v25, %v2549_v52  ;;  %v2554_v23 = vrot.slane %v6318_v0, 3 }
  0xc1   : > { %v2556_v21 = vrot.slane %v6320_v12, 3  ;;  %v2557_v17 = vrot.slane %v6326_v26, 3  ;;  %v2559_v18 = vrot.slane %v6328_v22, 3  ;;  %v2676_v31 = vmax.f32 %v6383_v24, %v2538_v13 }
  0xc2   : > { %v2553_v27 = vsel %vm1272_vm5, %v2551_v7, %v2552_v1  ;;  %v2677_v32 = vmax.f32 %v6386_v2, %v2540_v20  ;;  %v2555_v33 = vsel %vm1272_vm5, %v2552_v1, %v2554_v23  ;;  %v2678_v37 = vmax.f32 %v6388_v42, %v2543_v58  ;;  %v2071_v58 = vld [vmem:[#allocation2 + $0x78] sm:$0xff] }
  0xc3   : > { %v2558_v36 = vsel %vm1272_vm5, %v2556_v21, %v2557_v17  ;;  %v2679_v39 = vmax.f32 %v6390_v43, %v2545_v63  ;;  %v2560_v40 = vsel %vm1272_vm5, %v2557_v17, %v2559_v18  ;;  %v2680_v44 = vmax.f32 %v6394_v50, %v2548_v59  ;;  %v2073_v59 = vld [vmem:[#allocation2 + $0x88] sm:$0xf] }
  0xc4   : > { %v2681_v3 = vmax.f32 %v6396_v54, %v2550_v14  ;;  %v2682_v49 = vmax.f32 %v6398_v28, %v2553_v27  ;;  %v2683_v24 = vmax.f32 %v6400_v45, %v2555_v33  ;;  %v2684_v2 = vmax.f32 %v6402_v29, %v2558_v36 }
  0xc5   : > { %v2685_v55 = vmax.f32 %v6404_v46, %v2560_v40  ;;  %v2716_v56 = vrot.slane %v6271_v47, 4  ;;  %v2717_v42 = vrot.slane %v6273_v48, 4  ;;  %v2719_v43 = vrot.slane %v6279_v61, 4 }
  0xc6   : > { %v2721_v53 = vrot.slane %v6285_v5, 4  ;;  %v2722_v50 = vrot.slane %v6287_v9, 4  ;;  %v2724_v54 = vrot.slane %v6291_v35, 4  ;;  %v2726_v28 = vrot.slane %v6293_v60, 4 }
  0xc7   : > { %v2727_v45 = vrot.slane %v6302_v51, 4  ;;  %v2729_v29 = vrot.slane %v6304_v10, 4  ;;  %v2718_v46 = vsel %vm1453_vm6, %v2716_v56, %v2717_v42  ;;  %v2720_v47 = vsel %vm1453_vm6, %v2717_v42, %v2719_v43 }
  0xc8   : > { %v2723_v48 = vsel %vm1453_vm6, %v2721_v53, %v2722_v50  ;;  %v2731_v61 = vrot.slane %v6308_v57, 4  ;;  %v2725_v5 = vsel %vm1453_vm6, %v2722_v50, %v2724_v54  ;;  %v2732_v60 = vrot.slane %v6310_v6, 4 }
  0xc9   : > { %v2728_v9 = vsel %vm1453_vm6, %v2726_v28, %v2727_v45  ;;  %v2730_v35 = vsel %vm1453_vm6, %v2727_v45, %v2729_v29  ;;  %v2734_v51 = vrot.slane %v6318_v0, 4  ;;  %v2736_v10 = vrot.slane %v6320_v12, 4  ;;  %v2072_v0 = vld [vmem:[#allocation2 + $0x80] sm:$0xff] }
  0xca   : > { %v2737_v19 = vrot.slane %v6326_v26, 4  ;;  %v2739_v8 = vrot.slane %v6328_v22, 4  ;;  %v2733_v11 = vsel %vm1453_vm6, %v2731_v61, %v2732_v60  ;;  %v2856_v25 = vmax.f32 %v2676_v31, %v2718_v46  ;;  %v832_v61 = vld [vmem:[#allocation2 + $0x150] sm:$0xff] }
  0xcb   : > { %v2857_v57 = vmax.f32 %v2677_v32, %v2720_v47  ;;  %v2858_v13 = vmax.f32 %v2678_v37, %v2723_v48  ;;  %v2735_v20 = vsel %vm1453_vm6, %v2732_v60, %v2734_v51  ;;  %v2859_v6 = vmax.f32 %v2679_v39, %v2725_v5  ;;  %v833_v51 = vld [vmem:[#allocation2 + $0x158] sm:$0xff] }
  0xcc   : > { %v2738_v52 = vsel %vm1453_vm6, %v2736_v10, %v2737_v19  ;;  %v2740_v7 = vsel %vm1453_vm6, %v2737_v19, %v2739_v8  ;;  %v6466_v63 = vmax.f32 %v2680_v44, %v2728_v9  ;;  %v6468_v12 = vmax.f32 %v2681_v3, %v2730_v35  ;;  %v834_v10 = vld [vmem:[#allocation2 + $0x160] sm:$0xf] }
  0xcd   : > { %v6470_v26 = vmax.f32 %v2682_v49, %v2733_v11  ;;  %v6472_v22 = vmax.f32 %v2683_v24, %v2735_v20  ;;  %v6474_v1 = vmax.f32 %v2684_v2, %v2738_v52  ;;  %v6476_v14 = vmax.f32 %v2685_v55, %v2740_v7 }
  0xce   : > { %v2896_v23 = vmax.f32 %v2856_v25, %v2858_v13  ;;  %v2897_v21 = vmax.f32 %v2857_v57, %v2859_v6  ;;  %v2898_v17 = vmax.f32 %v2858_v13, %v6466_v63  ;;  %v2899_v27 = vmax.f32 %v2859_v6, %v6468_v12 }
  0xcf   : > { %v2201_v18 = vrot.slane %v2071_v58, 1  ;;  %v2202_v31 = vrot.slane %v2072_v0, 1  ;;  %v2204_v36 = vrot.slane %v2073_v59, 1  ;;  %v2381_v37 = vrot.slane %v2071_v58, 2 }
  0xd0   : > { %v2928_v32 = vmax.f32 %v2896_v23, %v6466_v63  ;;  %v2929_v33 = vmax.f32 %v2897_v21, %v6468_v12  ;;  %v2930_v39 = vmax.f32 %v2898_v17, %v6470_v26  ;;  %v2931_v40 = vmax.f32 %v2899_v27, %v6472_v22 }
  0xd1   : > { %v2203_v44 = vsel %vm910_vm3, %v2201_v18, %v2202_v31  ;;  %v2382_v3 = vrot.slane %v2072_v0, 2  ;;  %v2205_v2 = vsel %vm910_vm3, %v2202_v31, %v2204_v36  ;;  %v2384_v43 = vrot.slane %v2073_v59, 2 }
  0xd2   : > { %v2960_v49 = vmax.f32 %v2928_v32, %v6470_v26  ;;  %v2961_v24 = vmax.f32 %v2929_v33, %v6472_v22  ;;  %v2326_v55 = vmax.f32 %v2071_v58, %v2203_v44  ;;  %v2327_v56 = vmax.f32 %v2072_v0, %v2205_v2 }
  0xd3   : > { %v2383_v42 = vsel %vm1091_vm4, %v2381_v37, %v2382_v3  ;;  %v2561_v53 = vrot.slane %v2071_v58, 3  ;;  %v2562_v45 = vrot.slane %v2072_v0, 3  ;;  %v2385_v29 = vsel %vm1091_vm4, %v2382_v3, %v2384_v43  ;;  %v836_v43 = vld [vmem:[#allocation2 + $0x170] sm:$0xff] }
  0xd4   : > { %v2992_v50 = vmax.f32 %v2960_v49, %v6474_v1  ;;  %v2993_v54 = vmax.f32 %v2961_v24, %v6476_v14  ;;  %v2506_v28 = vmax.f32 %v2326_v55, %v2383_v42  ;;  %v2564_v46 = vrot.slane %v2073_v59, 3  ;;  %v835_v24 = vld [vmem:[#allocation2 + $0x168] sm:$0xff] }
  0xd5   : > { %v2741_v47 = vrot.slane %v2071_v58, 4  ;;  %v2742_v48 = vrot.slane %v2072_v0, 4  ;;  %v2507_v9 = vmax.f32 %v2327_v56, %v2385_v29  ;;  %v2563_v35 = vsel %vm1272_vm5, %v2561_v53, %v2562_v45 }
  0xd6   : > { %v3024_v5 = vpack.c.bf16 %v2993_v54, %v2992_v50  ;;  %3286 = vst.msk [vmem:[#allocation2 + $0x32] sm:$0xff] %vm273_vm1, %v2992_v50  ;;  %3287 = vst.msk [vmem:[#allocation2 + $0x3a] sm:$0xff] %vm273_vm1, %v2993_v54  ;;  %v2744_v60 = vrot.slane %v2073_v59, 4  ;;  %v2565_v19 = vsel %vm1272_vm5, %v2562_v45, %v2564_v46  ;;  %v2686_v8 = vmax.f32 %v2506_v28, %v2563_v35  ;;  %v837_v45 = vld [vmem:[#allocation2 + $0x178] sm:$0xf] }
  0xd7   : > { %v2743_v11 = vsel %vm1453_vm6, %v2741_v47, %v2742_v48  ;;  %v2962_v25 = vmax.f32 %v2930_v39, %v6474_v1  ;;  %v2687_v57 = vmax.f32 %v2507_v9, %v2565_v19  ;;  %v2963_v20 = vmax.f32 %v2931_v40, %v6476_v14 }
  0xd8   : > { %5301 = vmatprep.mubr.msk.bf16.mxu0 %vm273_vm1, %v3024_v5  ;;  %v2745_v13 = vsel %vm1453_vm6, %v2742_v48, %v2744_v60  ;;  %v981_v52 = vrot.slane %v832_v61, 1  ;;  %v6501_v7 = vmax.f32 %v2686_v8, %v2743_v11  ;;  %v982_v6 = vrot.slane %v833_v51, 1 }
  0xd9   : > { %v984_v58 = vrot.slane %v834_v10, 1  ;;  %v1162_v0 = vrot.slane %v832_v61, 2  ;;  %v6503_v59 = vmax.f32 %v2687_v57, %v2745_v13  ;;  %v1163_v23 = vrot.slane %v833_v51, 2 }
  0xda   : > { %v1165_v21 = vrot.slane %v834_v10, 2  ;;  %v1343_v17 = vrot.slane %v832_v61, 3  ;;  %v2994_v27 = vmax.f32 %v2962_v25, %v6501_v7  ;;  %v983_v18 = vsel %vm910_vm3, %v981_v52, %v982_v6 }
  0xdb   : > { %v985_v31 = vsel %vm910_vm3, %v982_v6, %v984_v58  ;;  %v1344_v32 = vrot.slane %v833_v51, 3  ;;  %v2995_v33 = vmax.f32 %v2963_v20, %v6503_v59  ;;  %v1079_v36 = vmax.f32 %v832_v61, %v983_v18 }
  0xdc   : > { %v1080_v37 = vmax.f32 %v833_v51, %v985_v31  ;;  %v1164_v39 = vsel %vm1091_vm4, %v1162_v0, %v1163_v23  ;;  %3288 = vst.msk [vmem:[#allocation2 + $0x4a] sm:$0xff] %vm273_vm1, %v2994_v27  ;;  %v1166_v40 = vsel %vm1091_vm4, %v1163_v23, %v1165_v21  ;;  %v1346_v3 = vrot.slane %v834_v10, 3 }
  0xdd   : > { %v1345_v44 = vsel %vm1272_vm5, %v1343_v17, %v1344_v32  ;;  %v1524_v49 = vrot.slane %v832_v61, 4  ;;  %v3025_v2 = vpack.c.bf16 %v2995_v33, %v2994_v27  ;;  %3289 = vst.msk [vmem:[#allocation2 + $0x52] sm:$0xff] %vm273_vm1, %v2995_v33  ;;  %v1260_v55 = vmax.f32 %v1079_v36, %v1164_v39  ;;  %v2074_v36 = vld [vmem:[#allocation2 + $0x90] sm:$0xff] }
  0xde   : > { %v1261_v56 = vmax.f32 %v1080_v37, %v1166_v40  ;;  %v1525_v42 = vrot.slane %v833_v51, 4  ;;  %v1347_v53 = vsel %vm1272_vm5, %v1344_v32, %v1346_v3  ;;  %v1527_v50 = vrot.slane %v834_v10, 4  ;;  %v2075_v37 = vld [vmem:[#allocation2 + $0x98] sm:$0xff] }
  0xdf   : > { %v1654_v54 = vmax.f32 %v6199_v62, %v6225_v38  ;;  %v1655_v28 = vmax.f32 %v6201_v4, %v6227_v41  ;;  %5302 = vmatmul.mubr.msk.bf16.vlgmr.msra.gmra.mxu0 %vm273_vm1, %v3025_v2  ;;  %v1441_v29 = vmax.f32 %v1260_v55, %v1345_v44  ;;  %v986_v48 = vrot.slane %v835_v24, 1 }
  0xe0   : > { %v1442_v46 = vmax.f32 %v1261_v56, %v1347_v53  ;;  %v1526_v47 = vsel %vm1453_vm6, %v1524_v49, %v1525_v42  ;;  %v1528_v61 = vsel %vm1453_vm6, %v1525_v42, %v1527_v50  ;;  %v987_v35 = vrot.slane %v836_v43, 1  ;;  %v2076_v49 = vld [vmem:[#allocation2 + $0xa0] sm:$0xf] }
  0xe1   : > { %v1686_v5 = vmax.f32 %v1654_v54, %v6257_v16  ;;  %v1687_v9 = vmax.f32 %v1655_v28, %v6259_v15  ;;  %v6524_v60 = vmax.f32 %v1441_v29, %v1526_v47  ;;  %v989_v4 = vrot.slane %v837_v45, 1 }
  0xe2   : > { %v6526_v62 = vmax.f32 %v1442_v46, %v1528_v61  ;;  %v1167_v51 = vrot.slane %v835_v24, 2  ;;  %v988_v8 = vsel %vm910_vm3, %v986_v48, %v987_v35  ;;  %v1168_v11 = vrot.slane %v836_v43, 2 }
  0xe3   : > { %v1718_v10 = vmax.f32 %v1686_v5, %v6297_v30  ;;  %v1719_v19 = vmax.f32 %v1687_v9, %v6299_v34  ;;  %v990_v25 = vsel %vm910_vm3, %v987_v35, %v989_v4  ;;  %v1081_v57 = vmax.f32 %v835_v24, %v988_v8 }
  0xe4   : > { %v1170_v13 = vrot.slane %v837_v45, 2  ;;  %v1348_v20 = vrot.slane %v835_v24, 3  ;;  %v1082_v58 = vmax.f32 %v836_v43, %v990_v25  ;;  %v1169_v0 = vsel %vm1091_vm4, %v1167_v51, %v1168_v11 }
  0xe5   : > { %v1750_v52 = vmax.f32 %v1718_v10, %v6524_v60  ;;  %v1751_v6 = vmax.f32 %v1719_v19, %v6526_v62  ;;  %v1262_v21 = vmax.f32 %v1081_v57, %v1169_v0  ;;  %v1349_v17 = vrot.slane %v836_v43, 3 }
  0xe6   : > { %v1171_v23 = vsel %vm1091_vm4, %v1168_v11, %v1170_v13  ;;  %v1351_v27 = vrot.slane %v837_v45, 3  ;;  %v1529_v32 = vrot.slane %v835_v24, 4  ;;  %v1530_v33 = vrot.slane %v836_v43, 4 }
  0xe7   : > { %v1772_v18 = vpack.c.bf16 %v1751_v6, %v1750_v52  ;;  %2044 = vst.msk [vmem:[#allocation2 + $0x122] sm:$0xff] %vm273_vm1, %v1750_v52  ;;  %2045 = vst.msk [vmem:[#allocation2 + $0x12a] sm:$0xff] %vm273_vm1, %v1751_v6  ;;  %v1263_v31 = vmax.f32 %v1082_v58, %v1171_v23  ;;  %v1350_v39 = vsel %vm1272_vm5, %v1348_v20, %v1349_v17  ;;  %v1532_v44 = vrot.slane %v837_v45, 4  ;;  %v2077_v6 = vld [vmem:[#allocation2 + $0xa8] sm:$0xff] }
  0xe8   : > { %v1352_v40 = vsel %vm1272_vm5, %v1349_v17, %v1351_v27  ;;  %v1656_v3 = vmax.f32 %v6225_v38, %v6257_v16  ;;  %v1443_v2 = vmax.f32 %v1262_v21, %v1350_v39  ;;  %v1531_v56 = vsel %vm1453_vm6, %v1529_v32, %v1530_v33  ;;  %v2078_v17 = vld [vmem:[#allocation2 + $0xb0] sm:$0xff]  ;;  %v2079_v27 = vld [vmem:[#allocation2 + $0xb8] sm:$0xf] }
  0xe9   : > { %5287 = vmatprep.mubr.msk.bf16.mxu1 %vm273_vm1, %v1772_v18  ;;  %v1444_v55 = vmax.f32 %v1263_v31, %v1352_v40  ;;  %v1657_v24 = vmax.f32 %v6227_v41, %v6259_v15  ;;  %v1533_v42 = vsel %vm1453_vm6, %v1530_v33, %v1532_v44  ;;  %v2206_v53 = vrot.slane %v2074_v36, 1 }
  0xea   : > { %v1688_v43 = vmax.f32 %v1656_v3, %v6297_v30  ;;  %v2207_v50 = vrot.slane %v2075_v37, 1  ;;  %v6548_v54 = vmax.f32 %v1443_v2, %v1531_v56  ;;  %v2209_v45 = vrot.slane %v2076_v49, 1 }
  0xeb   : > { %v6550_v28 = vmax.f32 %v1444_v55, %v1533_v42  ;;  %v1689_v38 = vmax.f32 %v1657_v24, %v6299_v34  ;;  %v2386_v47 = vrot.slane %v2074_v36, 2  ;;  %v2387_v48 = vrot.slane %v2075_v37, 2 }
  0xec   : > { %v1720_v29 = vmax.f32 %v1688_v43, %v6524_v60  ;;  %v2208_v46 = vsel %vm910_vm3, %v2206_v53, %v2207_v50  ;;  %v2210_v61 = vsel %vm910_vm3, %v2207_v50, %v2209_v45  ;;  %v2389_v9 = vrot.slane %v2076_v49, 2 }
  0xed   : > { %v1721_v41 = vmax.f32 %v1689_v38, %v6526_v62  ;;  %v2328_v5 = vmax.f32 %v2074_v36, %v2208_v46  ;;  %v2329_v4 = vmax.f32 %v2075_v37, %v2210_v61  ;;  %v2388_v51 = vsel %vm1091_vm4, %v2386_v47, %v2387_v48 }
  0xee   : > { %v1752_v35 = vmax.f32 %v1720_v29, %v6548_v54  ;;  %v2566_v10 = vrot.slane %v2074_v36, 3  ;;  %v2390_v8 = vsel %vm1091_vm4, %v2387_v48, %v2389_v9  ;;  %v2567_v25 = vrot.slane %v2075_v37, 3 }
  0xef   : > { %v1753_v19 = vmax.f32 %v1721_v41, %v6550_v28  ;;  %v2508_v11 = vmax.f32 %v2328_v5, %v2388_v51  ;;  %v2509_v57 = vmax.f32 %v2329_v4, %v2390_v8  ;;  %v2569_v13 = vrot.slane %v2076_v49, 3  ;;  %v838_v4 = vld [vmem:[#allocation2 + $0x180] sm:$0xff] }
  0xf0   : > { %2046 = vst.msk [vmem:[#allocation2 + $0x13a] sm:$0xff] %vm273_vm1, %v1752_v35  ;;  %v2746_v20 = vrot.slane %v2074_v36, 4  ;;  %v2747_v52 = vrot.slane %v2075_v37, 4  ;;  %v2568_v0 = vsel %vm1272_vm5, %v2566_v10, %v2567_v25  ;;  %v2749_v23 = vrot.slane %v2076_v49, 4 }
  0xf1   : > { %v1773_v58 = vpack.c.bf16 %v1753_v19, %v1752_v35  ;;  %2047 = vst.msk [vmem:[#allocation2 + $0x142] sm:$0xff] %vm273_vm1, %v1753_v19  ;;  %v2900_v21 = vmax.f32 %v6466_v63, %v6470_v26  ;;  %v2570_v18 = vsel %vm1272_vm5, %v2567_v25, %v2569_v13  ;;  %v2688_v31 = vmax.f32 %v2508_v11, %v2568_v0  ;;  %v839_v11 = vld [vmem:[#allocation2 + $0x188] sm:$0xff] }
  0xf2   : > { %v2748_v32 = vsel %vm1453_vm6, %v2746_v20, %v2747_v52  ;;  %v2901_v33 = vmax.f32 %v6468_v12, %v6472_v22  ;;  %v2689_v36 = vmax.f32 %v2509_v57, %v2570_v18  ;;  %v2750_v37 = vsel %vm1453_vm6, %v2747_v52, %v2749_v23  ;;  %v840_v52 = vld [vmem:[#allocation2 + $0x190] sm:$0xf] }
  0xf3   : > { %5288 = vmatmul.mubr.msk.bf16.gmra.mxu1 %vm273_vm1, %v1773_v58  ;;  %v2932_v39 = vmax.f32 %v2900_v21, %v6474_v1  ;;  %v2211_v40 = vrot.slane %v2077_v6, 1  ;;  %v6573_v44 = vmax.f32 %v2688_v31, %v2748_v32  ;;  %v2212_v3 = vrot.slane %v2078_v17, 1 }
  0xf4   : > { %v2933_v63 = vmax.f32 %v2901_v33, %v6476_v14  ;;  %v2214_v49 = vrot.slane %v2079_v27, 1  ;;  %v6576_v2 = vmax.f32 %v2689_v36, %v2750_v37  ;;  %v2391_v56 = vrot.slane %v2077_v6, 2 }
  0xf5   : > { %v2964_v55 = vmax.f32 %v2932_v39, %v6501_v7  ;;  %v2392_v12 = vrot.slane %v2078_v17, 2  ;;  %v2213_v42 = vsel %vm910_vm3, %v2211_v40, %v2212_v3  ;;  %v2394_v53 = vrot.slane %v2079_v27, 2 }
  0xf6   : > { %v2965_v24 = vmax.f32 %v2933_v63, %v6503_v59  ;;  %v2215_v43 = vsel %vm910_vm3, %v2212_v3, %v2214_v49  ;;  %v2330_v38 = vmax.f32 %v2077_v6, %v2213_v42  ;;  %v2571_v48 = vrot.slane %v2077_v6, 3 }
  0xf7   : > { %v2996_v50 = vmax.f32 %v2964_v55, %v6573_v44  ;;  %v2331_v45 = vmax.f32 %v2078_v17, %v2215_v43  ;;  %v2393_v29 = vsel %vm1091_vm4, %v2391_v56, %v2392_v12  ;;  %v2395_v47 = vsel %vm1091_vm4, %v2392_v12, %v2394_v53 }
  0xf8   : > { %v2997_v46 = vmax.f32 %v2965_v24, %v6576_v2  ;;  %v2572_v41 = vrot.slane %v2078_v17, 3  ;;  %v2510_v61 = vmax.f32 %v2330_v38, %v2393_v29  ;;  %v2574_v9 = vrot.slane %v2079_v27, 3 }
  0xf9   : > { %3290 = vst.msk [vmem:[#allocation2 + $0x62] sm:$0xff] %vm273_vm1, %v2996_v50  ;;  %v2511_v5 = vmax.f32 %v2331_v45, %v2395_v47  ;;  %v2751_v35 = vrot.slane %v2077_v6, 4  ;;  %v2752_v19 = vrot.slane %v2078_v17, 4  ;;  %v2754_v8 = vrot.slane %v2079_v27, 4  ;;  %v841_v47 = vld [vmem:[#allocation2 + $0x198] sm:$0xff] }
  0xfa   : > { %v3026_v51 = vpack.c.bf16 %v2997_v46, %v2996_v50  ;;  %3291 = vst.msk [vmem:[#allocation2 + $0x6a] sm:$0xff] %vm273_vm1, %v2997_v46  ;;  %v2573_v10 = vsel %vm1272_vm5, %v2571_v48, %v2572_v41  ;;  %v2575_v25 = vsel %vm1272_vm5, %v2572_v41, %v2574_v9  ;;  %v2902_v13 = vmax.f32 %v6470_v26, %v6474_v1  ;;  %v842_v48 = vld [vmem:[#allocation2 + $0x1a0] sm:$0xff] }
  0xfb   : > { %v2690_v57 = vmax.f32 %v2510_v61, %v2573_v10  ;;  %v2903_v20 = vmax.f32 %v6472_v22, %v6476_v14  ;;  %v2691_v6 = vmax.f32 %v2511_v5, %v2575_v25  ;;  %v2753_v58 = vsel %vm1453_vm6, %v2751_v35, %v2752_v19  ;;  %v843_v35 = vld [vmem:[#allocation2 + $0x1a8] sm:$0xf] }
  0xfc   : > { %5305 = vmatprep.mubr.msk.bf16.mxu0 %vm273_vm1, %v3026_v51  ;;  %v2755_v0 = vsel %vm1453_vm6, %v2752_v19, %v2754_v8  ;;  %v991_v23 = vrot.slane %v838_v4, 1  ;;  %v2934_v17 = vmax.f32 %v2902_v13, %v6501_v7  ;;  %v992_v18 = vrot.slane %v839_v11, 1 }
  0xfd   : > { %v6597_v21 = vmax.f32 %v2690_v57, %v2753_v58  ;;  %v2935_v27 = vmax.f32 %v2903_v20, %v6503_v59  ;;  %v6601_v26 = vmax.f32 %v2691_v6, %v2755_v0  ;;  %v994_v31 = vrot.slane %v840_v52, 1 }
  0xfe   : > { %v1172_v22 = vrot.slane %v838_v4, 2  ;;  %v1173_v32 = vrot.slane %v839_v11, 2  ;;  %v2966_v33 = vmax.f32 %v2934_v17, %v6573_v44  ;;  %v993_v37 = vsel %vm910_vm3, %v991_v23, %v992_v18 }
  0xff   : > { %v2967_v36 = vmax.f32 %v2935_v27, %v6576_v2  ;;  %v1175_v39 = vrot.slane %v840_v52, 2  ;;  %v995_v40 = vsel %vm910_vm3, %v992_v18, %v994_v31  ;;  %v1083_v63 = vmax.f32 %v838_v4, %v993_v37 }
 0x100   : > { %v1174_v3 = vsel %vm1091_vm4, %v1172_v22, %v1173_v32  ;;  %v1353_v49 = vrot.slane %v838_v4, 3  ;;  %v2998_v55 = vmax.f32 %v2966_v33, %v6597_v21  ;;  %v1084_v12 = vmax.f32 %v839_v11, %v995_v40 }
 0x101   : > { %v2999_v56 = vmax.f32 %v2967_v36, %v6601_v26  ;;  %v1176_v24 = vsel %vm1091_vm4, %v1173_v32, %v1175_v39  ;;  %v1264_v42 = vmax.f32 %v1083_v63, %v1174_v3  ;;  %v1354_v43 = vrot.slane %v839_v11, 3 }
 0x102   : > { %v1356_v53 = vrot.slane %v840_v52, 3  ;;  %v1534_v50 = vrot.slane %v838_v4, 4  ;;  %3292 = vst.msk [vmem:[#allocation2 + $0x7a] sm:$0xff] %vm273_vm1, %v2998_v55  ;;  %v1265_v45 = vmax.f32 %v1084_v12, %v1176_v24  ;;  %v1535_v29 = vrot.slane %v839_v11, 4  ;;  %v2081_v12 = vld [vmem:[#allocation2 + $0xc8] sm:$0xff] }
 0x103   : > { %v3027_v38 = vpack.c.bf16 %v2999_v56, %v2998_v55  ;;  %3293 = vst.msk [vmem:[#allocation2 + $0x82] sm:$0xff] %vm273_vm1, %v2999_v56  ;;  %v1537_v46 = vrot.slane %v840_v52, 4  ;;  %v1355_v41 = vsel %vm1272_vm5, %v1353_v49, %v1354_v43  ;;  %v1658_v5 = vmax.f32 %v6257_v16, %v6297_v30  ;;  %v2080_v56 = vld [vmem:[#allocation2 + $0xc0] sm:$0xff] }
 0x104   : > { %v1357_v61 = vsel %vm1272_vm5, %v1354_v43, %v1356_v53  ;;  %v1659_v9 = vmax.f32 %v6259_v15, %v6299_v34  ;;  %v1445_v4 = vmax.f32 %v1264_v42, %v1355_v41  ;;  %v1536_v10 = vsel %vm1453_vm6, %v1534_v50, %v1535_v29  ;;  %v2082_v50 = vld [vmem:[#allocation2 + $0xd0] sm:$0xf] }
 0x105   : > { %5306 = vmatmul.mubr.msk.bf16.gmra.mxu0 %vm273_vm1, %v3027_v38  ;;  %v1446_v51 = vmax.f32 %v1265_v45, %v1357_v61  ;;  %v1538_v19 = vsel %vm1453_vm6, %v1535_v29, %v1537_v46  ;;  %v1690_v8 = vmax.f32 %v1658_v5, %v6524_v60  ;;  %v996_v25 = vrot.slane %v841_v47, 1 }
 0x106   : > { %v1691_v11 = vmax.f32 %v1659_v9, %v6526_v62  ;;  %v997_v57 = vrot.slane %v842_v48, 1  ;;  %v6624_v13 = vmax.f32 %v1445_v4, %v1536_v10  ;;  %v999_v15 = vrot.slane %v843_v35, 1 }
 0x107   : > { %v6626_v16 = vmax.f32 %v1446_v51, %v1538_v19  ;;  %v1177_v20 = vrot.slane %v841_v47, 2  ;;  %v1722_v52 = vmax.f32 %v1690_v8, %v6548_v54  ;;  %v1178_v0 = vrot.slane %v842_v48, 2 }
 0x108   : > { %v1723_v6 = vmax.f32 %v1691_v11, %v6550_v28  ;;  %v998_v58 = vsel %vm910_vm3, %v996_v25, %v997_v57  ;;  %v1000_v23 = vsel %vm910_vm3, %v997_v57, %v999_v15  ;;  %v1180_v27 = vrot.slane %v843_v35, 2 }
 0x109   : > { %v1085_v17 = vmax.f32 %v841_v47, %v998_v58  ;;  %v1358_v18 = vrot.slane %v841_v47, 3  ;;  %v1754_v31 = vmax.f32 %v1722_v52, %v6624_v13  ;;  %v1086_v32 = vmax.f32 %v842_v48, %v1000_v23 }
 0x10a   : > { %v1755_v22 = vmax.f32 %v1723_v6, %v6626_v16  ;;  %v1179_v33 = vsel %vm1091_vm4, %v1177_v20, %v1178_v0  ;;  %v1181_v36 = vsel %vm1091_vm4, %v1178_v0, %v1180_v27  ;;  %v1359_v39 = vrot.slane %v842_v48, 3 }
 0x10b   : > { %v1266_v37 = vmax.f32 %v1085_v17, %v1179_v33  ;;  %v1361_v40 = vrot.slane %v843_v35, 3  ;;  %2048 = vst.msk [vmem:[#allocation2 + $0x152] sm:$0xff] %vm273_vm1, %v1754_v31  ;;  %v1267_v3 = vmax.f32 %v1086_v32, %v1181_v36  ;;  %v1539_v49 = vrot.slane %v841_v47, 4 }
 0x10c   : > { %v1774_v63 = vpack.c.bf16 %v1755_v22, %v1754_v31  ;;  %2049 = vst.msk [vmem:[#allocation2 + $0x15a] sm:$0xff] %vm273_vm1, %v1755_v22  ;;  %v1540_v55 = vrot.slane %v842_v48, 4  ;;  %v1360_v24 = vsel %vm1272_vm5, %v1358_v18, %v1359_v39  ;;  %v1542_v43 = vrot.slane %v843_v35, 4  ;;  %v2083_v22 = vld [vmem:[#allocation2 + $0xd8] sm:$0xff] }
 0x10d   : > { %v1362_v42 = vsel %vm1272_vm5, %v1359_v39, %v1361_v40  ;;  %v1660_v53 = vmax.f32 %v6297_v30, %v6524_v60  ;;  %v1447_v38 = vmax.f32 %v1266_v37, %v1360_v24  ;;  %v1661_v46 = vmax.f32 %v6299_v34, %v6526_v62  ;;  %v2084_v39 = vld [vmem:[#allocation2 + $0xe0] sm:$0xff]  ;;  %v2085_v40 = vld [vmem:[#allocation2 + $0xe8] sm:$0xf] }
 0x10e   : > { %5291 = vmatprep.mubr.msk.bf16.mxu1 %vm273_vm1, %v1774_v63  ;;  %v1448_v45 = vmax.f32 %v1267_v3, %v1362_v42  ;;  %v1541_v29 = vsel %vm1453_vm6, %v1539_v49, %v1540_v55  ;;  %v1543_v47 = vsel %vm1453_vm6, %v1540_v55, %v1542_v43  ;;  %v2216_v41 = vrot.slane %v2080_v56, 1 }
 0x10f   : > { %v1692_v48 = vmax.f32 %v1660_v53, %v6548_v54  ;;  %v2217_v61 = vrot.slane %v2081_v12, 1  ;;  %v6648_v5 = vmax.f32 %v1447_v38, %v1541_v29  ;;  %v1693_v30 = vmax.f32 %v1661_v46, %v6550_v28 }
 0x110   : > { %v6650_v9 = vmax.f32 %v1448_v45, %v1543_v47  ;;  %v2219_v35 = vrot.slane %v2082_v50, 1  ;;  %v2396_v10 = vrot.slane %v2080_v56, 2  ;;  %v2397_v19 = vrot.slane %v2081_v12, 2 }
 0x111   : > { %v1724_v4 = vmax.f32 %v1692_v48, %v6624_v13  ;;  %v2218_v51 = vsel %vm910_vm3, %v2216_v41, %v2217_v61  ;;  %v1725_v34 = vmax.f32 %v1693_v30, %v6626_v16  ;;  %v2399_v25 = vrot.slane %v2082_v50, 2 }
 0x112   : > { %v2220_v8 = vsel %vm910_vm3, %v2217_v61, %v2219_v35  ;;  %v2332_v11 = vmax.f32 %v2080_v56, %v2218_v51  ;;  %v2398_v20 = vsel %vm1091_vm4, %v2396_v10, %v2397_v19  ;;  %v2576_v52 = vrot.slane %v2080_v56, 3 }
 0x113   : > { %v1756_v57 = vmax.f32 %v1724_v4, %v6648_v5  ;;  %v2333_v15 = vmax.f32 %v2081_v12, %v2220_v8  ;;  %v1757_v6 = vmax.f32 %v1725_v34, %v6650_v9  ;;  %v2400_v58 = vsel %vm1091_vm4, %v2397_v19, %v2399_v25 }
 0x114   : > { %v2512_v0 = vmax.f32 %v2332_v11, %v2398_v20  ;;  %v2577_v23 = vrot.slane %v2081_v12, 3  ;;  %v2579_v27 = vrot.slane %v2082_v50, 3  ;;  %v2756_v18 = vrot.slane %v2080_v56, 4 }
 0x115   : > { %2050 = vst.msk [vmem:[#allocation2 + $0x16a] sm:$0xff] %vm273_vm1, %v1756_v57  ;;  %v2513_v17 = vmax.f32 %v2333_v15, %v2400_v58  ;;  %v2757_v31 = vrot.slane %v2081_v12, 4  ;;  %v1775_v32 = vpack.c.bf16 %v1757_v6, %v1756_v57  ;;  %2051 = vst.msk [vmem:[#allocation2 + $0x172] sm:$0xff] %vm273_vm1, %v1757_v6  ;;  %v2759_v36 = vrot.slane %v2082_v50, 4  ;;  %v844_v15 = vld [vmem:[#allocation2 + $0x1b0] sm:$0xff] }
 0x116   : > { %v2578_v33 = vsel %vm1272_vm5, %v2576_v52, %v2577_v23  ;;  %v2904_v37 = vmax.f32 %v6474_v1, %v6501_v7  ;;  %v2580_v63 = vsel %vm1272_vm5, %v2577_v23, %v2579_v27  ;;  %v2905_v55 = vmax.f32 %v6476_v14, %v6503_v59 }
 0x117   : > { %v2692_v3 = vmax.f32 %v2512_v0, %v2578_v33  ;;  %v2758_v49 = vsel %vm1453_vm6, %v2756_v18, %v2757_v31  ;;  %5292 = vmatmul.mubr.msk.bf16.gmra.mxu1 %vm273_vm1, %v1775_v32  ;;  %v2693_v56 = vmax.f32 %v2513_v17, %v2580_v63  ;;  %v2760_v12 = vsel %vm1453_vm6, %v2757_v31, %v2759_v36  ;;  %v845_v0 = vld [vmem:[#allocation2 + $0x1b8] sm:$0xff]  ;;  %v846_v31 = vld [vmem:[#allocation2 + $0x1c0] sm:$0xf] }
 0x118   : > { %v2936_v24 = vmax.f32 %v2904_v37, %v6573_v44  ;;  %v2221_v42 = vrot.slane %v2083_v22, 1  ;;  %v2937_v1 = vmax.f32 %v2905_v55, %v6576_v2  ;;  %v2222_v53 = vrot.slane %v2084_v39, 1 }
 0x119   : > { %v6673_v43 = vmax.f32 %v2692_v3, %v2758_v49  ;;  %v2224_v50 = vrot.slane %v2085_v40, 1  ;;  %v6676_v38 = vmax.f32 %v2693_v56, %v2760_v12  ;;  %v2401_v29 = vrot.slane %v2083_v22, 2 }
 0x11a   : > { %v2968_v45 = vmax.f32 %v2936_v24, %v6597_v21  ;;  %v2402_v14 = vrot.slane %v2084_v39, 2  ;;  %v2969_v46 = vmax.f32 %v2937_v1, %v6601_v26  ;;  %v2223_v47 = vsel %vm910_vm3, %v2221_v42, %v2222_v53 }
 0x11b   : > { %v2225_v48 = vsel %vm910_vm3, %v2222_v53, %v2224_v50  ;;  %v2404_v41 = vrot.slane %v2085_v40, 2  ;;  %v2334_v30 = vmax.f32 %v2083_v22, %v2223_v47  ;;  %v2581_v19 = vrot.slane %v2083_v22, 3 }
 0x11c   : > { %v3000_v61 = vmax.f32 %v2968_v45, %v6673_v43  ;;  %v2335_v35 = vmax.f32 %v2084_v39, %v2225_v48  ;;  %v2403_v4 = vsel %vm1091_vm4, %v2401_v29, %v2402_v14  ;;  %v3001_v51 = vmax.f32 %v2969_v46, %v6676_v38 }
 0x11d   : > { %v2405_v10 = vsel %vm1091_vm4, %v2402_v14, %v2404_v41  ;;  %v2582_v34 = vrot.slane %v2084_v39, 3  ;;  %v2514_v8 = vmax.f32 %v2334_v30, %v2403_v4  ;;  %v2584_v25 = vrot.slane %v2085_v40, 3 }
 0x11e   : > { %3294 = vst.msk [vmem:[#allocation2 + $0x92] sm:$0xff] %vm273_vm1, %v3000_v61  ;;  %v2515_v11 = vmax.f32 %v2335_v35, %v2405_v10  ;;  %v2761_v57 = vrot.slane %v2083_v22, 4  ;;  %v3028_v20 = vpack.c.bf16 %v3001_v51, %v3000_v61  ;;  %3295 = vst.msk [vmem:[#allocation2 + $0x9a] sm:$0xff] %vm273_vm1, %v3001_v51  ;;  %v2762_v6 = vrot.slane %v2084_v39, 4  ;;  %v847_v10 = vld [vmem:[#allocation2 + $0x1c8] sm:$0xff] }
 0x11f   : > { %v2583_v52 = vsel %vm1272_vm5, %v2581_v19, %v2582_v34  ;;  %v2764_v58 = vrot.slane %v2085_v40, 4  ;;  %v2585_v23 = vsel %vm1272_vm5, %v2582_v34, %v2584_v25  ;;  %v2906_v27 = vmax.f32 %v6501_v7, %v6573_v44  ;;  %v848_v19 = vld [vmem:[#allocation2 + $0x1d0] sm:$0xff] }
 0x120   : > { %v2694_v17 = vmax.f32 %v2514_v8, %v2583_v52  ;;  %v2907_v18 = vmax.f32 %v6503_v59, %v6576_v2  ;;  %5309 = vmatprep.mubr.msk.bf16.mxu0 %vm273_vm1, %v3028_v20  ;;  %v2695_v22 = vmax.f32 %v2515_v11, %v2585_v23  ;;  %v2763_v32 = vsel %vm1453_vm6, %v2761_v57, %v2762_v6  ;;  %v849_v57 = vld [vmem:[#allocation2 + $0x1d8] sm:$0xf] }
 0x121   : > { %v2765_v33 = vsel %vm1453_vm6, %v2762_v6, %v2764_v58  ;;  %v1001_v36 = vrot.slane %v844_v15, 1  ;;  %v2938_v39 = vmax.f32 %v2906_v27, %v6597_v21  ;;  %v1002_v63 = vrot.slane %v845_v0, 1 }
 0x122   : > { %v6697_v37 = vmax.f32 %v2694_v17, %v2763_v32  ;;  %v2939_v40 = vmax.f32 %v2907_v18, %v6601_v26  ;;  %v6701_v7 = vmax.f32 %v2695_v22, %v2765_v33  ;;  %v1004_v3 = vrot.slane %v846_v31, 1 }
 0x123   : > { %v1182_v59 = vrot.slane %v844_v15, 2  ;;  %v1183_v49 = vrot.slane %v845_v0, 2  ;;  %v2970_v55 = vmax.f32 %v2938_v39, %v6673_v43  ;;  %v1003_v12 = vsel %vm910_vm3, %v1001_v36, %v1002_v63 }
 0x124   : > { %v2971_v56 = vmax.f32 %v2939_v40, %v6676_v38  ;;  %v1185_v24 = vrot.slane %v846_v31, 2  ;;  %v1005_v42 = vsel %vm910_vm3, %v1002_v63, %v1004_v3  ;;  %v1087_v1 = vmax.f32 %v844_v15, %v1003_v12 }
 0x125   : > { %v1184_v53 = vsel %vm1091_vm4, %v1182_v59, %v1183_v49  ;;  %v1363_v50 = vrot.slane %v844_v15, 3  ;;  %v3002_v45 = vmax.f32 %v2970_v55, %v6697_v37  ;;  %v1088_v14 = vmax.f32 %v845_v0, %v1005_v42 }
 0x126   : > { %v3003_v29 = vmax.f32 %v2971_v56, %v6701_v7  ;;  %v1186_v46 = vsel %vm1091_vm4, %v1183_v49, %v1185_v24  ;;  %v1268_v47 = vmax.f32 %v1087_v1, %v1184_v53  ;;  %v1364_v48 = vrot.slane %v845_v0, 3 }
 0x127   : > { %v1366_v41 = vrot.slane %v846_v31, 3  ;;  %v1544_v61 = vrot.slane %v844_v15, 4  ;;  %3296 = vst.msk [vmem:[#allocation2 + $0xaa] sm:$0xff] %vm273_vm1, %v3002_v45  ;;  %v1269_v35 = vmax.f32 %v1088_v14, %v1186_v46  ;;  %v1545_v4 = vrot.slane %v845_v0, 4  ;;  %v2087_v14 = vld [vmem:[#allocation2 + $0xf8] sm:$0xff] }
 0x128   : > { %v3029_v30 = vpack.c.bf16 %v3003_v29, %v3002_v45  ;;  %3297 = vst.msk [vmem:[#allocation2 + $0xb2] sm:$0xff] %vm273_vm1, %v3003_v29  ;;  %v1547_v51 = vrot.slane %v846_v31, 4  ;;  %v1365_v34 = vsel %vm1272_vm5, %v1363_v50, %v1364_v48  ;;  %v1662_v11 = vmax.f32 %v6524_v60, %v6548_v54  ;;  %v2086_v29 = vld [vmem:[#allocation2 + $0xf0] sm:$0xff] }
 0x129   : > { %v1367_v8 = vsel %vm1272_vm5, %v1364_v48, %v1366_v41  ;;  %v1663_v25 = vmax.f32 %v6526_v62, %v6550_v28  ;;  %v1449_v15 = vmax.f32 %v1268_v47, %v1365_v34  ;;  %v1546_v52 = vsel %vm1453_vm6, %v1544_v61, %v1545_v4  ;;  %v2088_v61 = vld [vmem:[#allocation2 + $0x100] sm:$0xf] }
 0x12a   : > { %5310 = vmatmul.mubr.msk.bf16.gmra.mxu0 %vm273_vm1, %v3029_v30  ;;  %v1450_v20 = vmax.f32 %v1269_v35, %v1367_v8  ;;  %v1548_v6 = vsel %vm1453_vm6, %v1545_v4, %v1547_v51  ;;  %v1694_v58 = vmax.f32 %v1662_v11, %v6624_v13  ;;  %v1006_v23 = vrot.slane %v847_v10, 1 }
 0x12b   : > { %v1695_v0 = vmax.f32 %v1663_v25, %v6626_v16  ;;  %v1007_v17 = vrot.slane %v848_v19, 1  ;;  %v1630_v27 = vmax.f32 %v1449_v15, %v1546_v52  ;;  %v1009_v18 = vrot.slane %v849_v57, 1 }
 0x12c   : > { %v1631_v60 = vmax.f32 %v1450_v20, %v1548_v6  ;;  %v1187_v31 = vrot.slane %v847_v10, 2  ;;  %v1726_v62 = vmax.f32 %v1694_v58, %v6648_v5  ;;  %v1188_v33 = vrot.slane %v848_v19, 2 }
 0x12d   : > { %v1727_v22 = vmax.f32 %v1695_v0, %v6650_v9  ;;  %v1008_v32 = vsel %vm910_vm3, %v1006_v23, %v1007_v17  ;;  %v1010_v36 = vsel %vm910_vm3, %v1007_v17, %v1009_v18  ;;  %v1190_v40 = vrot.slane %v849_v57, 2 }
 0x12e   : > { %v1089_v39 = vmax.f32 %v847_v10, %v1008_v32  ;;  %v1368_v63 = vrot.slane %v847_v10, 3  ;;  %v1758_v3 = vmax.f32 %v1726_v62, %v1630_v27  ;;  %v1090_v49 = vmax.f32 %v848_v19, %v1010_v36 }
 0x12f   : > { %v1759_v59 = vmax.f32 %v1727_v22, %v1631_v60  ;;  %v1189_v55 = vsel %vm1091_vm4, %v1187_v31, %v1188_v33  ;;  %v1191_v56 = vsel %vm1091_vm4, %v1188_v33, %v1190_v40  ;;  %v1369_v24 = vrot.slane %v848_v19, 3  ;;  %v2089_v33 = vld [vmem:[#allocation2 + $0x108] sm:$0xff] }
 0x130   : > { %v1270_v12 = vmax.f32 %v1089_v39, %v1189_v55  ;;  %v1371_v42 = vrot.slane %v849_v57, 3  ;;  %2052 = vst.msk [vmem:[#allocation2 + $0x182] sm:$0xff] %vm273_vm1, %v1758_v3  ;;  %v1271_v53 = vmax.f32 %v1090_v49, %v1191_v56  ;;  %v1549_v50 = vrot.slane %v847_v10, 4 }
 0x131   : > { %v1776_v1 = vpack.c.bf16 %v1759_v59, %v1758_v3  ;;  %2053 = vst.msk [vmem:[#allocation2 + $0x18a] sm:$0xff] %vm273_vm1, %v1759_v59  ;;  %v1550_v45 = vrot.slane %v848_v19, 4  ;;  %v1370_v46 = vsel %vm1272_vm5, %v1368_v63, %v1369_v24  ;;  %v1552_v48 = vrot.slane %v849_v57, 4  ;;  %v2090_v3 = vld [vmem:[#allocation2 + $0x110] sm:$0xff]  ;;  %v2091_v59 = vld [vmem:[#allocation2 + $0x118] sm:$0xf] }
 0x132   : > { %v1372_v47 = vsel %vm1272_vm5, %v1369_v24, %v1371_v42  ;;  %v1664_v41 = vmax.f32 %v6548_v54, %v6624_v13  ;;  %v1451_v30 = vmax.f32 %v1270_v12, %v1370_v46  ;;  %v1665_v51 = vmax.f32 %v6550_v28, %v6626_v16 }
 0x133   : > { %5295 = vmatprep.mubr.msk.bf16.mxu1 %vm273_vm1, %v1776_v1  ;;  %v1452_v35 = vmax.f32 %v1271_v53, %v1372_v47  ;;  %v1551_v4 = vsel %vm1453_vm6, %v1549_v50, %v1550_v45  ;;  %v1553_v10 = vsel %vm1453_vm6, %v1550_v45, %v1552_v48  ;;  %v2226_v34 = vrot.slane %v2086_v29, 1 }
 0x134   : > { %v1696_v19 = vmax.f32 %v1664_v41, %v6648_v5  ;;  %v2227_v8 = vrot.slane %v2087_v14, 1  ;;  %v1632_v11 = vmax.f32 %v1451_v30, %v1551_v4  ;;  %v1697_v54 = vmax.f32 %v1665_v51, %v6650_v9 }
 0x135   : > { %v1633_v25 = vmax.f32 %v1452_v35, %v1553_v10  ;;  %v2229_v13 = vrot.slane %v2088_v61, 1  ;;  %v2406_v20 = vrot.slane %v2086_v29, 2  ;;  %v2407_v52 = vrot.slane %v2087_v14, 2 }
 0x136   : > { %v1728_v57 = vmax.f32 %v1696_v19, %v1630_v27  ;;  %v2228_v15 = vsel %vm910_vm3, %v2226_v34, %v2227_v8  ;;  %v1729_v6 = vmax.f32 %v1697_v54, %v1631_v60  ;;  %v2409_v16 = vrot.slane %v2088_v61, 2 }
 0x137   : > { %v2230_v58 = vsel %vm910_vm3, %v2227_v8, %v2229_v13  ;;  %v2336_v28 = vmax.f32 %v2086_v29, %v2228_v15  ;;  %v2408_v5 = vsel %vm1091_vm4, %v2406_v20, %v2407_v52  ;;  %v2586_v17 = vrot.slane %v2086_v29, 3  ;;  %v6773_v15 = vld [vmem:[#allocation2] sm:$0xff] }
 0x138   : > { %v1760_v0 = vmax.f32 %v1728_v57, %v1632_v11  ;;  %v2337_v23 = vmax.f32 %v2087_v14, %v2230_v58  ;;  %v1761_v18 = vmax.f32 %v1729_v6, %v1633_v25  ;;  %v2410_v31 = vsel %vm1091_vm4, %v2407_v52, %v2409_v16 }
 0x139   : > { %v2516_v9 = vmax.f32 %v2336_v28, %v2408_v5  ;;  %v2587_v62 = vrot.slane %v2087_v14, 3  ;;  %v2589_v22 = vrot.slane %v2088_v61, 3  ;;  %v2766_v32 = vrot.slane %v2086_v29, 4  ;;  %v6777_v28 = vld [vmem:[#allocation2 + $0x8] sm:$0xff] }
 0x13a   : > { %2054 = vst.msk [vmem:[#allocation2 + $0x19a] sm:$0xff] %vm273_vm1, %v1760_v0  ;;  %v2517_v27 = vmax.f32 %v2337_v23, %v2410_v31  ;;  %v2767_v60 = vrot.slane %v2087_v14, 4  ;;  %v1777_v36 = vpack.c.bf16 %v1761_v18, %v1760_v0  ;;  %2055 = vst.msk [vmem:[#allocation2 + $0x1a2] sm:$0xff] %vm273_vm1, %v1761_v18  ;;  %v2769_v40 = vrot.slane %v2088_v61, 4  ;;  %v6786_v18 = vld [vmem:[#allocation2 + $0x18] sm:$0xff]  ;;  %v6788_v31 = vld [vmem:[#allocation2 + $0x20] sm:$0xff] }
 0x13b   : > { %v2588_v39 = vsel %vm1272_vm5, %v2586_v17, %v2587_v62  ;;  %v2908_v63 = vmax.f32 %v6573_v44, %v6597_v21  ;;  %v2590_v49 = vsel %vm1272_vm5, %v2587_v62, %v2589_v22  ;;  %v2909_v12 = vmax.f32 %v6576_v2, %v6601_v26  ;;  %v6784_v17 = vld [vmem:[#allocation2 + $0x10] sm:$0xf]  ;;  %v6793_v22 = vld [vmem:[#allocation2 + $0x28] sm:$0xf] }
 0x13c   : > { %v2696_v55 = vmax.f32 %v2516_v9, %v2588_v39  ;;  %v2768_v56 = vsel %vm1453_vm6, %v2766_v32, %v2767_v60  ;;  %5296 = vmatmul.mubr.msk.bf16.gmra.mxu1 %vm273_vm1, %v1777_v36  ;;  %v2697_v24 = vmax.f32 %v2517_v27, %v2590_v49  ;;  %v2770_v42 = vsel %vm1453_vm6, %v2767_v60, %v2769_v40  ;;  %v6802_v36 = vld [vmem:[#allocation2 + $0x38] sm:$0xff] }
 0x13d   : > { %v2940_v1 = vmax.f32 %v2908_v63, %v6673_v43  ;;  %v2231_v53 = vrot.slane %v2089_v33, 1  ;;  %v2941_v44 = vmax.f32 %v2909_v12, %v6676_v38  ;;  %v2232_v45 = vrot.slane %v2090_v3, 1  ;;  %v6807_v63 = vld [vmem:[#allocation2 + $0x40] sm:$0xf]  ;;  %v6814_v12 = vld [vmem:[#allocation2 + $0x48] sm:$0xff] }
 0x13e   : > { %v6759_v50 = vmax.f32 %v2696_v55, %v2768_v56  ;;  %v2234_v29 = vrot.slane %v2091_v59, 1  ;;  %v6762_v14 = vmax.f32 %v2697_v24, %v2770_v42  ;;  %v2411_v47 = vrot.slane %v2089_v33, 2  ;;  %v6816_v24 = vld [vmem:[#allocation2 + $0x50] sm:$0xff]  ;;  %v6818_v42 = vld [vmem:[#allocation2 + $0x58] sm:$0xf] }
 0x13f   : > { %v2972_v46 = vmax.f32 %v2940_v1, %v6697_v37  ;;  %v2412_v2 = vrot.slane %v2090_v3, 2  ;;  %v2973_v48 = vmax.f32 %v2941_v44, %v6701_v7  ;;  %v2233_v41 = vsel %vm910_vm3, %v2231_v53, %v2232_v45  ;;  %v6822_v44 = vld [vmem:[#allocation2 + $0x60] sm:$0xff] }
 0x140   : > { %v2235_v61 = vsel %vm910_vm3, %v2232_v45, %v2234_v29  ;;  %v2414_v30 = vrot.slane %v2091_v59, 2  ;;  %v2338_v4 = vmax.f32 %v2089_v33, %v2233_v41  ;;  %v2591_v8 = vrot.slane %v2089_v33, 3  ;;  %v6824_v45 = vld [vmem:[#allocation2 + $0x68] sm:$0xff] }
 0x141   : > { %v3004_v35 = vmax.f32 %v2972_v46, %v6759_v50  ;;  %v2339_v51 = vmax.f32 %v2090_v3, %v2235_v61  ;;  %v2413_v10 = vsel %vm1091_vm4, %v2411_v47, %v2412_v2  ;;  %v3005_v19 = vmax.f32 %v2973_v48, %v6762_v14  ;;  %v6832_v61 = vld [vmem:[#allocation2 + $0x70] sm:$0xf] }
 0x142   : > { %v2415_v34 = vsel %vm1091_vm4, %v2412_v2, %v2414_v30  ;;  %v2592_v11 = vrot.slane %v2090_v3, 3  ;;  %v2518_v25 = vmax.f32 %v2338_v4, %v2413_v10  ;;  %v2594_v13 = vrot.slane %v2091_v59, 3 }
 0x143   : > { %3298 = vst.msk [vmem:[#allocation2 + $0xc2] sm:$0xff] %vm273_vm1, %v3004_v35  ;;  %v2519_v54 = vmax.f32 %v2339_v51, %v2415_v34  ;;  %v2771_v57 = vrot.slane %v2089_v33, 4  ;;  %v3030_v20 = vpack.c.bf16 %v3005_v19, %v3004_v35  ;;  %3299 = vst.msk [vmem:[#allocation2 + $0xca] sm:$0xff] %vm273_vm1, %v3005_v19  ;;  %v2772_v6 = vrot.slane %v2090_v3, 4  ;;  %v6800_v33 = vld [vmem:[#allocation2 + $0x30] sm:$0xff] }
 0x144   : > { %v2593_v52 = vsel %vm1272_vm5, %v2591_v8, %v2592_v11  ;;  %v2774_v58 = vrot.slane %v2091_v59, 4  ;;  %v2595_v16 = vsel %vm1272_vm5, %v2592_v11, %v2594_v13  ;;  %v2910_v23 = vmax.f32 %v6597_v21, %v6673_v43 }
 0x145   : > { %v2698_v0 = vmax.f32 %v2518_v25, %v2593_v52  ;;  %v2911_v5 = vmax.f32 %v6601_v26, %v6676_v38  ;;  %5313 = vmatprep.mubr.msk.bf16.mxu0 %vm273_vm1, %v3030_v20  ;;  %v2699_v9 = vmax.f32 %v2519_v54, %v2595_v16  ;;  %v2773_v62 = vsel %vm1453_vm6, %v2771_v57, %v2772_v6 }
 0x146   : > { %v2775_v27 = vsel %vm1453_vm6, %v2772_v6, %v2774_v58  ;;  %v3438_v21 = vrot.slane %v6773_v15, 1  ;;  %v2942_v26 = vmax.f32 %v2910_v23, %v6697_v37  ;;  %v3439_v39 = vrot.slane %v6777_v28, 1 }
 0x147   : > { %v6796_v32 = vmax.f32 %v2698_v0, %v2773_v62  ;;  %v2943_v60 = vmax.f32 %v2911_v5, %v6701_v7  ;;  %v6805_v40 = vmax.f32 %v2699_v9, %v2775_v27  ;;  %v3441_v3 = vrot.slane %v6784_v17, 1 }
 0x148   : > { %v3443_v59 = vrot.slane %v6786_v18, 1  ;;  %v3444_v49 = vrot.slane %v6788_v31, 1  ;;  %v2974_v55 = vmax.f32 %v2942_v26, %v6759_v50  ;;  %v3440_v1 = vsel %vm910_vm3, %v3438_v21, %v3439_v39 }
 0x149   : > { %v2975_v56 = vmax.f32 %v2943_v60, %v6762_v14  ;;  %v3446_v53 = vrot.slane %v6793_v22, 1  ;;  %v3442_v29 = vsel %vm910_vm3, %v3439_v39, %v3441_v3  ;;  %v3448_v47 = vrot.slane %v6800_v33, 1 }
 0x14a   : > { %v3445_v46 = vsel %vm910_vm3, %v3443_v59, %v3444_v49  ;;  %v3449_v2 = vrot.slane %v6802_v36, 1  ;;  %v3006_v48 = vmax.f32 %v2974_v55, %v6796_v32  ;;  %v3451_v35 = vrot.slane %v6807_v63, 1 }
 0x14b   : > { %v3007_v41 = vmax.f32 %v2975_v56, %v6805_v40  ;;  %v3447_v30 = vsel %vm910_vm3, %v3444_v49, %v3446_v53  ;;  %v3453_v51 = vrot.slane %v6814_v12, 1  ;;  %v3454_v10 = vrot.slane %v6816_v24, 1 }
 0x14c   : > { %v3450_v4 = vsel %vm910_vm3, %v3448_v47, %v3449_v2  ;;  %v3456_v19 = vrot.slane %v6818_v42, 1  ;;  %3300 = vst.msk [vmem:[#allocation2 + $0xda] sm:$0xff] %vm273_vm1, %v3006_v48  ;;  %v3452_v8 = vsel %vm910_vm3, %v3449_v2, %v3451_v35  ;;  %v3458_v11 = vrot.slane %v6822_v44, 1 }
 0x14d   : > { %v3031_v34 = vpack.c.bf16 %v3007_v41, %v3006_v48  ;;  %3301 = vst.msk [vmem:[#allocation2 + $0xe2] sm:$0xff] %vm273_vm1, %v3007_v41  ;;  %v3459_v25 = vrot.slane %v6824_v45, 1  ;;  %v3455_v54 = vsel %vm910_vm3, %v3453_v51, %v3454_v10  ;;  %v3461_v57 = vrot.slane %v6832_v61, 1 }
 0x14e   : > { %v3457_v13 = vsel %vm910_vm3, %v3454_v10, %v3456_v19  ;;  %v3578_v20 = vmax.f32 %v6773_v15, %v3440_v1  ;;  %v3579_v6 = vmax.f32 %v6777_v28, %v3442_v29  ;;  %v3580_v58 = vmax.f32 %v6786_v18, %v3445_v46 }
 0x14f   : > { %5314 = vmatmul.mubr.msk.bf16.gmra.mxu0 %vm273_vm1, %v3031_v34  ;;  %v3460_v52 = vsel %vm910_vm3, %v3458_v11, %v3459_v25  ;;  %v3581_v16 = vmax.f32 %v6788_v31, %v3447_v30  ;;  %v3462_v0 = vsel %vm910_vm3, %v3459_v25, %v3461_v57  ;;  %v3582_v23 = vmax.f32 %v6800_v33, %v3450_v4 }
 0x150   : > { %v3583_v5 = vmax.f32 %v6802_v36, %v3452_v8  ;;  %v3584_v9 = vmax.f32 %v6814_v12, %v3455_v54  ;;  %v3585_v62 = vmax.f32 %v6816_v24, %v3457_v13  ;;  %v3586_v27 = vmax.f32 %v6822_v44, %v3460_v52 }
 0x151   : > { %v3587_v21 = vmax.f32 %v6824_v45, %v3462_v0  ;;  %v3618_v26 = vrot.slane %v6773_v15, 2  ;;  %v3619_v60 = vrot.slane %v6777_v28, 2  ;;  %v3621_v39 = vrot.slane %v6784_v17, 2 }
 0x152   : > { %v3623_v3 = vrot.slane %v6786_v18, 2  ;;  %v3624_v59 = vrot.slane %v6788_v31, 2  ;;  %v3626_v49 = vrot.slane %v6793_v22, 2  ;;  %v3628_v55 = vrot.slane %v6800_v33, 2 }
 0x153   : > { %v3629_v56 = vrot.slane %v6802_v36, 2  ;;  %v3631_v1 = vrot.slane %v6807_v63, 2  ;;  %v3620_v53 = vsel %vm1091_vm4, %v3618_v26, %v3619_v60  ;;  %v3622_v29 = vsel %vm1091_vm4, %v3619_v60, %v3621_v39 }
 0x154   : > { %v3625_v46 = vsel %vm1091_vm4, %v3623_v3, %v3624_v59  ;;  %v3633_v47 = vrot.slane %v6814_v12, 2  ;;  %v3627_v2 = vsel %vm1091_vm4, %v3624_v59, %v3626_v49  ;;  %v3634_v30 = vrot.slane %v6816_v24, 2 }
 0x155   : > { %v3630_v48 = vsel %vm1091_vm4, %v3628_v55, %v3629_v56  ;;  %v3632_v41 = vsel %vm1091_vm4, %v3629_v56, %v3631_v1  ;;  %v3636_v35 = vrot.slane %v6818_v42, 2  ;;  %v3638_v4 = vrot.slane %v6822_v44, 2 }
 0x156   : > { %v3639_v51 = vrot.slane %v6824_v45, 2  ;;  %v3641_v10 = vrot.slane %v6832_v61, 2  ;;  %v3635_v19 = vsel %vm1091_vm4, %v3633_v47, %v3634_v30  ;;  %v6883_v34 = vmax.f32 %v3578_v20, %v3620_v53 }
 0x157   : > { %v6885_v8 = vmax.f32 %v3579_v6, %v3622_v29  ;;  %v6887_v11 = vmax.f32 %v3580_v58, %v3625_v46  ;;  %v3637_v25 = vsel %vm1091_vm4, %v3634_v30, %v3636_v35  ;;  %v6892_v57 = vmax.f32 %v3581_v16, %v3627_v2 }
 0x158   : > { %v3640_v54 = vsel %vm1091_vm4, %v3638_v4, %v3639_v51  ;;  %v3642_v13 = vsel %vm1091_vm4, %v3639_v51, %v3641_v10  ;;  %v6894_v52 = vmax.f32 %v3582_v23, %v3630_v48  ;;  %v6896_v0 = vmax.f32 %v3583_v5, %v3632_v41 }
 0x159   : > { %v6898_v26 = vmax.f32 %v3584_v9, %v3635_v19  ;;  %v6900_v20 = vmax.f32 %v3585_v62, %v3637_v25  ;;  %v6902_v6 = vmax.f32 %v3586_v27, %v3640_v54  ;;  %v6904_v58 = vmax.f32 %v3587_v21, %v3642_v13 }
 0x15a   : > { %v3798_v60 = vrot.slane %v6773_v15, 3  ;;  %v3799_v39 = vrot.slane %v6777_v28, 3  ;;  %v3801_v3 = vrot.slane %v6784_v17, 3  ;;  %v3803_v16 = vrot.slane %v6786_v18, 3 }
 0x15b   : > { %v3804_v23 = vrot.slane %v6788_v31, 3  ;;  %v3806_v5 = vrot.slane %v6793_v22, 3  ;;  %v3808_v62 = vrot.slane %v6800_v33, 3  ;;  %v3809_v27 = vrot.slane %v6802_v36, 3 }
 0x15c   : > { %v3800_v9 = vsel %vm1272_vm5, %v3798_v60, %v3799_v39  ;;  %v3811_v21 = vrot.slane %v6807_v63, 3  ;;  %v3802_v59 = vsel %vm1272_vm5, %v3799_v39, %v3801_v3  ;;  %v3813_v56 = vrot.slane %v6814_v12, 3 }
 0x15d   : > { %v3805_v49 = vsel %vm1272_vm5, %v3803_v16, %v3804_v23  ;;  %v3807_v55 = vsel %vm1272_vm5, %v3804_v23, %v3806_v5  ;;  %v3810_v1 = vsel %vm1272_vm5, %v3808_v62, %v3809_v27  ;;  %v3814_v29 = vrot.slane %v6816_v24, 3 }
 0x15e   : > { %v3812_v53 = vsel %vm1272_vm5, %v3809_v27, %v3811_v21  ;;  %v3816_v46 = vrot.slane %v6818_v42, 3  ;;  %v3818_v47 = vrot.slane %v6822_v44, 3  ;;  %v3819_v2 = vrot.slane %v6824_v45, 3 }
 0x15f   : > { %v3821_v48 = vrot.slane %v6832_v61, 3  ;;  %v3938_v41 = vmax.f32 %v6883_v34, %v3800_v9  ;;  %v3815_v30 = vsel %vm1272_vm5, %v3813_v56, %v3814_v29  ;;  %v3939_v4 = vmax.f32 %v6885_v8, %v3802_v59  ;;  %v3334_v56 = vld [vmem:[#allocation2 + $0x80] sm:$0xff] }
 0x160   : > { %v3817_v35 = vsel %vm1272_vm5, %v3814_v29, %v3816_v46  ;;  %v3940_v51 = vmax.f32 %v6887_v11, %v3805_v49  ;;  %v3820_v10 = vsel %vm1272_vm5, %v3818_v47, %v3819_v2  ;;  %v3941_v25 = vmax.f32 %v6892_v57, %v3807_v55 }
 0x161   : > { %v3822_v19 = vsel %vm1272_vm5, %v3819_v2, %v3821_v48  ;;  %v3942_v54 = vmax.f32 %v6894_v52, %v3810_v1  ;;  %v3943_v13 = vmax.f32 %v6896_v0, %v3812_v53  ;;  %v3944_v34 = vmax.f32 %v6898_v26, %v3815_v30  ;;  %v3335_v1 = vld [vmem:[#allocation2 + $0x88] sm:$0xf] }
 0x162   : > { %v3945_v60 = vmax.f32 %v6900_v20, %v3817_v35  ;;  %v3946_v39 = vmax.f32 %v6902_v6, %v3820_v10  ;;  %v3947_v8 = vmax.f32 %v6904_v58, %v3822_v19  ;;  %v3978_v11 = vrot.slane %v6773_v15, 4 }
 0x163   : > { %v3979_v3 = vrot.slane %v6777_v28, 4  ;;  %v3981_v16 = vrot.slane %v6784_v17, 4  ;;  %v3983_v57 = vrot.slane %v6786_v18, 4  ;;  %v3984_v52 = vrot.slane %v6788_v31, 4 }
 0x164   : > { %v3986_v0 = vrot.slane %v6793_v22, 4  ;;  %v3988_v26 = vrot.slane %v6800_v33, 4  ;;  %v3989_v58 = vrot.slane %v6802_v36, 4  ;;  %v3991_v15 = vrot.slane %v6807_v63, 4 }
 0x165   : > { %v3980_v20 = vsel %vm1453_vm6, %v3978_v11, %v3979_v3  ;;  %v3982_v6 = vsel %vm1453_vm6, %v3979_v3, %v3981_v16  ;;  %v3985_v28 = vsel %vm1453_vm6, %v3983_v57, %v3984_v52  ;;  %v3993_v18 = vrot.slane %v6814_v12, 4 }
 0x166   : > { %v3987_v17 = vsel %vm1453_vm6, %v3984_v52, %v3986_v0  ;;  %v3994_v31 = vrot.slane %v6816_v24, 4  ;;  %v3990_v22 = vsel %vm1453_vm6, %v3988_v26, %v3989_v58  ;;  %v3992_v33 = vsel %vm1453_vm6, %v3989_v58, %v3991_v15  ;;  %v2092_v15 = vld [vmem:[#allocation2 + $0x120] sm:$0xff] }
 0x167   : > { %v3996_v23 = vrot.slane %v6818_v42, 4  ;;  %v3998_v5 = vrot.slane %v6822_v44, 4  ;;  %v3999_v63 = vrot.slane %v6824_v45, 4  ;;  %v4001_v9 = vrot.slane %v6832_v61, 4  ;;  %v3333_v44 = vld [vmem:[#allocation2 + $0x78] sm:$0xff] }
 0x168   : > { %v3995_v36 = vsel %vm1453_vm6, %v3993_v18, %v3994_v31  ;;  %v4118_v62 = vmax.f32 %v3938_v41, %v3980_v20  ;;  %v4119_v12 = vmax.f32 %v3939_v4, %v3982_v6  ;;  %v4120_v21 = vmax.f32 %v3940_v51, %v3985_v28 }
 0x169   : > { %v3997_v27 = vsel %vm1453_vm6, %v3994_v31, %v3996_v23  ;;  %v4121_v24 = vmax.f32 %v3941_v25, %v3987_v17  ;;  %v4000_v59 = vsel %vm1453_vm6, %v3998_v5, %v3999_v63  ;;  %v4002_v49 = vsel %vm1453_vm6, %v3999_v63, %v4001_v9  ;;  %v2094_v63 = vld [vmem:[#allocation2 + $0x130] sm:$0xf] }
 0x16a   : > { %v6966_v55 = vmax.f32 %v3942_v54, %v3990_v22  ;;  %v6968_v42 = vmax.f32 %v3943_v13, %v3992_v33  ;;  %v6970_v45 = vmax.f32 %v3944_v34, %v3995_v36  ;;  %v6972_v61 = vmax.f32 %v3945_v60, %v3997_v27  ;;  %v2093_v22 = vld [vmem:[#allocation2 + $0x128] sm:$0xff] }
 0x16b   : > { %v6974_v53 = vmax.f32 %v3946_v39, %v4000_v59  ;;  %v6976_v29 = vmax.f32 %v3947_v8, %v4002_v49  ;;  %v4158_v46 = vmax.f32 %v4118_v62, %v4120_v21  ;;  %v4159_v47 = vmax.f32 %v4119_v12, %v4121_v24 }
 0x16c   : > { %v4160_v2 = vmax.f32 %v4120_v21, %v6966_v55  ;;  %v4161_v48 = vmax.f32 %v4121_v24, %v6968_v42  ;;  %v3463_v41 = vrot.slane %v3333_v44, 1  ;;  %v3464_v30 = vrot.slane %v3334_v56, 1 }
 0x16d   : > { %v3466_v35 = vrot.slane %v3335_v1, 1  ;;  %v3643_v4 = vrot.slane %v3333_v44, 2  ;;  %v4190_v51 = vmax.f32 %v4158_v46, %v6966_v55  ;;  %v4191_v10 = vmax.f32 %v4159_v47, %v6968_v42 }
 0x16e   : > { %v4192_v19 = vmax.f32 %v4160_v2, %v6970_v45  ;;  %v4193_v25 = vmax.f32 %v4161_v48, %v6972_v61  ;;  %v3465_v54 = vsel %vm910_vm3, %v3463_v41, %v3464_v30  ;;  %v3644_v34 = vrot.slane %v3334_v56, 2 }
 0x16f   : > { %v3467_v13 = vsel %vm910_vm3, %v3464_v30, %v3466_v35  ;;  %v3646_v60 = vrot.slane %v3335_v1, 2  ;;  %v4222_v39 = vmax.f32 %v4190_v51, %v6970_v45  ;;  %v4223_v8 = vmax.f32 %v4191_v10, %v6972_v61 }
 0x170   : > { %v3588_v11 = vmax.f32 %v3333_v44, %v3465_v54  ;;  %v3589_v3 = vmax.f32 %v3334_v56, %v3467_v13  ;;  %v3645_v16 = vsel %vm1091_vm4, %v3643_v4, %v3644_v34  ;;  %v3823_v52 = vrot.slane %v3333_v44, 3 }
 0x171   : > { %v3647_v57 = vsel %vm1091_vm4, %v3644_v34, %v3646_v60  ;;  %v3824_v0 = vrot.slane %v3334_v56, 3  ;;  %v4254_v26 = vmax.f32 %v4222_v39, %v6974_v53  ;;  %v4255_v20 = vmax.f32 %v4223_v8, %v6976_v29  ;;  %v2095_v8 = vld [vmem:[#allocation2 + $0x138] sm:$0xff] }
 0x172   : > { %v3768_v6 = vmax.f32 %v3588_v11, %v3645_v16  ;;  %v3769_v58 = vmax.f32 %v3589_v3, %v3647_v57  ;;  %v3826_v17 = vrot.slane %v3335_v1, 3  ;;  %v4003_v18 = vrot.slane %v3333_v44, 4  ;;  %v2096_v11 = vld [vmem:[#allocation2 + $0x140] sm:$0xff] }
 0x173   : > { %v3825_v28 = vsel %vm1272_vm5, %v3823_v52, %v3824_v0  ;;  %v4004_v31 = vrot.slane %v3334_v56, 4  ;;  %v4286_v33 = vpack.c.bf16 %v4255_v20, %v4254_v26  ;;  %v4006_v5 = vrot.slane %v3335_v1, 4 }
 0x174   : > { %v3948_v23 = vmax.f32 %v3768_v6, %v3825_v28  ;;  %v4224_v36 = vmax.f32 %v4192_v19, %v6974_v53  ;;  %v3827_v9 = vsel %vm1272_vm5, %v3824_v0, %v3826_v17  ;;  %v4225_v27 = vmax.f32 %v4193_v25, %v6976_v29  ;;  %v2097_v0 = vld [vmem:[#allocation2 + $0x148] sm:$0xf] }
 0x175   : > { %v4005_v62 = vsel %vm1453_vm6, %v4003_v18, %v4004_v31  ;;  %v2236_v12 = vrot.slane %v2092_v15, 1  ;;  %5335 = vmatprep.mubr.msk.bf16.mxu1 %vm273_vm1, %v4286_v33  ;;  %v3949_v21 = vmax.f32 %v3769_v58, %v3827_v9  ;;  %v4007_v24 = vsel %vm1453_vm6, %v4004_v31, %v4006_v5 }
 0x176   : > { %v6999_v59 = vmax.f32 %v3948_v23, %v4005_v62  ;;  %v2237_v49 = vrot.slane %v2093_v22, 1  ;;  %v2239_v44 = vrot.slane %v2094_v63, 1  ;;  %v2416_v56 = vrot.slane %v2092_v15, 2 }
 0x177   : > { %v2417_v1 = vrot.slane %v2093_v22, 2  ;;  %v2419_v46 = vrot.slane %v2094_v63, 2  ;;  %v7001_v47 = vmax.f32 %v3949_v21, %v4007_v24  ;;  %v2596_v41 = vrot.slane %v2092_v15, 3 }
 0x178   : > { %v4256_v2 = vmax.f32 %v4224_v36, %v6999_v59  ;;  %v2238_v48 = vsel %vm910_vm3, %v2236_v12, %v2237_v49  ;;  %v2240_v30 = vsel %vm910_vm3, %v2237_v49, %v2239_v44  ;;  %v2597_v25 = vrot.slane %v2093_v22, 3 }
 0x179   : > { %v2340_v35 = vmax.f32 %v2092_v15, %v2238_v48  ;;  %v2418_v4 = vsel %vm1091_vm4, %v2416_v56, %v2417_v1  ;;  %v2420_v51 = vsel %vm1091_vm4, %v2417_v1, %v2419_v46  ;;  %v4257_v10 = vmax.f32 %v4225_v27, %v7001_v47 }
 0x17a   : > { %v2341_v19 = vmax.f32 %v2093_v22, %v2240_v30  ;;  %v2599_v54 = vrot.slane %v2094_v63, 3  ;;  %v2776_v34 = vrot.slane %v2092_v15, 4  ;;  %v2777_v60 = vrot.slane %v2093_v22, 4 }
 0x17b   : > { %v2520_v13 = vmax.f32 %v2340_v35, %v2418_v4  ;;  %v2779_v39 = vrot.slane %v2094_v63, 4  ;;  %v4287_v3 = vpack.c.bf16 %v4257_v10, %v4256_v2  ;;  %v2598_v57 = vsel %vm1272_vm5, %v2596_v41, %v2597_v25 }
 0x17c   : > { %v2521_v16 = vmax.f32 %v2341_v19, %v2420_v51  ;;  %v2600_v52 = vsel %vm1272_vm5, %v2597_v25, %v2599_v54  ;;  %v2778_v20 = vsel %vm1453_vm6, %v2776_v34, %v2777_v60  ;;  %v2912_v58 = vmax.f32 %v6673_v43, %v6697_v37  ;;  %v3336_v19 = vld [vmem:[#allocation2 + $0x90] sm:$0xff]  ;;  %v3337_v25 = vld [vmem:[#allocation2 + $0x98] sm:$0xff] }
 0x17d   : > { %v2700_v26 = vmax.f32 %v2520_v13, %v2598_v57  ;;  %v2780_v6 = vsel %vm1453_vm6, %v2777_v60, %v2779_v39  ;;  %5336 = vmatmul.mubr.msk.bf16.vlgmr.msra.gmra.mxu1 %vm273_vm1, %v4287_v3  ;;  %v2913_v28 = vmax.f32 %v6676_v38, %v6701_v7  ;;  %v2241_v17 = vrot.slane %v2095_v8, 1  ;;  %v3338_v39 = vld [vmem:[#allocation2 + $0xa0] sm:$0xf] }
 0x17e   : > { %v2701_v15 = vmax.f32 %v2521_v16, %v2600_v52  ;;  %v2242_v18 = vrot.slane %v2096_v11, 1  ;;  %v2944_v22 = vmax.f32 %v2912_v58, %v6759_v50  ;;  %v2244_v33 = vrot.slane %v2097_v0, 1 }
 0x17f   : > { %v7018_v31 = vmax.f32 %v2700_v26, %v2778_v20  ;;  %v2421_v23 = vrot.slane %v2095_v8, 2  ;;  %v2945_v36 = vmax.f32 %v2913_v28, %v6762_v14  ;;  %v2422_v63 = vrot.slane %v2096_v11, 2 }
 0x180   : > { %v7021_v5 = vmax.f32 %v2701_v15, %v2780_v6  ;;  %v2243_v43 = vsel %vm910_vm3, %v2241_v17, %v2242_v18  ;;  %v2976_v9 = vmax.f32 %v2944_v22, %v6796_v32  ;;  %v2245_v62 = vsel %vm910_vm3, %v2242_v18, %v2244_v33 }
 0x181   : > { %v2342_v38 = vmax.f32 %v2095_v8, %v2243_v43  ;;  %v2424_v27 = vrot.slane %v2097_v0, 2  ;;  %v2977_v12 = vmax.f32 %v2945_v36, %v6805_v40  ;;  %v2343_v21 = vmax.f32 %v2096_v11, %v2245_v62 }
 0x182   : > { %v2423_v24 = vsel %vm1091_vm4, %v2421_v23, %v2422_v63  ;;  %v2601_v49 = vrot.slane %v2095_v8, 3  ;;  %v3008_v44 = vmax.f32 %v2976_v9, %v7018_v31  ;;  %v2602_v46 = vrot.slane %v2096_v11, 3 }
 0x183   : > { %v2425_v56 = vsel %vm1091_vm4, %v2422_v63, %v2424_v27  ;;  %v2522_v1 = vmax.f32 %v2342_v38, %v2423_v24  ;;  %v3009_v2 = vmax.f32 %v2977_v12, %v7021_v5  ;;  %v2604_v41 = vrot.slane %v2097_v0, 3 }
 0x184   : > { %v2523_v48 = vmax.f32 %v2343_v21, %v2425_v56  ;;  %v2781_v30 = vrot.slane %v2095_v8, 4  ;;  %3302 = vst.msk [vmem:[#allocation2 + $0xf2] sm:$0xff] %vm273_vm1, %v3008_v44  ;;  %v2603_v35 = vsel %vm1272_vm5, %v2601_v49, %v2602_v46  ;;  %v2782_v4 = vrot.slane %v2096_v11, 4  ;;  %v3339_v56 = vld [vmem:[#allocation2 + $0xa8] sm:$0xff] }
 0x185   : > { %v2784_v51 = vrot.slane %v2097_v0, 4  ;;  %v2914_v10 = vmax.f32 %v6697_v37, %v6759_v50  ;;  %v3032_v54 = vpack.c.bf16 %v3009_v2, %v3008_v44  ;;  %3303 = vst.msk [vmem:[#allocation2 + $0xfa] sm:$0xff] %vm273_vm1, %v3009_v2  ;;  %v2605_v13 = vsel %vm1272_vm5, %v2602_v46, %v2604_v41 }
 0x186   : > { %v2702_v34 = vmax.f32 %v2522_v1, %v2603_v35  ;;  %v2915_v60 = vmax.f32 %v6701_v7, %v6762_v14  ;;  %v2703_v8 = vmax.f32 %v2523_v48, %v2605_v13  ;;  %v2783_v3 = vsel %vm1453_vm6, %v2781_v30, %v2782_v4  ;;  %v3340_v1 = vld [vmem:[#allocation2 + $0xb0] sm:$0xff]  ;;  %v3341_v30 = vld [vmem:[#allocation2 + $0xb8] sm:$0xf] }
 0x187   : > { %v2785_v11 = vsel %vm1453_vm6, %v2782_v4, %v2784_v51  ;;  %v2946_v16 = vmax.f32 %v2914_v10, %v6796_v32  ;;  %5317 = vmatprep.mubr.msk.bf16.mxu0 %vm273_vm1, %v3032_v54  ;;  %v3468_v52 = vrot.slane %v3336_v19, 1  ;;  %v3469_v0 = vrot.slane %v3337_v25, 1 }
 0x188   : > { %v7044_v37 = vmax.f32 %v2702_v34, %v2783_v3  ;;  %v2947_v57 = vmax.f32 %v2915_v60, %v6805_v40  ;;  %v7047_v26 = vmax.f32 %v2703_v8, %v2785_v11  ;;  %v3471_v20 = vrot.slane %v3338_v39, 1 }
 0x189   : > { %v2978_v7 = vmax.f32 %v2946_v16, %v7018_v31  ;;  %v3648_v6 = vrot.slane %v3336_v19, 2  ;;  %v3470_v15 = vsel %vm910_vm3, %v3468_v52, %v3469_v0  ;;  %v3649_v28 = vrot.slane %v3337_v25, 2 }
 0x18a   : > { %v2979_v58 = vmax.f32 %v2947_v57, %v7021_v5  ;;  %v3651_v17 = vrot.slane %v3338_v39, 2  ;;  %v3472_v22 = vsel %vm910_vm3, %v3469_v0, %v3471_v20  ;;  %v3590_v33 = vmax.f32 %v3336_v19, %v3470_v15 }
 0x18b   : > { %v3010_v18 = vmax.f32 %v2978_v7, %v7044_v37  ;;  %v3828_v23 = vrot.slane %v3336_v19, 3  ;;  %v3591_v43 = vmax.f32 %v3337_v25, %v3472_v22  ;;  %v3650_v63 = vsel %vm1091_vm4, %v3648_v6, %v3649_v28 }
 0x18c   : > { %v3011_v36 = vmax.f32 %v2979_v58, %v7047_v26  ;;  %v3652_v9 = vsel %vm1091_vm4, %v3649_v28, %v3651_v17  ;;  %v3770_v62 = vmax.f32 %v3590_v33, %v3650_v63  ;;  %v3829_v38 = vrot.slane %v3337_v25, 3  ;;  %v2099_v63 = vld [vmem:[#allocation2 + $0x158] sm:$0xff] }
 0x18d   : > { %3304 = vst.msk [vmem:[#allocation2 + $0x10a] sm:$0xff] %vm273_vm1, %v3010_v18  ;;  %v3831_v27 = vrot.slane %v3338_v39, 3  ;;  %v4008_v12 = vrot.slane %v3336_v19, 4  ;;  %v3771_v24 = vmax.f32 %v3591_v43, %v3652_v9  ;;  %v4009_v49 = vrot.slane %v3337_v25, 4  ;;  %v2098_v43 = vld [vmem:[#allocation2 + $0x150] sm:$0xff] }
 0x18e   : > { %v3033_v21 = vpack.c.bf16 %v3011_v36, %v3010_v18  ;;  %3305 = vst.msk [vmem:[#allocation2 + $0x112] sm:$0xff] %vm273_vm1, %v3011_v36  ;;  %v4011_v44 = vrot.slane %v3338_v39, 4  ;;  %v3830_v46 = vsel %vm1272_vm5, %v3828_v23, %v3829_v38  ;;  %v4162_v48 = vmax.f32 %v6966_v55, %v6970_v45 }
 0x18f   : > { %v3832_v2 = vsel %vm1272_vm5, %v3829_v38, %v3831_v27  ;;  %v4163_v41 = vmax.f32 %v6968_v42, %v6972_v61  ;;  %v3950_v35 = vmax.f32 %v3770_v62, %v3830_v46  ;;  %v4010_v51 = vsel %vm1453_vm6, %v4008_v12, %v4009_v49  ;;  %v2100_v12 = vld [vmem:[#allocation2 + $0x160] sm:$0xf] }
 0x190   : > { %5318 = vmatmul.mubr.msk.bf16.gmra.mxu0 %vm273_vm1, %v3033_v21  ;;  %v3951_v4 = vmax.f32 %v3771_v24, %v3832_v2  ;;  %v4012_v10 = vsel %vm1453_vm6, %v4009_v49, %v4011_v44  ;;  %v4194_v19 = vmax.f32 %v4162_v48, %v6974_v53  ;;  %v3473_v54 = vrot.slane %v3339_v56, 1 }
 0x191   : > { %v4195_v25 = vmax.f32 %v4163_v41, %v6976_v29  ;;  %v3474_v13 = vrot.slane %v3340_v1, 1  ;;  %v7070_v34 = vmax.f32 %v3950_v35, %v4010_v51  ;;  %v3476_v42 = vrot.slane %v3341_v30, 1 }
 0x192   : > { %v7072_v55 = vmax.f32 %v3951_v4, %v4012_v10  ;;  %v3653_v60 = vrot.slane %v3339_v56, 2  ;;  %v4226_v39 = vmax.f32 %v4194_v19, %v6999_v59  ;;  %v3654_v11 = vrot.slane %v3340_v1, 2 }
 0x193   : > { %v4227_v8 = vmax.f32 %v4195_v25, %v7001_v47  ;;  %v3475_v3 = vsel %vm910_vm3, %v3473_v54, %v3474_v13  ;;  %v3477_v16 = vsel %vm910_vm3, %v3474_v13, %v3476_v42  ;;  %v3656_v52 = vrot.slane %v3341_v30, 2 }
 0x194   : > { %v3592_v57 = vmax.f32 %v3339_v56, %v3475_v3  ;;  %v3833_v0 = vrot.slane %v3339_v56, 3  ;;  %v4258_v7 = vmax.f32 %v4226_v39, %v7070_v34  ;;  %v3593_v6 = vmax.f32 %v3340_v1, %v3477_v16 }
 0x195   : > { %v4259_v20 = vmax.f32 %v4227_v8, %v7072_v55  ;;  %v3655_v58 = vsel %vm1091_vm4, %v3653_v60, %v3654_v11  ;;  %v3657_v15 = vsel %vm1091_vm4, %v3654_v11, %v3656_v52  ;;  %v3834_v17 = vrot.slane %v3340_v1, 3 }
 0x196   : > { %v3772_v28 = vmax.f32 %v3592_v57, %v3655_v58  ;;  %v3836_v18 = vrot.slane %v3341_v30, 3  ;;  %v3773_v33 = vmax.f32 %v3593_v6, %v3657_v15  ;;  %v4013_v23 = vrot.slane %v3339_v56, 4 }
 0x197   : > { %v4288_v22 = vpack.c.bf16 %v4259_v20, %v4258_v7  ;;  %v4014_v36 = vrot.slane %v3340_v1, 4  ;;  %v3835_v9 = vsel %vm1272_vm5, %v3833_v0, %v3834_v17  ;;  %v4016_v38 = vrot.slane %v3341_v30, 4  ;;  %v2101_v20 = vld [vmem:[#allocation2 + $0x168] sm:$0xff] }
 0x198   : > { %v3837_v62 = vsel %vm1272_vm5, %v3834_v17, %v3836_v18  ;;  %v4164_v27 = vmax.f32 %v6970_v45, %v6974_v53  ;;  %v3952_v21 = vmax.f32 %v3772_v28, %v3835_v9  ;;  %v4165_v44 = vmax.f32 %v6972_v61, %v6976_v29  ;;  %v2102_v17 = vld [vmem:[#allocation2 + $0x170] sm:$0xff]  ;;  %v2103_v18 = vld [vmem:[#allocation2 + $0x178] sm:$0xf] }
 0x199   : > { %5339 = vmatprep.mubr.msk.bf16.mxu1 %vm273_vm1, %v4288_v22  ;;  %v3953_v24 = vmax.f32 %v3773_v33, %v3837_v62  ;;  %v4015_v49 = vsel %vm1453_vm6, %v4013_v23, %v4014_v36  ;;  %v4017_v56 = vsel %vm1453_vm6, %v4014_v36, %v4016_v38  ;;  %v2246_v46 = vrot.slane %v2098_v43, 1 }
 0x19a   : > { %v4196_v1 = vmax.f32 %v4164_v27, %v6999_v59  ;;  %v2247_v2 = vrot.slane %v2099_v63, 1  ;;  %v7092_v48 = vmax.f32 %v3952_v21, %v4015_v49  ;;  %v4197_v45 = vmax.f32 %v4165_v44, %v7001_v47 }
 0x19b   : > { %v7094_v41 = vmax.f32 %v3953_v24, %v4017_v56  ;;  %v2249_v30 = vrot.slane %v2100_v12, 1  ;;  %v2426_v51 = vrot.slane %v2098_v43, 2  ;;  %v2427_v10 = vrot.slane %v2099_v63, 2 }
 0x19c   : > { %v4228_v35 = vmax.f32 %v4196_v1, %v7070_v34  ;;  %v2248_v4 = vsel %vm910_vm3, %v2246_v46, %v2247_v2  ;;  %v4229_v61 = vmax.f32 %v4197_v45, %v7072_v55  ;;  %v2429_v54 = vrot.slane %v2100_v12, 2 }
 0x19d   : > { %v2250_v19 = vsel %vm910_vm3, %v2247_v2, %v2249_v30  ;;  %v2344_v25 = vmax.f32 %v2098_v43, %v2248_v4  ;;  %v2428_v60 = vsel %vm1091_vm4, %v2426_v51, %v2427_v10  ;;  %v2606_v39 = vrot.slane %v2098_v43, 3 }
 0x19e   : > { %v4260_v13 = vmax.f32 %v4228_v35, %v7092_v48  ;;  %v2345_v42 = vmax.f32 %v2099_v63, %v2250_v19  ;;  %v4261_v8 = vmax.f32 %v4229_v61, %v7094_v41  ;;  %v2430_v3 = vsel %vm1091_vm4, %v2427_v10, %v2429_v54 }
 0x19f   : > { %v2524_v11 = vmax.f32 %v2344_v25, %v2428_v60  ;;  %v2607_v16 = vrot.slane %v2099_v63, 3  ;;  %v2609_v52 = vrot.slane %v2100_v12, 3  ;;  %v2786_v0 = vrot.slane %v2098_v43, 4 }
 0x1a0   : > { %v2525_v57 = vmax.f32 %v2345_v42, %v2430_v3  ;;  %v2787_v7 = vrot.slane %v2099_v63, 4  ;;  %v4289_v6 = vpack.c.bf16 %v4261_v8, %v4260_v13  ;;  %v2789_v15 = vrot.slane %v2100_v12, 4  ;;  %v3342_v42 = vld [vmem:[#allocation2 + $0xc0] sm:$0xff] }
 0x1a1   : > { %v2608_v58 = vsel %vm1272_vm5, %v2606_v39, %v2607_v16  ;;  %v2916_v28 = vmax.f32 %v6759_v50, %v6796_v32  ;;  %v2610_v22 = vsel %vm1272_vm5, %v2607_v16, %v2609_v52  ;;  %v2917_v36 = vmax.f32 %v6762_v14, %v6805_v40 }
 0x1a2   : > { %v2704_v33 = vmax.f32 %v2524_v11, %v2608_v58  ;;  %v2788_v23 = vsel %vm1453_vm6, %v2786_v0, %v2787_v7  ;;  %5340 = vmatmul.mubr.msk.bf16.gmra.mxu1 %vm273_vm1, %v4289_v6  ;;  %v2705_v43 = vmax.f32 %v2525_v57, %v2610_v22  ;;  %v2790_v63 = vsel %vm1453_vm6, %v2787_v7, %v2789_v15  ;;  %v3343_v11 = vld [vmem:[#allocation2 + $0xc8] sm:$0xff]  ;;  %v3344_v7 = vld [vmem:[#allocation2 + $0xd0] sm:$0xf] }
 0x1a3   : > { %v2948_v9 = vmax.f32 %v2916_v28, %v7018_v31  ;;  %v2251_v62 = vrot.slane %v2101_v20, 1  ;;  %v2949_v50 = vmax.f32 %v2917_v36, %v7021_v5  ;;  %v2252_v27 = vrot.slane %v2102_v17, 1 }
 0x1a4   : > { %v7115_v38 = vmax.f32 %v2704_v33, %v2788_v23  ;;  %v2254_v12 = vrot.slane %v2103_v18, 1  ;;  %v7118_v21 = vmax.f32 %v2705_v43, %v2790_v63  ;;  %v2431_v49 = vrot.slane %v2101_v20, 2 }
 0x1a5   : > { %v2980_v24 = vmax.f32 %v2948_v9, %v7044_v37  ;;  %v2432_v14 = vrot.slane %v2102_v17, 2  ;;  %v2981_v44 = vmax.f32 %v2949_v50, %v7047_v26  ;;  %v2253_v56 = vsel %vm910_vm3, %v2251_v62, %v2252_v27 }
 0x1a6   : > { %v2255_v1 = vsel %vm910_vm3, %v2252_v27, %v2254_v12  ;;  %v2434_v46 = vrot.slane %v2103_v18, 2  ;;  %v2346_v45 = vmax.f32 %v2101_v20, %v2253_v56  ;;  %v2611_v10 = vrot.slane %v2101_v20, 3 }
 0x1a7   : > { %v3012_v2 = vmax.f32 %v2980_v24, %v7115_v38  ;;  %v2347_v30 = vmax.f32 %v2102_v17, %v2255_v1  ;;  %v2433_v35 = vsel %vm1091_vm4, %v2431_v49, %v2432_v14  ;;  %v3013_v4 = vmax.f32 %v2981_v44, %v7118_v21 }
 0x1a8   : > { %v2435_v51 = vsel %vm1091_vm4, %v2432_v14, %v2434_v46  ;;  %v2612_v61 = vrot.slane %v2102_v17, 3  ;;  %v2526_v19 = vmax.f32 %v2346_v45, %v2433_v35  ;;  %v2614_v54 = vrot.slane %v2103_v18, 3 }
 0x1a9   : > { %3306 = vst.msk [vmem:[#allocation2 + $0x122] sm:$0xff] %vm273_vm1, %v3012_v2  ;;  %v2527_v25 = vmax.f32 %v2347_v30, %v2435_v51  ;;  %v2791_v13 = vrot.slane %v2101_v20, 4  ;;  %v3034_v60 = vpack.c.bf16 %v3013_v4, %v3012_v2  ;;  %3307 = vst.msk [vmem:[#allocation2 + $0x12a] sm:$0xff] %vm273_vm1, %v3013_v4  ;;  %v2792_v8 = vrot.slane %v2102_v17, 4  ;;  %v3345_v51 = vld [vmem:[#allocation2 + $0xd8] sm:$0xff] }
 0x1aa   : > { %v2613_v39 = vsel %vm1272_vm5, %v2611_v10, %v2612_v61  ;;  %v2794_v3 = vrot.slane %v2103_v18, 4  ;;  %v2615_v16 = vsel %vm1272_vm5, %v2612_v61, %v2614_v54  ;;  %v2918_v52 = vmax.f32 %v6796_v32, %v7018_v31  ;;  %v3346_v10 = vld [vmem:[#allocation2 + $0xe0] sm:$0xff] }
 0x1ab   : > { %v2706_v57 = vmax.f32 %v2526_v19, %v2613_v39  ;;  %v2919_v0 = vmax.f32 %v6805_v40, %v7021_v5  ;;  %5321 = vmatprep.mubr.msk.bf16.mxu0 %vm273_vm1, %v3034_v60  ;;  %v2707_v20 = vmax.f32 %v2527_v25, %v2615_v16  ;;  %v2793_v6 = vsel %vm1453_vm6, %v2791_v13, %v2792_v8  ;;  %v3347_v13 = vld [vmem:[#allocation2 + $0xe8] sm:$0xf] }
 0x1ac   : > { %v2795_v58 = vsel %vm1453_vm6, %v2792_v8, %v2794_v3  ;;  %v3478_v15 = vrot.slane %v3342_v42, 1  ;;  %v2950_v17 = vmax.f32 %v2918_v52, %v7044_v37  ;;  %v3479_v22 = vrot.slane %v3343_v11, 1 }
 0x1ad   : > { %v7139_v28 = vmax.f32 %v2706_v57, %v2793_v6  ;;  %v2951_v18 = vmax.f32 %v2919_v0, %v7047_v26  ;;  %v7143_v32 = vmax.f32 %v2707_v20, %v2795_v58  ;;  %v3481_v33 = vrot.slane %v3344_v7, 1 }
 0x1ae   : > { %v3658_v40 = vrot.slane %v3342_v42, 2  ;;  %v3659_v23 = vrot.slane %v3343_v11, 2  ;;  %v2982_v36 = vmax.f32 %v2950_v17, %v7115_v38  ;;  %v3480_v63 = vsel %vm910_vm3, %v3478_v15, %v3479_v22 }
 0x1af   : > { %v2983_v43 = vmax.f32 %v2951_v18, %v7118_v21  ;;  %v3661_v9 = vrot.slane %v3344_v7, 2  ;;  %v3482_v62 = vsel %vm910_vm3, %v3479_v22, %v3481_v33  ;;  %v3594_v50 = vmax.f32 %v3342_v42, %v3480_v63 }
 0x1b0   : > { %v3660_v27 = vsel %vm1091_vm4, %v3658_v40, %v3659_v23  ;;  %v3838_v12 = vrot.slane %v3342_v42, 3  ;;  %v3014_v24 = vmax.f32 %v2982_v36, %v7139_v28  ;;  %v3595_v14 = vmax.f32 %v3343_v11, %v3482_v62 }
 0x1b1   : > { %v3015_v49 = vmax.f32 %v2983_v43, %v7143_v32  ;;  %v3662_v44 = vsel %vm1091_vm4, %v3659_v23, %v3661_v9  ;;  %v3774_v56 = vmax.f32 %v3594_v50, %v3660_v27  ;;  %v3839_v1 = vrot.slane %v3343_v11, 3 }
 0x1b2   : > { %v3841_v46 = vrot.slane %v3344_v7, 3  ;;  %v4018_v2 = vrot.slane %v3342_v42, 4  ;;  %3308 = vst.msk [vmem:[#allocation2 + $0x13a] sm:$0xff] %vm273_vm1, %v3014_v24  ;;  %v3775_v30 = vmax.f32 %v3595_v14, %v3662_v44  ;;  %v4019_v35 = vrot.slane %v3343_v11, 4  ;;  %v2105_v14 = vld [vmem:[#allocation2 + $0x188] sm:$0xff] }
 0x1b3   : > { %v3035_v45 = vpack.c.bf16 %v3015_v49, %v3014_v24  ;;  %3309 = vst.msk [vmem:[#allocation2 + $0x142] sm:$0xff] %vm273_vm1, %v3015_v49  ;;  %v4021_v4 = vrot.slane %v3344_v7, 4  ;;  %v3840_v61 = vsel %vm1272_vm5, %v3838_v12, %v3839_v1  ;;  %v4166_v25 = vmax.f32 %v6974_v53, %v6999_v59  ;;  %v2104_v49 = vld [vmem:[#allocation2 + $0x180] sm:$0xff] }
 0x1b4   : > { %v3842_v19 = vsel %vm1272_vm5, %v3839_v1, %v3841_v46  ;;  %v4167_v54 = vmax.f32 %v6976_v29, %v7001_v47  ;;  %v3954_v42 = vmax.f32 %v3774_v56, %v3840_v61  ;;  %v4020_v39 = vsel %vm1453_vm6, %v4018_v2, %v4019_v35  ;;  %v2106_v2 = vld [vmem:[#allocation2 + $0x190] sm:$0xf] }
 0x1b5   : > { %5322 = vmatmul.mubr.msk.bf16.gmra.mxu0 %vm273_vm1, %v3035_v45  ;;  %v3955_v60 = vmax.f32 %v3775_v30, %v3842_v19  ;;  %v4022_v8 = vsel %vm1453_vm6, %v4019_v35, %v4021_v4  ;;  %v4198_v3 = vmax.f32 %v4166_v25, %v7070_v34  ;;  %v3483_v16 = vrot.slane %v3345_v51, 1 }
 0x1b6   : > { %v4199_v11 = vmax.f32 %v4167_v54, %v7072_v55  ;;  %v3484_v57 = vrot.slane %v3346_v10, 1  ;;  %v7166_v52 = vmax.f32 %v3954_v42, %v4020_v39  ;;  %v3486_v29 = vrot.slane %v3347_v13, 1 }
 0x1b7   : > { %v7168_v53 = vmax.f32 %v3955_v60, %v4022_v8  ;;  %v3663_v0 = vrot.slane %v3345_v51, 2  ;;  %v4230_v7 = vmax.f32 %v4198_v3, %v7092_v48  ;;  %v3664_v58 = vrot.slane %v3346_v10, 2 }
 0x1b8   : > { %v4231_v20 = vmax.f32 %v4199_v11, %v7094_v41  ;;  %v3485_v6 = vsel %vm910_vm3, %v3483_v16, %v3484_v57  ;;  %v3487_v15 = vsel %vm910_vm3, %v3484_v57, %v3486_v29  ;;  %v3666_v18 = vrot.slane %v3347_v13, 2 }
 0x1b9   : > { %v3596_v17 = vmax.f32 %v3345_v51, %v3485_v6  ;;  %v3843_v22 = vrot.slane %v3345_v51, 3  ;;  %v4262_v33 = vmax.f32 %v4230_v7, %v7166_v52  ;;  %v3597_v23 = vmax.f32 %v3346_v10, %v3487_v15 }
 0x1ba   : > { %v4263_v40 = vmax.f32 %v4231_v20, %v7168_v53  ;;  %v3665_v36 = vsel %vm1091_vm4, %v3663_v0, %v3664_v58  ;;  %v3667_v43 = vsel %vm1091_vm4, %v3664_v58, %v3666_v18  ;;  %v3844_v9 = vrot.slane %v3346_v10, 3 }
 0x1bb   : > { %v3776_v63 = vmax.f32 %v3596_v17, %v3665_v36  ;;  %v3846_v62 = vrot.slane %v3347_v13, 3  ;;  %v3777_v27 = vmax.f32 %v3597_v23, %v3667_v43  ;;  %v4023_v12 = vrot.slane %v3345_v51, 4  ;;  %v7203_v23 = vpop.f32.mrf.mxu0 }
 0x1bc   : > { %v4290_v50 = vpack.c.bf16 %v4263_v40, %v4262_v33  ;;  %v4024_v24 = vrot.slane %v3346_v10, 4  ;;  %v3845_v44 = vsel %vm1272_vm5, %v3843_v22, %v3844_v9  ;;  %v4026_v1 = vrot.slane %v3347_v13, 4  ;;  %v7201_v40 = vld [vmem:[#allocation2 + $0x198] sm:$0xff] }
 0x1bd   : > { %v3847_v56 = vsel %vm1272_vm5, %v3844_v9, %v3846_v62  ;;  %v4168_v46 = vmax.f32 %v6999_v59, %v7070_v34  ;;  %v3956_v45 = vmax.f32 %v3776_v63, %v3845_v44  ;;  %v4169_v4 = vmax.f32 %v7001_v47, %v7072_v55  ;;  %v2108_v62 = vld [vmem:[#allocation2 + $0x1a0] sm:$0xff] }
 0x1be   : > { %5343 = vmatprep.mubr.msk.bf16.mxu1 %vm273_vm1, %v4290_v50  ;;  %v3957_v30 = vmax.f32 %v3777_v27, %v3847_v56  ;;  %v4025_v35 = vsel %vm1453_vm6, %v4023_v12, %v4024_v24  ;;  %v4027_v51 = vsel %vm1453_vm6, %v4024_v24, %v4026_v1  ;;  %v2256_v61 = vrot.slane %v2104_v49, 1  ;;  %v2109_v50 = vld [vmem:[#allocation2 + $0x1a8] sm:$0xf] }
 0x1bf   : > { %v4200_v10 = vmax.f32 %v4168_v46, %v7092_v48  ;;  %v2257_v19 = vrot.slane %v2105_v14, 1  ;;  %v7188_v25 = vmax.f32 %v3956_v45, %v4025_v35  ;;  %v4201_v59 = vmax.f32 %v4169_v4, %v7094_v41  ;;  %v7221_v35 = vpop.f32.mrf.mxu0 }
 0x1c0   : > { %v7190_v54 = vmax.f32 %v3957_v30, %v4027_v51  ;;  %v2259_v13 = vrot.slane %v2106_v2, 1  ;;  %v2436_v39 = vrot.slane %v2104_v49, 2  ;;  %v2437_v8 = vrot.slane %v2105_v14, 2 }
 0x1c1   : > { %v4232_v42 = vmax.f32 %v4200_v10, %v7166_v52  ;;  %v2258_v60 = vsel %vm910_vm3, %v2256_v61, %v2257_v19  ;;  %v4233_v47 = vmax.f32 %v4201_v59, %v7168_v53  ;;  %v2439_v16 = vrot.slane %v2106_v2, 2 }
 0x1c2   : > { %v2260_v3 = vsel %vm910_vm3, %v2257_v19, %v2259_v13  ;;  %v2348_v11 = vmax.f32 %v2104_v49, %v2258_v60  ;;  %v2438_v0 = vsel %vm1091_vm4, %v2436_v39, %v2437_v8  ;;  %v2616_v7 = vrot.slane %v2104_v49, 3 }
 0x1c3   : > { %v4264_v57 = vmax.f32 %v4232_v42, %v7188_v25  ;;  %v2349_v29 = vmax.f32 %v2105_v14, %v2260_v3  ;;  %v4265_v20 = vmax.f32 %v4233_v47, %v7190_v54  ;;  %v2440_v6 = vsel %vm1091_vm4, %v2437_v8, %v2439_v16 }
 0x1c4   : > { %v2528_v58 = vmax.f32 %v2348_v11, %v2438_v0  ;;  %v2617_v15 = vrot.slane %v2105_v14, 3  ;;  %v2619_v18 = vrot.slane %v2106_v2, 3  ;;  %v2796_v22 = vrot.slane %v2104_v49, 4 }
 0x1c5   : > { %v2529_v17 = vmax.f32 %v2349_v29, %v2440_v6  ;;  %v2797_v33 = vrot.slane %v2105_v14, 4  ;;  %v4291_v36 = vpack.c.bf16 %v4265_v20, %v4264_v57  ;;  %v2799_v63 = vrot.slane %v2106_v2, 4  ;;  %v7212_v14 = vpop.f32.mrf.mxu1  ;;  %v7238_v29 = vpop.f32.mrf.mxu0 }
 0x1c6   : > { %v2618_v43 = vsel %vm1272_vm5, %v2616_v7, %v2617_v15  ;;  %v2920_v9 = vmax.f32 %v7018_v31, %v7044_v37  ;;  %v2620_v27 = vsel %vm1272_vm5, %v2617_v15, %v2619_v18  ;;  %v2921_v49 = vmax.f32 %v7021_v5, %v7047_v26 }
 0x1c7   : > { %v2708_v12 = vmax.f32 %v2528_v58, %v2618_v43  ;;  %v2798_v24 = vsel %vm1453_vm6, %v2796_v22, %v2797_v33  ;;  %5344 = vmatmul.mubr.msk.bf16.gmra.mxu1 %vm273_vm1, %v4291_v36  ;;  %v2709_v44 = vmax.f32 %v2529_v17, %v2620_v27  ;;  %v2800_v56 = vsel %vm1453_vm6, %v2797_v33, %v2799_v63  ;;  %v7230_v42 = vpop.f32.mrf.mxu1  ;;  %v7242_v58 = vld [vmem:[#allocation2 + $0xf0] sm:$0xff]  ;;  %v3349_v33 = vld [vmem:[#allocation2 + $0xf8] sm:$0xff]  ;;  %v3350_v27 = vld [vmem:[#allocation2 + $0x100] sm:$0xf] }
 0x1c8   : > { %v2952_v1 = vmax.f32 %v2920_v9, %v7115_v38  ;;  %v2261_v31 = vrot.slane %v7201_v40, 1  ;;  %v2953_v2 = vmax.f32 %v2921_v49, %v7118_v21  ;;  %v2262_v45 = vrot.slane %v2108_v62, 1  ;;  %v7257_v49 = vpop.f32.mrf.mxu0 }
 0x1c9   : > { %v7218_v46 = vmax.f32 %v2708_v12, %v2798_v24  ;;  %v2264_v30 = vrot.slane %v2109_v50, 1  ;;  %v7223_v5 = vmax.f32 %v2709_v44, %v2800_v56  ;;  %v2441_v51 = vrot.slane %v7201_v40, 2  ;;  %v7246_v36 = vpop.f32.mrf.mxu1 }
 0x1ca   : > { %v2984_v4 = vmax.f32 %v2952_v1, %v7139_v28  ;;  %v2442_v10 = vrot.slane %v2108_v62, 2  ;;  %v2985_v61 = vmax.f32 %v2953_v2, %v7143_v32  ;;  %v2263_v19 = vsel %vm910_vm3, %v2261_v31, %v2262_v45 }
 0x1cb   : > { %v2265_v59 = vsel %vm910_vm3, %v2262_v45, %v2264_v30  ;;  %v2444_v13 = vrot.slane %v2109_v50, 2  ;;  %v2350_v39 = vmax.f32 %v7201_v40, %v2263_v19  ;;  %v2621_v16 = vrot.slane %v7201_v40, 3  ;;  %v7266_v30 = vpop.f32.mrf.mxu1 }
 0x1cc   : > { %v3016_v60 = vmax.f32 %v2984_v4, %v7218_v46  ;;  %v2351_v8 = vmax.f32 %v2108_v62, %v2265_v59  ;;  %v2443_v47 = vsel %vm1091_vm4, %v2441_v51, %v2442_v10  ;;  %v3017_v3 = vmax.f32 %v2985_v61, %v7223_v5 }
 0x1cd   : > { %v2445_v11 = vsel %vm1091_vm4, %v2442_v10, %v2444_v13  ;;  %v2622_v57 = vrot.slane %v2108_v62, 3  ;;  %v2530_v0 = vmax.f32 %v2350_v39, %v2443_v47  ;;  %v2624_v20 = vrot.slane %v2109_v50, 3  ;;  %v7275_v39 = vpop.f32.mrf.mxu0 }
 0x1ce   : > { %3310 = vst.msk [vmem:[#allocation2 + $0x152] sm:$0xff] %vm273_vm1, %v3016_v60  ;;  %v2531_v7 = vmax.f32 %v2351_v8, %v2445_v11  ;;  %v2801_v6 = vrot.slane %v7201_v40, 4  ;;  %v3036_v15 = vpack.c.bf16 %v3017_v3, %v3016_v60  ;;  %3311 = vst.msk [vmem:[#allocation2 + $0x15a] sm:$0xff] %vm273_vm1, %v3017_v3  ;;  %v2802_v18 = vrot.slane %v2108_v62, 4 }
 0x1cf   : > { %v2623_v17 = vsel %vm1272_vm5, %v2621_v16, %v2622_v57  ;;  %v2804_v22 = vrot.slane %v2109_v50, 4  ;;  %v2625_v43 = vsel %vm1272_vm5, %v2622_v57, %v2624_v20  ;;  %v2922_v9 = vmax.f32 %v7044_v37, %v7115_v38  ;;  %v7281_v20 = vpop.f32.mrf.mxu1 }
 0x1d0   : > { %v2710_v63 = vmax.f32 %v2530_v0, %v2623_v17  ;;  %v2923_v40 = vmax.f32 %v7047_v26, %v7118_v21  ;;  %5325 = vmatprep.mubr.msk.bf16.mxu0 %vm273_vm1, %v3036_v15  ;;  %v2711_v12 = vmax.f32 %v2531_v7, %v2625_v43  ;;  %v2803_v24 = vsel %vm1453_vm6, %v2801_v6, %v2802_v18  ;;  %v3352_v43 = vld [vmem:[#allocation2 + $0x110] sm:$0xff] }
 0x1d1   : > { %v2805_v62 = vsel %vm1453_vm6, %v2802_v18, %v2804_v22  ;;  %v3488_v50 = vrot.slane %v7242_v58, 1  ;;  %v2954_v56 = vmax.f32 %v2922_v9, %v7139_v28  ;;  %v3489_v1 = vrot.slane %v3349_v33, 1  ;;  %v3351_v22 = vld [vmem:[#allocation2 + $0x108] sm:$0xff] }
 0x1d2   : > { %v7259_v44 = vmax.f32 %v2710_v63, %v2803_v24  ;;  %v2955_v37 = vmax.f32 %v2923_v40, %v7143_v32  ;;  %v7263_v26 = vmax.f32 %v2711_v12, %v2805_v62  ;;  %v3491_v31 = vrot.slane %v3350_v27, 1  ;;  %v3353_v12 = vld [vmem:[#allocation2 + $0x118] sm:$0xf]  ;;  %v7291_v24 = vpop.f32.mrf.mxu0 }
 0x1d3   : > { %v3668_v2 = vrot.slane %v7242_v58, 2  ;;  %v3669_v45 = vrot.slane %v3349_v33, 2  ;;  %v2986_v4 = vmax.f32 %v2954_v56, %v7218_v46  ;;  %v3490_v10 = vsel %vm910_vm3, %v3488_v50, %v3489_v1 }
 0x1d4   : > { %v2987_v51 = vmax.f32 %v2955_v37, %v7223_v5  ;;  %v3671_v61 = vrot.slane %v3350_v27, 2  ;;  %v3492_v19 = vsel %vm910_vm3, %v3489_v1, %v3491_v31  ;;  %v3598_v59 = vmax.f32 %v7242_v58, %v3490_v10  ;;  %v7298_v31 = vpop.f32.mrf.mxu1 }
 0x1d5   : > { %v3670_v13 = vsel %vm1091_vm4, %v3668_v2, %v3669_v45  ;;  %v3848_v60 = vrot.slane %v7242_v58, 3  ;;  %v3018_v8 = vmax.f32 %v2986_v4, %v7259_v44  ;;  %v3599_v3 = vmax.f32 %v3349_v33, %v3492_v19 }
 0x1d6   : > { %v3019_v47 = vmax.f32 %v2987_v51, %v7263_v26  ;;  %v3672_v11 = vsel %vm1091_vm4, %v3669_v45, %v3671_v61  ;;  %v3778_v16 = vmax.f32 %v3598_v59, %v3670_v13  ;;  %v3849_v57 = vrot.slane %v3349_v33, 3  ;;  %v7307_v59 = vpop.f32.mrf.mxu0 }
 0x1d7   : > { %v3851_v0 = vrot.slane %v3350_v27, 3  ;;  %v4028_v7 = vrot.slane %v7242_v58, 4  ;;  %3312 = vst.msk [vmem:[#allocation2 + $0x16a] sm:$0xff] %vm273_vm1, %v3018_v8  ;;  %v3779_v15 = vmax.f32 %v3599_v3, %v3672_v11  ;;  %v4029_v17 = vrot.slane %v3349_v33, 4 }
 0x1d8   : > { %v3037_v6 = vpack.c.bf16 %v3019_v47, %v3018_v8  ;;  %3313 = vst.msk [vmem:[#allocation2 + $0x172] sm:$0xff] %vm273_vm1, %v3019_v47  ;;  %v4031_v18 = vrot.slane %v3350_v27, 4  ;;  %v3850_v63 = vsel %vm1272_vm5, %v3848_v60, %v3849_v57  ;;  %v4170_v40 = vmax.f32 %v7070_v34, %v7092_v48 }
 0x1d9   : > { %v3852_v9 = vsel %vm1272_vm5, %v3849_v57, %v3851_v0  ;;  %v4171_v58 = vmax.f32 %v7072_v55, %v7094_v41  ;;  %v3958_v62 = vmax.f32 %v3778_v16, %v3850_v63  ;;  %v4030_v27 = vsel %vm1453_vm6, %v4028_v7, %v4029_v17  ;;  %v7313_v0 = vpop.f32.mrf.mxu1 }
 0x1da   : > { %5326 = vmatmul.mubr.msk.bf16.gmra.mxu0 %vm273_vm1, %v3037_v6  ;;  %v3959_v33 = vmax.f32 %v3779_v15, %v3852_v9  ;;  %v4032_v50 = vsel %vm1453_vm6, %v4029_v17, %v4031_v18  ;;  %v4202_v56 = vmax.f32 %v4170_v40, %v7166_v52  ;;  %v3493_v1 = vrot.slane %v3351_v22, 1 }
 0x1db   : > { %v4203_v37 = vmax.f32 %v4171_v58, %v7168_v53  ;;  %v3494_v34 = vrot.slane %v3352_v43, 1  ;;  %v7300_v55 = vmax.f32 %v3958_v62, %v4030_v27  ;;  %v3496_v45 = vrot.slane %v3353_v12, 1  ;;  %v2110_v58 = vld [vmem:[#allocation2 + $0x1b0] sm:$0xff]  ;;  %v7316_v62 = vld [vmem:[#allocation2 + $0x1b8] sm:$0xff] }
 0x1dc   : > { %v7302_v2 = vmax.f32 %v3959_v33, %v4032_v50  ;;  %v3673_v4 = vrot.slane %v3351_v22, 2  ;;  %v4234_v51 = vmax.f32 %v4202_v56, %v7188_v25  ;;  %v3674_v19 = vrot.slane %v3352_v43, 2  ;;  %v7318_v33 = vpop.f32.mrf.mxu0 }
 0x1dd   : > { %v4235_v10 = vmax.f32 %v4203_v37, %v7190_v54  ;;  %v3495_v61 = vsel %vm910_vm3, %v3493_v1, %v3494_v34  ;;  %v3497_v13 = vsel %vm910_vm3, %v3494_v34, %v3496_v45  ;;  %v3676_v8 = vrot.slane %v3353_v12, 2  ;;  %v2112_v1 = vld [vmem:[#allocation2 + $0x1c0] sm:$0xf] }
 0x1de   : > { %v3600_v60 = vmax.f32 %v3351_v22, %v3495_v61  ;;  %v3853_v47 = vrot.slane %v3351_v22, 3  ;;  %v4266_v3 = vmax.f32 %v4234_v51, %v7300_v55  ;;  %v3601_v16 = vmax.f32 %v3352_v43, %v3497_v13 }
 0x1df   : > { %v4267_v11 = vmax.f32 %v4235_v10, %v7302_v2  ;;  %v3675_v57 = vsel %vm1091_vm4, %v3673_v4, %v3674_v19  ;;  %v3677_v7 = vsel %vm1091_vm4, %v3674_v19, %v3676_v8  ;;  %v3854_v15 = vrot.slane %v3352_v43, 3  ;;  %v7328_v4 = vpop.f32.mrf.mxu1  ;;  %v7340_v8 = vpop.f32.mrf.mxu0 }
 0x1e0   : > { %v3780_v6 = vmax.f32 %v3600_v60, %v3675_v57  ;;  %v3856_v17 = vrot.slane %v3353_v12, 3  ;;  %v3781_v63 = vmax.f32 %v3601_v16, %v3677_v7  ;;  %v4033_v9 = vrot.slane %v3351_v22, 4 }
 0x1e1   : > { %v4292_v18 = vpack.c.bf16 %v4267_v11, %v4266_v3  ;;  %v4034_v40 = vrot.slane %v3352_v43, 4  ;;  %v3855_v27 = vsel %vm1272_vm5, %v3853_v47, %v3854_v15  ;;  %v4036_v56 = vrot.slane %v3353_v12, 4 }
 0x1e2   : > { %v3857_v50 = vsel %vm1272_vm5, %v3854_v15, %v3856_v17  ;;  %v4172_v37 = vmax.f32 %v7092_v48, %v7166_v52  ;;  %v3960_v34 = vmax.f32 %v3780_v6, %v3855_v27  ;;  %v4173_v43 = vmax.f32 %v7094_v41, %v7168_v53  ;;  %v7351_v15 = vpop.f32.mrf.mxu1 }
 0x1e3   : > { %5347 = vmatprep.mubr.msk.bf16.mxu1 %vm273_vm1, %v4292_v18  ;;  %v3961_v45 = vmax.f32 %v3781_v63, %v3857_v50  ;;  %v4035_v22 = vsel %vm1453_vm6, %v4033_v9, %v4034_v40  ;;  %v4037_v51 = vsel %vm1453_vm6, %v4034_v40, %v4036_v56  ;;  %v2266_v12 = vrot.slane %v2110_v58, 1  ;;  %8121 = vst [vmem:[#allocation4_spill] sm:$0xff] %v7351_v15  ;;  %v3360_v15 = vld [vmem:[#allocation2 + $0x150] sm:$0xff] }
 0x1e4   : > { %v4204_v10 = vmax.f32 %v4172_v37, %v7188_v25  ;;  %v7333_v61 = vrot.slane %v7316_v62, 1  ;;  %v7335_v48 = vmax.f32 %v3960_v34, %v4035_v22  ;;  %v4205_v13 = vmax.f32 %v4173_v43, %v7190_v54  ;;  %v7363_v37 = vpop.f32.mrf.mxu0 }
 0x1e5   : > { %v7337_v19 = vmax.f32 %v3961_v45, %v4037_v51  ;;  %v2269_v60 = vrot.slane %v2112_v1, 1  ;;  %v2446_v3 = vrot.slane %v2110_v58, 2  ;;  %v7346_v11 = vrot.slane %v7316_v62, 2  ;;  %8122 = vst [vmem:[#allocation5_spill] sm:$0xff] %v7363_v37  ;;  %v7368_v51 = vld [vmem:[#allocation2 + $0x1c8] sm:$0xff] }
 0x1e6   : > { %v4236_v41 = vmax.f32 %v4204_v10, %v7300_v55  ;;  %v2268_v47 = vsel %vm910_vm3, %v2266_v12, %v7333_v61  ;;  %v4237_v16 = vmax.f32 %v4205_v13, %v7302_v2  ;;  %v2449_v6 = vrot.slane %v2112_v1, 2 }
 0x1e7   : > { %v2270_v57 = vsel %vm910_vm3, %v7333_v61, %v2269_v60  ;;  %v2352_v7 = vmax.f32 %v2110_v58, %v2268_v47  ;;  %v2448_v63 = vsel %vm1091_vm4, %v2446_v3, %v7346_v11  ;;  %v2626_v9 = vrot.slane %v2110_v58, 3  ;;  %v2115_v47 = vld [vmem:[#allocation2 + $0x1d8] sm:$0xf]  ;;  %v7376_v3 = vpop.f32.mrf.mxu1 }
 0x1e8   : > { %v4268_v17 = vmax.f32 %v4236_v41, %v7335_v48  ;;  %v2353_v18 = vmax.f32 %v7316_v62, %v2270_v57  ;;  %v4269_v40 = vmax.f32 %v4237_v16, %v7337_v19  ;;  %v2450_v27 = vsel %vm1091_vm4, %v7346_v11, %v2449_v6  ;;  %v7374_v41 = vld [vmem:[#allocation2 + $0x1d0] sm:$0xff]  ;;  %8123 = vst [vmem:[#allocation6_spill] sm:$0xff] %v7376_v3 }
 0x1e9   : > { %v2532_v50 = vmax.f32 %v2352_v7, %v2448_v63  ;;  %v7361_v56 = vrot.slane %v7316_v62, 3  ;;  %v2629_v45 = vrot.slane %v2112_v1, 3  ;;  %v2806_v22 = vrot.slane %v2110_v58, 4 }
 0x1ea   : > { %v2533_v34 = vmax.f32 %v2353_v18, %v2450_v27  ;;  %v7366_v43 = vrot.slane %v7316_v62, 4  ;;  %v4293_v10 = vpack.c.bf16 %v4269_v40, %v4268_v17  ;;  %v2809_v13 = vrot.slane %v2112_v1, 4  ;;  %v7389_v18 = vpop.f32.mrf.mxu0 }
 0x1eb   : > { %v2628_v12 = vsel %vm1272_vm5, %v2626_v9, %v7361_v56  ;;  %v2924_v60 = vmax.f32 %v7115_v38, %v7139_v28  ;;  %v2630_v58 = vsel %vm1272_vm5, %v7361_v56, %v2629_v45  ;;  %v2925_v7 = vmax.f32 %v7118_v21, %v7143_v32  ;;  %8124 = vst [vmem:[#allocation7_spill] sm:$0xff] %v7389_v18  ;;  %v3355_v18 = vld [vmem:[#allocation2 + $0x128] sm:$0xff] }
 0x1ec   : > { %v2712_v16 = vmax.f32 %v2532_v50, %v2628_v12  ;;  %v2808_v57 = vsel %vm1453_vm6, %v2806_v22, %v7366_v43  ;;  %5348 = vmatmul.mubr.msk.bf16.gmra.mxu1 %vm273_vm1, %v4293_v10  ;;  %v2713_v1 = vmax.f32 %v2533_v34, %v2630_v58  ;;  %v2810_v38 = vsel %vm1453_vm6, %v7366_v43, %v2809_v13  ;;  %v7402_v22 = vpop.f32.mrf.mxu1 }
 0x1ed   : > { %v2956_v6 = vmax.f32 %v2924_v60, %v7218_v46  ;;  %v2271_v17 = vrot.slane %v7368_v51, 1  ;;  %v2957_v9 = vmax.f32 %v2925_v7, %v7223_v5  ;;  %v7395_v40 = vrot.slane %v7374_v41, 1  ;;  %8125 = vst [vmem:[#allocation8_spill] sm:$0xff] %v7402_v22  ;;  %v7424_v22 = vld [vmem:[#allocation2 + $0x120] sm:$0xff] }
 0x1ee   : > { %v7391_v63 = vmax.f32 %v2712_v16, %v2808_v57  ;;  %v2274_v21 = vrot.slane %v2115_v47, 1  ;;  %v2893_v27 = vmax.f32 %v2713_v1, %v2810_v38  ;;  %v2451_v34 = vrot.slane %v7368_v51, 2  ;;  %v7414_v1 = vpop.f32.mrf.mxu0 }
 0x1ef   : > { %v2988_v50 = vmax.f32 %v2956_v6, %v7259_v44  ;;  %v7400_v45 = vrot.slane %v7374_v41, 2  ;;  %v2989_v10 = vmax.f32 %v2957_v9, %v7263_v26  ;;  %v2273_v12 = vsel %vm910_vm3, %v2271_v17, %v7395_v40  ;;  %8126 = vst [vmem:[#allocation9_spill] sm:$0xff] %v7414_v1 }
 0x1f0   : > { %v2275_v13 = vsel %vm910_vm3, %v7395_v40, %v2274_v21  ;;  %v2454_v60 = vrot.slane %v2115_v47, 2  ;;  %v2354_v16 = vmax.f32 %v7368_v51, %v2273_v12  ;;  %v2631_v17 = vrot.slane %v7368_v51, 3 }
 0x1f1   : > { %v3020_v58 = vmax.f32 %v2988_v50, %v7391_v63  ;;  %v2355_v57 = vmax.f32 %v7374_v41, %v2275_v13  ;;  %v2453_v7 = vsel %vm1091_vm4, %v2451_v34, %v7400_v45  ;;  %v3021_v38 = vmax.f32 %v2989_v10, %v2893_v27  ;;  %v7426_v34 = vpop.f32.mrf.mxu1 }
 0x1f2   : > { %v2455_v6 = vsel %vm1091_vm4, %v7400_v45, %v2454_v60  ;;  %v7420_v9 = vrot.slane %v7374_v41, 3  ;;  %v2534_v21 = vmax.f32 %v2354_v16, %v2453_v7  ;;  %v2634_v12 = vrot.slane %v2115_v47, 3  ;;  %8127 = vst [vmem:[#allocation10_spill] sm:$0xff] %v7426_v34  ;;  %v3356_v7 = vld [vmem:[#allocation2 + $0x130] sm:$0xf] }
 0x1f3   : > { %3314 = vst.msk [vmem:[#allocation2 + $0x182] sm:$0xff] %vm273_vm1, %v3020_v58  ;;  %v2535_v50 = vmax.f32 %v2355_v57, %v2455_v6  ;;  %v2811_v13 = vrot.slane %v7368_v51, 4  ;;  %v3038_v10 = vpack.c.bf16 %v3021_v38, %v3020_v58  ;;  %3315 = vst.msk [vmem:[#allocation2 + $0x18a] sm:$0xff] %vm273_vm1, %v3021_v38  ;;  %v7432_v1 = vrot.slane %v7374_v41, 4  ;;  %v7440_v38 = vpop.f32.mrf.mxu0 }
 0x1f4   : > { %v2633_v60 = vsel %vm1272_vm5, %v2631_v17, %v7420_v9  ;;  %v2814_v3 = vrot.slane %v2115_v47, 4  ;;  %v2635_v16 = vsel %vm1272_vm5, %v7420_v9, %v2634_v12  ;;  %v2926_v51 = vmax.f32 %v7139_v28, %v7218_v46  ;;  %8128 = vst [vmem:[#allocation11_spill] sm:$0xff] %v7440_v38 }
 0x1f5   : > { %v2714_v57 = vmax.f32 %v2534_v21, %v2633_v60  ;;  %v2927_v58 = vmax.f32 %v7143_v32, %v7223_v5  ;;  %5329 = vmatprep.mubr.msk.bf16.mxu0 %vm273_vm1, %v3038_v10  ;;  %v2715_v6 = vmax.f32 %v2535_v50, %v2635_v16  ;;  %v2813_v47 = vsel %vm1453_vm6, %v2811_v13, %v7432_v1  ;;  %v7452_v5 = vpop.f32.mrf.mxu1 }
 0x1f6   : > { %v2815_v17 = vsel %vm1453_vm6, %v7432_v1, %v2814_v3  ;;  %v3498_v21 = vrot.slane %v7424_v22, 1  ;;  %v2958_v28 = vmax.f32 %v2926_v51, %v7259_v44  ;;  %v3499_v46 = vrot.slane %v3355_v18, 1  ;;  %8129 = vst [vmem:[#allocation12_spill] sm:$0xff] %v7452_v5 }
 0x1f7   : > { %v7448_v12 = vmax.f32 %v2714_v57, %v2813_v47  ;;  %v2959_v32 = vmax.f32 %v2927_v58, %v7263_v26  ;;  %v2895_v60 = vmax.f32 %v2715_v6, %v2815_v17  ;;  %v3501_v10 = vrot.slane %v3356_v7, 1  ;;  %v7457_v57 = vpop.f32.mrf.mxu0 }
 0x1f8   : > { %v3678_v50 = vrot.slane %v7424_v22, 2  ;;  %v3679_v16 = vrot.slane %v3355_v18, 2  ;;  %v2990_v13 = vmax.f32 %v2958_v28, %v7391_v63  ;;  %v3500_v3 = vsel %vm910_vm3, %v3498_v21, %v3499_v46  ;;  %8130 = vst [vmem:[#allocation13_spill] sm:$0xff] %v7457_v57 }
 0x1f9   : > { %v2991_v38 = vmax.f32 %v2959_v32, %v2893_v27  ;;  %v3681_v34 = vrot.slane %v3356_v7, 2  ;;  %v3502_v44 = vsel %vm910_vm3, %v3499_v46, %v3501_v10  ;;  %v3602_v26 = vmax.f32 %v7424_v22, %v3500_v3  ;;  %v7465_v27 = vpop.f32.mrf.mxu1 }
 0x1fa   : > { %v3680_v51 = vsel %vm1091_vm4, %v3678_v50, %v3679_v16  ;;  %v3858_v58 = vrot.slane %v7424_v22, 3  ;;  %v3022_v6 = vmax.f32 %v2990_v13, %v7448_v12  ;;  %v3603_v17 = vmax.f32 %v3355_v18, %v3502_v44  ;;  %8131 = vst [vmem:[#allocation14_spill] sm:$0xff] %v7465_v27  ;;  %v3357_v13 = vld [vmem:[#allocation2 + $0x138] sm:$0xff] }
 0x1fb   : > { %v3023_v47 = vmax.f32 %v2991_v38, %v2895_v60  ;;  %v3682_v28 = vsel %vm1091_vm4, %v3679_v16, %v3681_v34  ;;  %v3782_v21 = vmax.f32 %v3602_v26, %v3680_v51  ;;  %v3859_v32 = vrot.slane %v3355_v18, 3  ;;  %v3358_v38 = vld [vmem:[#allocation2 + $0x140] sm:$0xff]  ;;  %v7470_v60 = vpop.f32.mrf.mxu0  ;;  %v3359_v26 = vld [vmem:[#allocation2 + $0x148] sm:$0xf] }
 0x1fc   : > { %v3861_v5 = vrot.slane %v3356_v7, 3  ;;  %v4038_v57 = vrot.slane %v7424_v22, 4  ;;  %3316 = vst.msk [vmem:[#allocation2 + $0x19a] sm:$0xff] %vm273_vm1, %v3022_v6  ;;  %v3783_v10 = vmax.f32 %v3603_v17, %v3682_v28  ;;  %v4039_v50 = vrot.slane %v3355_v18, 4  ;;  %8132 = vst [vmem:[#allocation15_spill] sm:$0xff] %v7470_v60 }
 0x1fd   : > { %v3039_v46 = vpack.c.bf16 %v3023_v47, %v3022_v6  ;;  %3317 = vst.msk [vmem:[#allocation2 + $0x1a2] sm:$0xff] %vm273_vm1, %v3023_v47  ;;  %v4041_v3 = vrot.slane %v3356_v7, 4  ;;  %v3860_v34 = vsel %vm1272_vm5, %v3858_v58, %v3859_v32  ;;  %v4174_v44 = vmax.f32 %v7166_v52, %v7188_v25  ;;  %v7481_v47 = vpop.f32.mrf.mxu1 }
 0x1fe   : > { %v3862_v16 = vsel %vm1272_vm5, %v3859_v32, %v3861_v5  ;;  %v4175_v22 = vmax.f32 %v7168_v53, %v7190_v54  ;;  %v3962_v51 = vmax.f32 %v3782_v21, %v3860_v34  ;;  %v4040_v7 = vsel %vm1453_vm6, %v4038_v57, %v4039_v50  ;;  %8133 = vst [vmem:[#allocation16_spill] sm:$0xff] %v7481_v47  ;;  %v7489_v21 = vpop.f32.mrf.mxu0 }
 0x1ff   : > { %5330 = vmatmul.mubr.msk.bf16.gmra.mxu0 %vm273_vm1, %v3039_v46  ;;  %v3963_v18 = vmax.f32 %v3783_v10, %v3862_v16  ;;  %v4042_v6 = vsel %vm1453_vm6, %v4039_v50, %v4041_v3  ;;  %v4206_v58 = vmax.f32 %v4174_v44, %v7300_v55  ;;  %v3503_v17 = vrot.slane %v3357_v13, 1  ;;  %8134 = vst [vmem:[#allocation17_spill] sm:$0xff] %v7489_v21 }
 0x200   : > { %v4207_v5 = vmax.f32 %v4175_v22, %v7302_v2  ;;  %v3504_v52 = vrot.slane %v3358_v38, 1  ;;  %v7485_v28 = vmax.f32 %v3962_v51, %v4040_v7  ;;  %v3506_v32 = vrot.slane %v3359_v26, 1  ;;  %v7495_v51 = vpop.f32.mrf.mxu1  ;;  %v7501_v27 = vpop.f32.mrf.mxu0 }
 0x201   : > { %v7487_v53 = vmax.f32 %v3963_v18, %v4042_v6  ;;  %v3683_v46 = vrot.slane %v3357_v13, 2  ;;  %v4238_v57 = vmax.f32 %v4206_v58, %v7335_v48  ;;  %v3684_v3 = vrot.slane %v3358_v38, 2  ;;  %8135 = vst [vmem:[#allocation18_spill] sm:$0xff] %v7495_v51  ;;  %8136 = vst [vmem:[#allocation19_spill] sm:$0xff] %v7501_v27  ;;  %v3361_v51 = vld [vmem:[#allocation2 + $0x158] sm:$0xff]  ;;  %v3364_v27 = vld [vmem:[#allocation2 + $0x170] sm:$0xff] }
 0x202   : > { %v4239_v10 = vmax.f32 %v4207_v5, %v7337_v19  ;;  %v3505_v50 = vsel %vm910_vm3, %v3503_v17, %v3504_v52  ;;  %v3507_v34 = vsel %vm910_vm3, %v3504_v52, %v3506_v32  ;;  %v3686_v44 = vrot.slane %v3359_v26, 2 }
 0x203   : > { %v3604_v16 = vmax.f32 %v3357_v13, %v3505_v50  ;;  %v3863_v22 = vrot.slane %v3357_v13, 3  ;;  %v4270_v18 = vmax.f32 %v4238_v57, %v7485_v28  ;;  %v3605_v6 = vmax.f32 %v3358_v38, %v3507_v34 }
 0x204   : > { %v4271_v7 = vmax.f32 %v4239_v10, %v7487_v53  ;;  %v3685_v47 = vsel %vm1091_vm4, %v3683_v46, %v3684_v3  ;;  %v3687_v58 = vsel %vm1091_vm4, %v3684_v3, %v3686_v44  ;;  %v3864_v21 = vrot.slane %v3358_v38, 3  ;;  %v3362_v3 = vld [vmem:[#allocation2 + $0x160] sm:$0xf] }
 0x205   : > { %v3784_v5 = vmax.f32 %v3604_v16, %v3685_v47  ;;  %v3866_v17 = vrot.slane %v3359_v26, 3  ;;  %v3785_v32 = vmax.f32 %v3605_v6, %v3687_v58  ;;  %v4043_v50 = vrot.slane %v3357_v13, 4  ;;  %v7507_v47 = vpop.f32.mrf.mxu1  ;;  %v3370_v37 = vld [vmem:[#allocation2 + $0x1a0] sm:$0xff] }
 0x206   : > { %v4294_v52 = vpack.c.bf16 %v4271_v7, %v4270_v18  ;;  %v4044_v60 = vrot.slane %v3358_v38, 4  ;;  %v3865_v57 = vsel %vm1272_vm5, %v3863_v22, %v3864_v21  ;;  %v4046_v34 = vrot.slane %v3359_v26, 4  ;;  %8137 = vst [vmem:[#allocation20_spill] sm:$0xff] %v7507_v47  ;;  %v7515_v7 = vpop.f32.mrf.mxu0 }
 0x207   : > { %v3867_v10 = vsel %vm1272_vm5, %v3864_v21, %v3866_v17  ;;  %v4176_v46 = vmax.f32 %v7188_v25, %v7300_v55  ;;  %v3964_v16 = vmax.f32 %v3784_v5, %v3865_v57  ;;  %v4177_v38 = vmax.f32 %v7190_v54, %v7302_v2  ;;  %8138 = vst [vmem:[#allocation21_spill] sm:$0xff] %v7515_v7 }
 0x208   : > { %5351 = vmatprep.mubr.msk.bf16.mxu1 %vm273_vm1, %v4294_v52  ;;  %v3965_v44 = vmax.f32 %v3785_v32, %v3867_v10  ;;  %v4045_v13 = vsel %vm1453_vm6, %v4043_v50, %v4044_v60  ;;  %v4047_v22 = vsel %vm1453_vm6, %v4044_v60, %v4046_v34  ;;  %v3508_v26 = vrot.slane %v3360_v15, 1  ;;  %v7524_v60 = vpop.f32.mrf.mxu1 }
 0x209   : > { %v4208_v21 = vmax.f32 %v4176_v46, %v7335_v48  ;;  %v3509_v18 = vrot.slane %v3361_v51, 1  ;;  %v7517_v25 = vmax.f32 %v3964_v16, %v4045_v13  ;;  %v4209_v58 = vmax.f32 %v4177_v38, %v7337_v19  ;;  %8139 = vst [vmem:[#allocation22_spill] sm:$0xff] %v7524_v60  ;;  %v7530_v38 = vpop.f32.mrf.mxu0 }
 0x20a   : > { %v7519_v6 = vmax.f32 %v3965_v44, %v4047_v22  ;;  %v3511_v5 = vrot.slane %v3362_v3, 1  ;;  %v3688_v54 = vrot.slane %v3360_v15, 2  ;;  %v3689_v32 = vrot.slane %v3361_v51, 2  ;;  %8140 = vst [vmem:[#allocation23_spill] sm:$0xff] %v7530_v38 }
 0x20b   : > { %v4240_v17 = vmax.f32 %v4208_v21, %v7485_v28  ;;  %v3510_v52 = vsel %vm910_vm3, %v3508_v26, %v3509_v18  ;;  %v4241_v50 = vmax.f32 %v4209_v58, %v7487_v53  ;;  %v3691_v34 = vrot.slane %v3362_v3, 2 }
 0x20c   : > { %v3512_v57 = vsel %vm910_vm3, %v3509_v18, %v3511_v5  ;;  %v3606_v10 = vmax.f32 %v3360_v15, %v3510_v52  ;;  %v3690_v44 = vsel %vm1091_vm4, %v3688_v54, %v3689_v32  ;;  %v3868_v13 = vrot.slane %v3360_v15, 3  ;;  %v3363_v5 = vld [vmem:[#allocation2 + $0x168] sm:$0xff]  ;;  %v7534_v52 = vpop.f32.mrf.mxu1 }
 0x20d   : > { %v4272_v46 = vmax.f32 %v4240_v17, %v7517_v25  ;;  %v3607_v16 = vmax.f32 %v3361_v51, %v3512_v57  ;;  %v4273_v22 = vmax.f32 %v4241_v50, %v7519_v6  ;;  %v3692_v21 = vsel %vm1091_vm4, %v3689_v32, %v3691_v34  ;;  %8141 = vst [vmem:[#allocation24_spill] sm:$0xff] %v7534_v52  ;;  %v3365_v50 = vld [vmem:[#allocation2 + $0x178] sm:$0xf]  ;;  %v3366_v52 = vld [vmem:[#allocation2 + $0x180] sm:$0xff] }
 0x20e   : > { %v3786_v26 = vmax.f32 %v3606_v10, %v3690_v44  ;;  %v3869_v60 = vrot.slane %v3361_v51, 3  ;;  %v3871_v58 = vrot.slane %v3362_v3, 3  ;;  %v4048_v7 = vrot.slane %v3360_v15, 4 }
 0x20f   : > { %v3787_v47 = vmax.f32 %v3607_v16, %v3692_v21  ;;  %v4049_v18 = vrot.slane %v3361_v51, 4  ;;  %v4295_v17 = vpack.c.bf16 %v4273_v22, %v4272_v46  ;;  %v4051_v54 = vrot.slane %v3362_v3, 4  ;;  %v7543_v51 = vpop.f32.mrf.mxu0 }
 0x210   : > { %v3870_v57 = vsel %vm1272_vm5, %v3868_v13, %v3869_v60  ;;  %v4178_v38 = vmax.f32 %v7300_v55, %v7335_v48  ;;  %v3872_v32 = vsel %vm1272_vm5, %v3869_v60, %v3871_v58  ;;  %v4179_v15 = vmax.f32 %v7302_v2, %v7337_v19  ;;  %8142 = vst [vmem:[#allocation25_spill] sm:$0xff] %v7543_v51  ;;  %v3367_v51 = vld [vmem:[#allocation2 + $0x188] sm:$0xff] }
 0x211   : > { %v3966_v10 = vmax.f32 %v3786_v26, %v3870_v57  ;;  %v4050_v34 = vsel %vm1453_vm6, %v4048_v7, %v4049_v18  ;;  %5352 = vmatmul.mubr.msk.bf16.gmra.mxu1 %vm273_vm1, %v4295_v17  ;;  %v3967_v46 = vmax.f32 %v3787_v47, %v3872_v32  ;;  %v4052_v3 = vsel %vm1453_vm6, %v4049_v18, %v4051_v54  ;;  %v7551_v7 = vpop.f32.mrf.mxu1  ;;  %v7559_v57 = vpop.f32.mrf.mxu0 }
 0x212   : > { %v4210_v16 = vmax.f32 %v4178_v38, %v7485_v28  ;;  %v3513_v55 = vrot.slane %v3363_v5, 1  ;;  %v4211_v60 = vmax.f32 %v4179_v15, %v7487_v53  ;;  %v3514_v13 = vrot.slane %v3364_v27, 1  ;;  %8143 = vst [vmem:[#allocation26_spill] sm:$0xff] %v7551_v7  ;;  %8144 = vst [vmem:[#allocation27_spill] sm:$0xff] %v7559_v57 }
 0x213   : > { %v7548_v44 = vmax.f32 %v3966_v10, %v4050_v34  ;;  %v3516_v22 = vrot.slane %v3365_v50, 1  ;;  %v7553_v21 = vmax.f32 %v3967_v46, %v4052_v3  ;;  %v3693_v26 = vrot.slane %v3363_v5, 2 }
 0x214   : > { %v4242_v2 = vmax.f32 %v4210_v16, %v7517_v25  ;;  %v3694_v58 = vrot.slane %v3364_v27, 2  ;;  %v4243_v47 = vmax.f32 %v4211_v60, %v7519_v6  ;;  %v3515_v18 = vsel %vm910_vm3, %v3513_v55, %v3514_v13  ;;  %v7565_v60 = vpop.f32.mrf.mxu1 }
 0x215   : > { %v3517_v38 = vsel %vm910_vm3, %v3514_v13, %v3516_v22  ;;  %v3696_v17 = vrot.slane %v3365_v50, 2  ;;  %v3608_v32 = vmax.f32 %v3363_v5, %v3515_v18  ;;  %v3873_v3 = vrot.slane %v3363_v5, 3  ;;  %8145 = vst [vmem:[#allocation28_spill] sm:$0xff] %v7565_v60 }
 0x216   : > { %v4274_v54 = vmax.f32 %v4242_v2, %v7548_v44  ;;  %v3609_v10 = vmax.f32 %v3364_v27, %v3517_v38  ;;  %v3695_v34 = vsel %vm1091_vm4, %v3693_v26, %v3694_v58  ;;  %v4275_v15 = vmax.f32 %v4243_v47, %v7553_v21  ;;  %v7568_v26 = vpop.f32.mrf.mxu0 }
 0x217   : > { %v3697_v46 = vsel %vm1091_vm4, %v3694_v58, %v3696_v17  ;;  %v3874_v16 = vrot.slane %v3364_v27, 3  ;;  %v3788_v55 = vmax.f32 %v3608_v32, %v3695_v34  ;;  %v3876_v13 = vrot.slane %v3365_v50, 3  ;;  %8146 = vst [vmem:[#allocation29_spill] sm:$0xff] %v7568_v26  ;;  %v7578_v34 = vpop.f32.mrf.mxu1  ;;  %v3369_v26 = vld [vmem:[#allocation2 + $0x198] sm:$0xff] }
 0x218   : > { %v3789_v7 = vmax.f32 %v3609_v10, %v3697_v46  ;;  %v4053_v22 = vrot.slane %v3363_v5, 4  ;;  %v4296_v57 = vpack.c.bf16 %v4275_v15, %v4274_v54  ;;  %v4054_v18 = vrot.slane %v3364_v27, 4  ;;  %v3368_v10 = vld [vmem:[#allocation2 + $0x190] sm:$0xf]  ;;  %8147 = vst [vmem:[#allocation30_spill] sm:$0xff] %v7578_v34 }
 0x219   : > { %v3875_v2 = vsel %vm1272_vm5, %v3873_v3, %v3874_v16  ;;  %v4056_v38 = vrot.slane %v3365_v50, 4  ;;  %v3877_v47 = vsel %vm1272_vm5, %v3874_v16, %v3876_v13  ;;  %v4180_v17 = vmax.f32 %v7335_v48, %v7485_v28 }
 0x21a   : > { %v3968_v58 = vmax.f32 %v3788_v55, %v3875_v2  ;;  %v4181_v32 = vmax.f32 %v7337_v19, %v7487_v53  ;;  %5355 = vmatprep.mubr.msk.bf16.mxu1 %vm273_vm1, %v4296_v57  ;;  %v3969_v5 = vmax.f32 %v3789_v7, %v3877_v47  ;;  %v4055_v54 = vsel %vm1453_vm6, %v4053_v22, %v4054_v18  ;;  %v7586_v7 = vpop.f32.mrf.mxu0 }
 0x21b   : > { %v4057_v27 = vsel %vm1453_vm6, %v4054_v18, %v4056_v38  ;;  %v3518_v50 = vrot.slane %v3366_v52, 1  ;;  %v4212_v46 = vmax.f32 %v4180_v17, %v7517_v25  ;;  %v3519_v3 = vrot.slane %v3367_v51, 1  ;;  %8148 = vst [vmem:[#allocation31_spill] sm:$0xff] %v7586_v7 }
 0x21c   : > { %v7580_v15 = vmax.f32 %v3968_v58, %v4055_v54  ;;  %v4213_v48 = vmax.f32 %v4181_v32, %v7519_v6  ;;  %v7584_v16 = vmax.f32 %v3969_v5, %v4057_v27  ;;  %v3521_v19 = vrot.slane %v3368_v10, 1  ;;  %v7593_v32 = vpop.f32.mrf.mxu1  ;;  %v7598_v60 = vpop.f32.mrf.mxu0 }
 0x21d   : > { %v3698_v55 = vrot.slane %v3366_v52, 2  ;;  %v3699_v57 = vrot.slane %v3367_v51, 2  ;;  %v4244_v13 = vmax.f32 %v4212_v46, %v7548_v44  ;;  %v3520_v2 = vsel %vm910_vm3, %v3518_v50, %v3519_v3  ;;  %8149 = vst [vmem:[#allocation32_spill] sm:$0xff] %v7593_v32 }
 0x21e   : > { %v4245_v22 = vmax.f32 %v4213_v48, %v7553_v21  ;;  %v3701_v18 = vrot.slane %v3368_v10, 2  ;;  %v3522_v38 = vsel %vm910_vm3, %v3519_v3, %v3521_v19  ;;  %v3610_v47 = vmax.f32 %v3366_v52, %v3520_v2 }
 0x21f   : > { %v3700_v58 = vsel %vm1091_vm4, %v3698_v55, %v3699_v57  ;;  %v3878_v17 = vrot.slane %v3366_v52, 3  ;;  %v4276_v5 = vmax.f32 %v4244_v13, %v7580_v15  ;;  %v3611_v27 = vmax.f32 %v3367_v51, %v3522_v38 }
 0x220   : > { %v4277_v54 = vmax.f32 %v4245_v22, %v7584_v16  ;;  %v3702_v46 = vsel %vm1091_vm4, %v3699_v57, %v3701_v18  ;;  %v3790_v34 = vmax.f32 %v3610_v47, %v3700_v58  ;;  %v3879_v48 = vrot.slane %v3367_v51, 3  ;;  %v3371_v18 = vld [vmem:[#allocation2 + $0x1a8] sm:$0xf] }
 0x221   : > { %v3881_v7 = vrot.slane %v3368_v10, 3  ;;  %v4058_v50 = vrot.slane %v3366_v52, 4  ;;  %v3791_v19 = vmax.f32 %v3611_v27, %v3702_v46  ;;  %v4059_v2 = vrot.slane %v3367_v51, 4  ;;  %v7606_v52 = vpop.f32.mrf.mxu1 }
 0x222   : > { %v4297_v3 = vpack.c.bf16 %v4277_v54, %v4276_v5  ;;  %v4061_v55 = vrot.slane %v3368_v10, 4  ;;  %v3880_v32 = vsel %vm1272_vm5, %v3878_v17, %v3879_v48  ;;  %v4182_v22 = vmax.f32 %v7485_v28, %v7517_v25  ;;  %8150 = vst [vmem:[#allocation33_spill] sm:$0xff] %v7606_v52  ;;  %v7613_v5 = vpop.f32.mrf.mxu0 }
 0x223   : > { %v3882_v13 = vsel %vm1272_vm5, %v3879_v48, %v3881_v7  ;;  %v4183_v57 = vmax.f32 %v7487_v53, %v7519_v6  ;;  %v3970_v38 = vmax.f32 %v3790_v34, %v3880_v32  ;;  %v4060_v10 = vsel %vm1453_vm6, %v4058_v50, %v4059_v2  ;;  %8151 = vst [vmem:[#allocation34_spill] sm:$0xff] %v7613_v5 }
 0x224   : > { %5356 = vmatmul.mubr.msk.bf16.gmra.mxu1 %vm273_vm1, %v4297_v3  ;;  %v3971_v51 = vmax.f32 %v3791_v19, %v3882_v13  ;;  %v4062_v47 = vsel %vm1453_vm6, %v4059_v2, %v4061_v55  ;;  %v4214_v58 = vmax.f32 %v4182_v22, %v7548_v44  ;;  %v3523_v17 = vrot.slane %v3369_v26, 1  ;;  %v7622_v3 = vpop.f32.mrf.mxu1 }
 0x225   : > { %v4215_v7 = vmax.f32 %v4183_v57, %v7553_v21  ;;  %v3524_v28 = vrot.slane %v3370_v37, 1  ;;  %v7615_v53 = vmax.f32 %v3970_v38, %v4060_v10  ;;  %v3526_v27 = vrot.slane %v3371_v18, 1  ;;  %8152 = vst [vmem:[#allocation35_spill] sm:$0xff] %v7622_v3  ;;  %v7628_v10 = vpop.f32.mrf.mxu0 }
 0x226   : > { %v7617_v54 = vmax.f32 %v3971_v51, %v4062_v47  ;;  %v3703_v46 = vrot.slane %v3369_v26, 2  ;;  %v4246_v34 = vmax.f32 %v4214_v58, %v7580_v15  ;;  %v3704_v50 = vrot.slane %v3370_v37, 2  ;;  %v7631_v52 = vpop.f32.mrf.mxu1 }
 0x227   : > { %v4247_v32 = vmax.f32 %v4215_v7, %v7584_v16  ;;  %v3525_v48 = vsel %vm910_vm3, %v3523_v17, %v3524_v28  ;;  %v3527_v19 = vsel %vm910_vm3, %v3524_v28, %v3526_v27  ;;  %v3706_v55 = vrot.slane %v3371_v18, 2 }
 0x228   : > { %v3612_v2 = vmax.f32 %v3369_v26, %v3525_v48  ;;  %v3883_v13 = vrot.slane %v3369_v26, 3  ;;  %v4278_v22 = vmax.f32 %v4246_v34, %v7615_v53  ;;  %v3613_v38 = vmax.f32 %v3370_v37, %v3527_v19  ;;  %v3374_v48 = vld [vmem:[#allocation2 + $0x1c0] sm:$0xf] }
 0x229   : > { %v4279_v57 = vmax.f32 %v4247_v32, %v7617_v54  ;;  %v3705_v51 = vsel %vm1091_vm4, %v3703_v46, %v3704_v50  ;;  %v3707_v47 = vsel %vm1091_vm4, %v3704_v50, %v3706_v55  ;;  %v3884_v7 = vrot.slane %v3370_v37, 3 }
 0x22a   : > { %v3792_v58 = vmax.f32 %v3612_v2, %v3705_v51  ;;  %v3886_v17 = vrot.slane %v3371_v18, 3  ;;  %v3793_v5 = vmax.f32 %v3613_v38, %v3707_v47  ;;  %v4063_v28 = vrot.slane %v3369_v26, 4  ;;  %v7641_v26 = vpop.f32.mrf.mxu0  ;;  %v7648_v47 = vpop.f32.mrf.mxu1 }
 0x22b   : > { %v4298_v3 = vpack.c.bf16 %v4279_v57, %v4278_v22  ;;  %v4064_v27 = vrot.slane %v3370_v37, 4  ;;  %v3885_v34 = vsel %vm1272_vm5, %v3883_v13, %v3884_v7  ;;  %v4066_v19 = vrot.slane %v3371_v18, 4 }
 0x22c   : > { %v3887_v32 = vsel %vm1272_vm5, %v3884_v7, %v3886_v17  ;;  %v4184_v46 = vmax.f32 %v7517_v25, %v7548_v44  ;;  %v3972_v50 = vmax.f32 %v3792_v58, %v3885_v34  ;;  %v4185_v37 = vmax.f32 %v7519_v6, %v7553_v21 }
 0x22d   : > { %5359 = vmatprep.mubr.msk.bf16.mxu1 %vm273_vm1, %v4298_v3  ;;  %v3973_v2 = vmax.f32 %v3793_v5, %v3887_v32  ;;  %v4065_v55 = vsel %vm1453_vm6, %v4063_v28, %v4064_v27  ;;  %v4067_v22 = vsel %vm1453_vm6, %v4064_v27, %v4066_v19  ;;  %v3531_v57 = vrot.slane %v3374_v48, 1  ;;  %v3377_v5 = vld [vmem:[#allocation2 + $0x1d8] sm:$0xf]  ;;  %v7661_v19 = vpop.f32.mrf.mxu0 }
 0x22e   : > { %v4216_v13 = vmax.f32 %v4184_v46, %v7580_v15  ;;  %v3711_v18 = vrot.slane %v3374_v48, 2  ;;  %v4152_v38 = vmax.f32 %v3972_v50, %v4065_v55  ;;  %v4217_v25 = vmax.f32 %v4185_v37, %v7584_v16 }
 0x22f   : > { %v7645_v51 = vmax.f32 %v3973_v2, %v4067_v22  ;;  %v3891_v3 = vrot.slane %v3374_v48, 3  ;;  %v3532_v6 = vsel %vm910_vm3, %v7333_v61, %v3531_v57  ;;  %v4071_v17 = vrot.slane %v3374_v48, 4 }
 0x230   : > { %v4248_v58 = vmax.f32 %v4216_v13, %v7615_v53  ;;  %v3712_v7 = vsel %vm1091_vm4, %v7346_v11, %v3711_v18  ;;  %v4249_v28 = vmax.f32 %v4217_v25, %v7617_v54  ;;  %v3615_v27 = vmax.f32 %v7316_v62, %v3532_v6  ;;  %v7675_v25 = vpop.f32.mrf.mxu0 }
 0x231   : > { %v3892_v34 = vsel %vm1272_vm5, %v7361_v56, %v3891_v3  ;;  %v4186_v32 = vmax.f32 %v7548_v44, %v7580_v15  ;;  %v4072_v61 = vsel %vm1453_vm6, %v7366_v43, %v4071_v17  ;;  %v4187_v11 = vmax.f32 %v7553_v21, %v7584_v16  ;;  %v7669_v56 = vpop.f32.mrf.mxu1 }
 0x232   : > { %v4280_v46 = vmax.f32 %v4248_v58, %v4152_v38  ;;  %v3536_v48 = vrot.slane %v3377_v5, 1  ;;  %v4281_v50 = vmax.f32 %v4249_v28, %v7645_v51  ;;  %v3795_v2 = vmax.f32 %v3615_v27, %v3712_v7 }
 0x233   : > { %v4218_v62 = vmax.f32 %v4186_v32, %v7615_v53  ;;  %v3716_v55 = vrot.slane %v3377_v5, 2  ;;  %v4219_v44 = vmax.f32 %v4187_v11, %v7617_v54  ;;  %v3896_v22 = vrot.slane %v3377_v5, 3 }
 0x234   : > { %v3537_v37 = vsel %vm910_vm3, %v7395_v40, %v3536_v48  ;;  %v4076_v13 = vrot.slane %v3377_v5, 4  ;;  %v4299_v43 = vpack.c.bf16 %v4281_v50, %v4280_v46  ;;  %v3975_v57 = vmax.f32 %v3795_v2, %v3892_v34 }
 0x235   : > { %v4250_v18 = vmax.f32 %v4218_v62, %v4152_v38  ;;  %v3617_v21 = vmax.f32 %v7374_v41, %v3537_v37  ;;  %v4251_v3 = vmax.f32 %v4219_v44, %v7645_v51  ;;  %v3717_v58 = vsel %vm1091_vm4, %v7400_v45, %v3716_v55  ;;  %v7686_v41 = vpop.f32.mrf.mxu1 }
 0x236   : > { %v3897_v6 = vsel %vm1272_vm5, %v7420_v9, %v3896_v22  ;;  %5360 = vmatmul.mubr.msk.bf16.gmra.mxu1 %vm273_vm1, %v4299_v43  ;;  %v4155_v40 = vmax.f32 %v3975_v57, %v4072_v61  ;;  %v4188_v17 = vmax.f32 %v7580_v15, %v7615_v53  ;;  %v4077_v28 = vsel %vm1453_vm6, %v7432_v1, %v4076_v13  ;;  %v7724_v1 = vpop.f32.mrf.mxu0 }
 0x237   : > { %v4282_v5 = vmax.f32 %v4250_v18, %v7391_v63  ;;  %v3797_v7 = vmax.f32 %v3617_v21, %v3717_v58  ;;  %v4189_v45 = vmax.f32 %v7584_v16, %v7617_v54  ;;  %v5583_v32 = vmov 0.0  }
 0x238   : > { %v4283_v27 = vmax.f32 %v4251_v3, %v4155_v40  ;;  %v4220_v34 = vmax.f32 %v4188_v17, %v4152_v38  ;;  %243 = vst.msk [vmem:[#allocation3 + $0x10] sm:$0xff] %vm240_vm7, %v5583_v32  ;;  %241 = vst.msk [vmem:[#allocation3] sm:$0xff] %vm240_vm7, %v5583_v32  ;;  %v7728_v38 = vpop.f32.mrf.mxu1  ;;  %v7732_v11 = vpop.f32.mrf.mxu0 }
 0x239   : > { %v3977_v9 = vmax.f32 %v3797_v7, %v3897_v6  ;;  %242 = vst.msk [vmem:[#allocation3 + $0x8] sm:$0xff] %vm240_vm7, %v5583_v32  ;;  %244 = vst.msk [vmem:[#allocation3 + $0x18] sm:$0xff] %vm240_vm7, %v5583_v32  ;;  %v4221_v15 = vmax.f32 %v4189_v45, %v7645_v51 }
 0x23a   : > { %245 = vst.msk [vmem:[#allocation3 + $0x20] sm:$0xff] %vm240_vm7, %v5583_v32  ;;  %246 = vst.msk [vmem:[#allocation3 + $0x28] sm:$0xff] %vm240_vm7, %v5583_v32  ;;  %v4300_v16 = vpack.c.bf16 %v4283_v27, %v4282_v5  ;;  %v4252_v54 = vmax.f32 %v4220_v34, %v7391_v63  ;;  %v7734_v50 = vpop.f32.mrf.mxu1  ;;  %v7737_v55 = vpop.f32.mrf.mxu0 }
 0x23b   : > { %247 = vst.msk [vmem:[#allocation3 + $0x30] sm:$0xff] %vm240_vm7, %v5583_v32  ;;  %248 = vst.msk [vmem:[#allocation3 + $0x38] sm:$0xff] %vm240_vm7, %v5583_v32  ;;  %v4157_v53 = vmax.f32 %v3977_v9, %v4077_v28  ;;  %v4253_v46 = vmax.f32 %v4221_v15, %v4155_v40 }
 0x23c   : > { %249 = vst.msk [vmem:[#allocation3 + $0x40] sm:$0xff] %vm240_vm7, %v5583_v32  ;;  %250 = vst.msk [vmem:[#allocation3 + $0x48] sm:$0xff] %vm240_vm7, %v5583_v32  ;;  %5363 = vmatprep.mubr.msk.bf16.mxu1 %vm273_vm1, %v4300_v16  ;;  %v4284_v61 = vmax.f32 %v4252_v54, %v7448_v12  ;;  %v7741_v44 = vpop.f32.mrf.mxu1  ;;  %v5303_v37 = vpop.f32.mrf.mxu0 }
 0x23d   : > { %251 = vst.msk [vmem:[#allocation3 + $0x50] sm:$0xff] %vm240_vm7, %v5583_v32  ;;  %252 = vst.msk [vmem:[#allocation3 + $0x58] sm:$0xff] %vm240_vm7, %v5583_v32  ;;  %v4285_v48 = vmax.f32 %v4253_v46, %v4157_v53  ;;  %v7762_v53 = vld [vmem:[%s8119_s3] ss:$0 sm:$0xff] }
 0x23e   : > { %253 = vst.msk [vmem:[#allocation3 + $0x60] sm:$0xff] %vm240_vm7, %v5583_v32  ;;  %254 = vst.msk [vmem:[#allocation3 + $0x68] sm:$0xff] %vm240_vm7, %v5583_v32  ;;  %v5337_v22 = vpop.f32.mrf.mxu1  ;;  %v3127_v12 = vpop.f32.mrf.mxu0 }
 0x23f   : > { %255 = vst.msk [vmem:[#allocation3 + $0x70] sm:$0xff] %vm240_vm7, %v5583_v32  ;;  %256 = vst.msk [vmem:[#allocation3 + $0x78] sm:$0xff] %vm240_vm7, %v5583_v32  ;;  %v4301_v2 = vpack.c.bf16 %v4285_v48, %v4284_v61  ;;  %v369_v62 = vld [vmem:[#allocation3 + $0x10] sm:$0xff]  ;;  %v367_v43 = vld [vmem:[#allocation3] sm:$0xff] }
 0x240   : > { %257 = vst.msk [vmem:[#allocation3 + $0x80] sm:$0xff] %vm240_vm7, %v5583_v32  ;;  %258 = vst.msk [vmem:[#allocation3 + $0x88] sm:$0xff] %vm240_vm7, %v5583_v32  ;;  %v695_v51 = vadd.f32 %v7203_v23, %v369_v62  ;;  %v4389_v13 = vpop.f32.mrf.mxu1  ;;  %v370_v57 = vld [vmem:[#allocation3 + $0x18] sm:$0xff]  ;;  %v368_v18 = vld [vmem:[#allocation3 + $0x8] sm:$0xff]  ;;  %v5304_v21 = vpop.f32.mrf.mxu0  ;;  %v693_v3 = vadd.f32 %v7221_v35, %v367_v43 }
 0x241   : > { %259 = vst.msk [vmem:[#allocation3 + $0x90] sm:$0xff] %vm240_vm7, %v5583_v32  ;;  %260 = vst.msk [vmem:[#allocation3 + $0x98] sm:$0xff] %vm240_vm7, %v5583_v32  ;;  %5364 = vmatmul.mubr.msk.bf16.gmra.mxu1 %vm273_vm1, %v4301_v2  ;;  %v696_v23 = vadd.f32 %v7238_v29, %v370_v57  ;;  %v694_v6 = vadd.f32 %v7257_v49, %v368_v18  ;;  %v7757_v49 = vld [vmem:[%s8118_s2] ss:$0 sm:$0xff] }
 0x242   : > { %261 = vst.msk [vmem:[#allocation3 + $0xa0] sm:$0xff] %vm240_vm7, %v5583_v32  ;;  %262 = vst.msk [vmem:[#allocation3 + $0xa8] sm:$0xff] %vm240_vm7, %v5583_v32  ;;  %v1994_v63 = vadd.f32 %v7212_v14, %v695_v51  ;;  %v5338_v58 = vpop.f32.mrf.mxu1  ;;  %v1992_v40 = vadd.f32 %v7230_v42, %v693_v3  ;;  %v3130_v14 = vpop.f32.mrf.mxu0  ;;  %v373_v42 = vld [vmem:[#allocation3 + $0x30] sm:$0xff]  ;;  %v374_v54 = vld [vmem:[#allocation3 + $0x38] sm:$0xff] }
 0x243   : > { %263 = vst.msk [vmem:[#allocation3 + $0xb0] sm:$0xff] %vm240_vm7, %v5583_v32  ;;  %264 = vst.msk [vmem:[#allocation3 + $0xb8] sm:$0xff] %vm240_vm7, %v5583_v32  ;;  %v1995_v5 = vadd.f32 %v7246_v36, %v696_v23  ;;  %v1993_v7 = vadd.f32 %v7266_v30, %v694_v6  ;;  %v699_v36 = vadd.f32 %v7275_v39, %v373_v42  ;;  %v371_v30 = vld [vmem:[#allocation3 + $0x20] sm:$0xff] }
 0x244   : > { %265 = vst.msk [vmem:[#allocation3 + $0xc0] sm:$0xff] %vm240_vm7, %v5583_v32  ;;  %266 = vst.msk [vmem:[#allocation3 + $0xc8] sm:$0xff] %vm240_vm7, %v5583_v32  ;;  %v3256_v17 = vadd.f32 %v5303_v37, %v1994_v63  ;;  %v3254_v28 = vadd.f32 %v3127_v12, %v1992_v40  ;;  %v4392_v45 = vpop.f32.mrf.mxu1  ;;  %v5307_v29 = vpop.f32.mrf.mxu0  ;;  %v697_v51 = vadd.f32 %v7291_v24, %v371_v30  ;;  %v372_v63 = vld [vmem:[#allocation3 + $0x28] sm:$0xff] }
 0x245   : > { %267 = vst.msk [vmem:[#allocation3 + $0xd0] sm:$0xff] %vm240_vm7, %v5583_v32  ;;  %268 = vst.msk [vmem:[#allocation3 + $0xd8] sm:$0xff] %vm240_vm7, %v5583_v32  ;;  %v3257_v27 = vadd.f32 %v5304_v21, %v1995_v5  ;;  %v3255_v9 = vadd.f32 %v3130_v14, %v1993_v7  ;;  %v1998_v37 = vadd.f32 %v7281_v20, %v699_v36 }
 0x246   : > { %269 = vst.msk [vmem:[#allocation3 + $0xe0] sm:$0xff] %vm240_vm7, %v5583_v32  ;;  %270 = vst.msk [vmem:[#allocation3 + $0xe8] sm:$0xff] %vm240_vm7, %v5583_v32  ;;  %v4518_v34 = vadd.f32 %v5337_v22, %v3256_v17  ;;  %v3143_v16 = vpop.f32.mrf.mxu0  ;;  %v1996_v21 = vadd.f32 %v7298_v31, %v697_v51 }
 0x247   : > { %271 = vst.msk [vmem:[#allocation3 + $0xf0] sm:$0xff] %vm240_vm7, %v5583_v32  ;;  %272 = vst.msk [vmem:[#allocation3 + $0xf8] sm:$0xff] %vm240_vm7, %v5583_v32  ;;  %v4516_v32 = vadd.f32 %v4389_v13, %v3254_v28  ;;  %v4519_v35 = vadd.f32 %v5338_v58, %v3257_v27  ;;  %v4517_v15 = vadd.f32 %v4392_v45, %v3255_v9 }
 0x248   : > { %4551 = vst.msk [vmem:[#allocation3 + $0x10] sm:$0xff] %vm240_vm7, %v4518_v34  ;;  %v700_v13 = vadd.f32 %v7307_v59, %v374_v54  ;;  %v5308_v43 = vpop.f32.mrf.mxu0  ;;  %v3260_v3 = vadd.f32 %v5307_v29, %v1998_v37  ;;  %v698_v58 = vadd.f32 %v7318_v33, %v372_v63  ;;  %v3258_v14 = vadd.f32 %v3143_v16, %v1996_v21 }
 0x249   : > { %4549 = vst.msk [vmem:[#allocation3] sm:$0xff] %vm240_vm7, %v4516_v32  ;;  %4552 = vst.msk [vmem:[#allocation3 + $0x18] sm:$0xff] %vm240_vm7, %v4519_v35 }
 0x24a   : > { %4550 = vst.msk [vmem:[#allocation3 + $0x8] sm:$0xff] %vm240_vm7, %v4517_v15  ;;  %v1999_v59 = vadd.f32 %v7313_v0, %v700_v13  ;;  %v3146_v17 = vpop.f32.mrf.mxu0  ;;  %v1997_v45 = vadd.f32 %v7328_v4, %v698_v58 }
 0x24c   : > { %v3261_v27 = vadd.f32 %v5308_v43, %v1999_v59  ;;  %v3259_v9 = vadd.f32 %v3146_v17, %v1997_v45  ;;  %v377_v59 = vld [vmem:[#allocation3 + $0x50] sm:$0xff] }
 0x24f   : > { %v4586_v46 = vld [vmem:[#allocation3 + $0x10] sm:$0xff] }
 0x250   : > { %v4584_v61 = vld [vmem:[#allocation3] sm:$0xff]  ;;  %v4625_v48 = vmul.f32 %v7757_v49, %v4586_v46  ;;  %v4587_v39 = vld [vmem:[#allocation3 + $0x18] sm:$0xff] }
 0x251   : > { %v4623_v2 = vmul.f32 %v7757_v49, %v4584_v61  ;;  %v4585_v62 = vld [vmem:[#allocation3 + $0x8] sm:$0xff]  ;;  %v4626_v22 = vmul.f32 %v7757_v49, %v4587_v39 }
 0x252   : > { %v4624_v12 = vmul.f32 %v7757_v49, %v4585_v62  ;;  %v7772_v57 = vadd.f32 %v7762_v53, %v4625_v48 }
 0x253   : > { %v7775_v18 = vadd.f32 %v7762_v53, %v4623_v2  ;;  %v7779_v24 = vadd.f32 %v7762_v53, %v4626_v22 }
 0x254   : > { %v7782_v20 = vadd.f32 %v7762_v53, %v4624_v12  ;;  %v5129_v23 = vmul.f32 -1.442695, %v7772_v57 }
 0x255   : > { %v5127_v6 = vmul.f32 -1.442695, %v7775_v18  ;;  %v5130_v5 = vmul.f32 -1.442695, %v7779_v24 }
 0x256   : > { %v5128_v31 = vmul.f32 -1.442695, %v7782_v20  ;;  %5429 = vpow2.f32 %v5129_v23  ;;  %v5311_v23 = vpop.f32.mrf.mxu0 }
 0x257   : > { %5431 = vpow2.f32 %v5127_v6 }
 0x258   : > { %5433 = vpow2.f32 %v5130_v5  ;;  %v375_v5 = vld [vmem:[#allocation3 + $0x40] sm:$0xff] }
 0x259   : > { %5435 = vpow2.f32 %v5128_v31  ;;  %v3159_v31 = vpop.f32.mrf.mxu0 }
 0x262   : > { %v5341_v40 = vpop.f32.mrf.mxu1 }
 0x263   : > { %v4522_v7 = vadd.f32 %v5341_v40, %v3260_v3  ;;  %v5430_v16 = vpop.eup %5429  ;;  %v703_v40 = vadd.f32 %v7340_v8, %v377_v59 }
 0x264   : > { %v4405_v28 = vpop.f32.mrf.mxu1  ;;  %v5432_v48 = vpop.eup %5431  ;;  %v4792_v2 = vadd.f32 1.0, %v5430_v16  ;;  %v8156_v16 = vld [vmem:[#allocation6_spill] sm:$0xff] }
 0x265   : > { %4555 = vst.msk [vmem:[#allocation3 + $0x30] sm:$0xff] %vm240_vm7, %v4522_v7  ;;  %v4520_v0 = vadd.f32 %v4405_v28, %v3258_v14  ;;  %v5434_v62 = vpop.eup %5433  ;;  %v4790_v51 = vadd.f32 1.0, %v5432_v48  ;;  %v378_v28 = vld [vmem:[#allocation3 + $0x58] sm:$0xff] }
 0x266   : > { %v5342_v33 = vpop.f32.mrf.mxu1  ;;  %v5436_v37 = vpop.eup %5435  ;;  %v4793_v22 = vadd.f32 1.0, %v5434_v62 }
 0x267   : > { %4553 = vst.msk [vmem:[#allocation3 + $0x20] sm:$0xff] %vm240_vm7, %v4520_v0  ;;  %v4523_v34 = vadd.f32 %v5342_v33, %v3261_v27  ;;  %v4791_v43 = vadd.f32 1.0, %v5436_v37  ;;  %v8153_v33 = vld [vmem:[#allocation5_spill] sm:$0xff] }
 0x268   : > { %v4408_v32 = vpop.f32.mrf.mxu1 }
 0x269   : > { %4556 = vst.msk [vmem:[#allocation3 + $0x38] sm:$0xff] %vm240_vm7, %v4523_v34  ;;  %v4521_v35 = vadd.f32 %v4408_v32, %v3259_v9  ;;  %v701_v9 = vadd.f32 %v8153_v33, %v375_v5  ;;  %v376_v34 = vld [vmem:[#allocation3 + $0x48] sm:$0xff]  ;;  %v8154_v32 = vld [vmem:[#allocation4_spill] sm:$0xff] }
 0x26b   : > { %4554 = vst.msk [vmem:[#allocation3 + $0x28] sm:$0xff] %vm240_vm7, %v4521_v35  ;;  %v2002_v35 = vadd.f32 %v8154_v32, %v703_v40 }
 0x26c   : > { %v4590_v15 = vld [vmem:[#allocation3 + $0x30] sm:$0xff] }
 0x26d   : > { %v4629_v4 = vmul.f32 %v7757_v49, %v4590_v15 }
 0x26e   : > { %v4588_v42 = vld [vmem:[#allocation3 + $0x20] sm:$0xff] }
 0x26f   : > { %v7797_v29 = vadd.f32 %v7762_v53, %v4629_v4  ;;  %v4627_v36 = vmul.f32 %v7757_v49, %v4588_v42  ;;  %v8155_v42 = vld [vmem:[#allocation7_spill] sm:$0xff] }
 0x270   : > { %v4591_v30 = vld [vmem:[#allocation3 + $0x38] sm:$0xff] }
 0x271   : > { %v5133_v54 = vmul.f32 -1.442695, %v7797_v29  ;;  %v7802_v46 = vadd.f32 %v7762_v53, %v4627_v36  ;;  %v4630_v61 = vmul.f32 %v7757_v49, %v4591_v30  ;;  %v704_v36 = vadd.f32 %v8155_v42, %v378_v28 }
 0x272   : > { %v4589_v39 = vld [vmem:[#allocation3 + $0x28] sm:$0xff] }
 0x273   : > { %5437 = vpow2.f32 %v5133_v54  ;;  %v7806_v63 = vadd.f32 %v7762_v53, %v4630_v61  ;;  %v5131_v12 = vmul.f32 -1.442695, %v7802_v46  ;;  %v4628_v13 = vmul.f32 %v7757_v49, %v4589_v39  ;;  %v8157_v39 = vld [vmem:[#allocation9_spill] sm:$0xff] }
 0x274   : > { %5439 = vrcp.f32 %v4792_v2  ;;  %v2000_v54 = vadd.f32 %v8156_v16, %v701_v9  ;;  %v3264_v61 = vadd.f32 %v5311_v23, %v2002_v35  ;;  %v702_v62 = vadd.f32 %v8157_v39, %v376_v34  ;;  %v8160_v39 = vld [vmem:[#allocation11_spill] sm:$0xff] }
 0x275   : > { %5441 = vrcp.f32 %v4790_v51  ;;  %v5134_v21 = vmul.f32 -1.442695, %v7806_v63  ;;  %v7812_v3 = vadd.f32 %v7762_v53, %v4628_v13  ;;  %v8158_v51 = vld [vmem:[#allocation8_spill] sm:$0xff] }
 0x276   : > { %5443 = vrcp.f32 %v4793_v22 }
 0x277   : > { %5445 = vrcp.f32 %v4791_v43  ;;  %v5132_v58 = vmul.f32 -1.442695, %v7812_v3 }
 0x278   : > { %5447 = vpow2.f32 %v5131_v12  ;;  %v3262_v12 = vadd.f32 %v3159_v31, %v2000_v54 }
 0x279   : > { %5449 = vpow2.f32 %v5134_v21 }
 0x27a   : > { %5451 = vpow2.f32 %v5132_v58  ;;  %v8159_v58 = vld [vmem:[#allocation10_spill] sm:$0xff] }
 0x27b   : > { %v2001_v59 = vadd.f32 %v8159_v58, %v702_v62  ;;  %v380_v58 = vld [vmem:[#allocation3 + $0x68] sm:$0xff] }
 0x280   : > { %v5438_v6 = vpop.eup %5437 }
 0x281   : > { %v5440_v14 = vpop.eup %5439  ;;  %v4796_v7 = vadd.f32 1.0, %v5438_v6 }
 0x282   : > { %v5442_v17 = vpop.eup %5441  ;;  %v4888_v45 = vmul.f32 %v5440_v14, %v7772_v57  ;;  %v5312_v57 = vpop.f32.mrf.mxu0 }
 0x283   : > { %v5444_v27 = vpop.eup %5443  ;;  %v4886_v0 = vmul.f32 %v5442_v17, %v7775_v18  ;;  %5453 = vrcp.f32 %v4796_v7 }
 0x284   : > { %v5446_v8 = vpop.eup %5445  ;;  %4920 = vst.msk [vmem:[%s7820_s12 + $0x10] sm:$0xff] %vm240_vm7, %v4888_v45  ;;  %v4889_v15 = vmul.f32 %v5444_v27, %v7779_v24  ;;  %v2003_v24 = vadd.f32 %v8158_v51, %v704_v36  ;;  %v3162_v43 = vpop.f32.mrf.mxu0  ;;  %v379_v51 = vld [vmem:[#allocation3 + $0x60] sm:$0xff] }
 0x285   : > { %v5448_v4 = vpop.eup %5447  ;;  %4918 = vst.msk [vmem:[%s7820_s12] sm:$0xff] %vm240_vm7, %v4886_v0  ;;  %v4887_v18 = vmul.f32 %v5446_v8, %v7782_v20  ;;  %v3263_v14 = vadd.f32 %v3162_v43, %v2001_v59  ;;  %v8161_v43 = vld [vmem:[#allocation13_spill] sm:$0xff]  ;;  %v8162_v59 = vld [vmem:[#allocation12_spill] sm:$0xff] }
 0x286   : > { %v5450_v30 = vpop.eup %5449  ;;  %4921 = vst.msk [vmem:[%s7820_s12 + $0x18] sm:$0xff] %vm240_vm7, %v4889_v15  ;;  %v4794_v48 = vadd.f32 1.0, %v5448_v4  ;;  %v3265_v23 = vadd.f32 %v5312_v57, %v2003_v24 }
 0x287   : > { %v5452_v2 = vpop.eup %5451  ;;  %4919 = vst.msk [vmem:[%s7820_s12 + $0x8] sm:$0xff] %vm240_vm7, %v4887_v18  ;;  %v4797_v37 = vadd.f32 1.0, %v5450_v30  ;;  %v5345_v22 = vpop.f32.mrf.mxu1 }
 0x288   : > { %5455 = vrcp.f32 %v4794_v48  ;;  %v4795_v13 = vadd.f32 1.0, %v5452_v2  ;;  %v4526_v20 = vadd.f32 %v5345_v22, %v3264_v61  ;;  %v381_v61 = vld [vmem:[#allocation3 + $0x70] sm:$0xff]  ;;  %v5315_v48 = vpop.f32.mrf.mxu0 }
 0x289   : > { %5457 = vrcp.f32 %v4797_v37  ;;  %v4421_v21 = vpop.f32.mrf.mxu1  ;;  %v707_v62 = vadd.f32 %v8160_v39, %v381_v61 }
 0x28a   : > { %5459 = vrcp.f32 %v4795_v13  ;;  %4559 = vst.msk [vmem:[#allocation3 + $0x50] sm:$0xff] %vm240_vm7, %v4526_v20  ;;  %v4524_v6 = vadd.f32 %v4421_v21, %v3262_v12  ;;  %v3175_v24 = vpop.f32.mrf.mxu0  ;;  %v382_v12 = vld [vmem:[#allocation3 + $0x78] sm:$0xff]  ;;  %v705_v21 = vadd.f32 %v8161_v43, %v379_v51 }
 0x28b   : > { %v5346_v40 = vpop.f32.mrf.mxu1 }
 0x28c   : > { %4557 = vst.msk [vmem:[#allocation3 + $0x40] sm:$0xff] %vm240_vm7, %v4524_v6  ;;  %v4527_v5 = vadd.f32 %v5346_v40, %v3265_v23  ;;  %v2006_v23 = vadd.f32 %v8162_v59, %v707_v62  ;;  %v5316_v6 = vpop.f32.mrf.mxu0 }
 0x28d   : > { %v4424_v31 = vpop.f32.mrf.mxu1 }
 0x28e   : > { %4560 = vst.msk [vmem:[#allocation3 + $0x58] sm:$0xff] %vm240_vm7, %v4527_v5  ;;  %v4525_v7 = vadd.f32 %v4424_v31, %v3263_v14  ;;  %v8163_v14 = vld [vmem:[#allocation15_spill] sm:$0xff]  ;;  %v8164_v31 = vld [vmem:[#allocation14_spill] sm:$0xff] }
 0x28f   : > { %v708_v5 = vadd.f32 %v8163_v14, %v382_v12 }
 0x290   : > { %v5454_v17 = vpop.eup %5453  ;;  %4558 = vst.msk [vmem:[#allocation3 + $0x48] sm:$0xff] %vm240_vm7, %v4525_v7  ;;  %v2004_v7 = vadd.f32 %v8164_v31, %v705_v21 }
 0x291   : > { %v4892_v28 = vmul.f32 %v5454_v17, %v7797_v29  ;;  %v4594_v45 = vld [vmem:[#allocation3 + $0x50] sm:$0xff]  ;;  %v3268_v17 = vadd.f32 %v5315_v48, %v2006_v23 }
 0x292   : > { %v4633_v27 = vmul.f32 %v7757_v49, %v4594_v45  ;;  %v8165_v45 = vld [vmem:[#allocation17_spill] sm:$0xff] }
 0x293   : > { %4924 = vst.msk [vmem:[%s7820_s12 + $0x30] sm:$0xff] %vm240_vm7, %v4892_v28  ;;  %v4592_v0 = vld [vmem:[#allocation3 + $0x40] sm:$0xff] }
 0x294   : > { %v7850_v8 = vadd.f32 %v7762_v53, %v4633_v27  ;;  %v4631_v33 = vmul.f32 %v7757_v49, %v4592_v0  ;;  %v706_v27 = vadd.f32 %v8165_v45, %v380_v58 }
 0x295   : > { %v5456_v9 = vpop.eup %5455  ;;  %v4595_v34 = vld [vmem:[#allocation3 + $0x58] sm:$0xff] }
 0x296   : > { %v5458_v32 = vpop.eup %5457  ;;  %v4890_v35 = vmul.f32 %v5456_v9, %v7802_v46  ;;  %v5137_v29 = vmul.f32 -1.442695, %v7850_v8  ;;  %v7856_v15 = vadd.f32 %v7762_v53, %v4631_v33  ;;  %v4634_v4 = vmul.f32 %v7757_v49, %v4595_v34  ;;  %v8166_v33 = vld [vmem:[#allocation16_spill] sm:$0xff] }
 0x297   : > { %v5460_v42 = vpop.eup %5459  ;;  %v4893_v36 = vmul.f32 %v5458_v32, %v7806_v63  ;;  %v4593_v57 = vld [vmem:[#allocation3 + $0x48] sm:$0xff]  ;;  %v2007_v9 = vadd.f32 %v8166_v33, %v708_v5  ;;  %v3266_v34 = vadd.f32 %v3175_v24, %v2004_v7 }
 0x298   : > { %4922 = vst.msk [vmem:[%s7820_s12 + $0x20] sm:$0xff] %vm240_vm7, %v4890_v35  ;;  %v4891_v18 = vmul.f32 %v5460_v42, %v7812_v3  ;;  %5461 = vpow2.f32 %v5137_v29  ;;  %v5135_v30 = vmul.f32 -1.442695, %v7856_v15  ;;  %v7865_v46 = vadd.f32 %v7762_v53, %v4634_v4  ;;  %v3178_v29 = vpop.f32.mrf.mxu0  ;;  %v8167_v42 = vld [vmem:[#allocation18_spill] sm:$0xff] }
 0x299   : > { %4925 = vst.msk [vmem:[%s7820_s12 + $0x38] sm:$0xff] %vm240_vm7, %v4893_v36  ;;  %v4632_v16 = vmul.f32 %v7757_v49, %v4593_v57  ;;  %v2005_v36 = vadd.f32 %v8167_v42, %v706_v27  ;;  %v3269_v57 = vadd.f32 %v5316_v6, %v2007_v9  ;;  %v383_v27 = vld [vmem:[#allocation3 + $0x80] sm:$0xff]  ;;  %v384_v42 = vld [vmem:[#allocation3 + $0x88] sm:$0xff] }
 0x29a   : > { %4923 = vst.msk [vmem:[%s7820_s12 + $0x28] sm:$0xff] %vm240_vm7, %v4891_v18  ;;  %5463 = vpow2.f32 %v5135_v30  ;;  %v5138_v63 = vmul.f32 -1.442695, %v7865_v46  ;;  %v5319_v7 = vpop.f32.mrf.mxu0 }
 0x29b   : > { %v7874_v54 = vadd.f32 %v7762_v53, %v4632_v16  ;;  %v3267_v16 = vadd.f32 %v3178_v29, %v2005_v36  ;;  %v8169_v29 = vld [vmem:[#allocation21_spill] sm:$0xff]  ;;  %v8170_v36 = vld [vmem:[#allocation20_spill] sm:$0xff] }
 0x29c   : > { %5465 = vpow2.f32 %v5138_v63 }
 0x29d   : > { %v5136_v3 = vmul.f32 -1.442695, %v7874_v54 }
 0x29f   : > { %5467 = vpow2.f32 %v5136_v3 }
 0x2a5   : > { %v5462_v2 = vpop.eup %5461 }
 0x2a6   : > { %v4800_v37 = vadd.f32 1.0, %v5462_v2 }
 0x2a7   : > { %v5464_v22 = vpop.eup %5463 }
 0x2a8   : > { %5469 = vrcp.f32 %v4800_v37  ;;  %v4798_v13 = vadd.f32 1.0, %v5464_v22 }
 0x2a9   : > { %v5466_v20 = vpop.eup %5465 }
 0x2aa   : > { %5471 = vrcp.f32 %v4798_v13  ;;  %v4801_v40 = vadd.f32 1.0, %v5466_v20 }
 0x2ac   : > { %v5468_v28 = vpop.eup %5467  ;;  %5473 = vrcp.f32 %v4801_v40  ;;  %v5349_v0 = vpop.f32.mrf.mxu1 }
 0x2ad   : > { %v4799_v32 = vadd.f32 1.0, %v5468_v28  ;;  %v4530_v35 = vadd.f32 %v5349_v0, %v3268_v17  ;;  %v8168_v28 = vld [vmem:[#allocation19_spill] sm:$0xff]  ;;  %v3191_v0 = vpop.f32.mrf.mxu0 }
 0x2ae   : > { %v4437_v4 = vpop.f32.mrf.mxu1 }
 0x2af   : > { %5475 = vrcp.f32 %v4799_v32  ;;  %4563 = vst.msk [vmem:[#allocation3 + $0x70] sm:$0xff] %vm240_vm7, %v4530_v35  ;;  %v4528_v18 = vadd.f32 %v4437_v4, %v3266_v34  ;;  %v386_v34 = vld [vmem:[#allocation3 + $0x98] sm:$0xff]  ;;  %v709_v4 = vadd.f32 %v8169_v29, %v383_v27 }
 0x2b0   : > { %v5350_v30 = vpop.f32.mrf.mxu1 }
 0x2b1   : > { %4561 = vst.msk [vmem:[#allocation3 + $0x60] sm:$0xff] %vm240_vm7, %v4528_v18  ;;  %v4531_v63 = vadd.f32 %v5350_v30, %v3269_v57  ;;  %v5320_v18 = vpop.f32.mrf.mxu0 }
 0x2b2   : > { %v4440_v3 = vpop.f32.mrf.mxu1 }
 0x2b3   : > { %4564 = vst.msk [vmem:[#allocation3 + $0x78] sm:$0xff] %vm240_vm7, %v4531_v63  ;;  %v4529_v61 = vadd.f32 %v4440_v3, %v3267_v16  ;;  %v8171_v16 = vld [vmem:[#allocation23_spill] sm:$0xff]  ;;  %v8172_v3 = vld [vmem:[#allocation22_spill] sm:$0xff] }
 0x2b4   : > { %v712_v63 = vadd.f32 %v8171_v16, %v386_v34  ;;  %v8178_v16 = vld [vmem:[#allocation28_spill] sm:$0xff] }
 0x2b5   : > { %v5470_v48 = vpop.eup %5469  ;;  %4562 = vst.msk [vmem:[#allocation3 + $0x68] sm:$0xff] %vm240_vm7, %v4529_v61  ;;  %v2008_v61 = vadd.f32 %v8172_v3, %v709_v4 }
 0x2b6   : > { %v4896_v2 = vmul.f32 %v5470_v48, %v7850_v8  ;;  %v4598_v39 = vld [vmem:[#allocation3 + $0x70] sm:$0xff] }
 0x2b7   : > { %v5472_v62 = vpop.eup %5471  ;;  %v4637_v51 = vmul.f32 %v7757_v49, %v4598_v39  ;;  %v8173_v39 = vld [vmem:[#allocation25_spill] sm:$0xff] }
 0x2b8   : > { %4928 = vst.msk [vmem:[%s7820_s12 + $0x50] sm:$0xff] %vm240_vm7, %v4896_v2  ;;  %v4894_v24 = vmul.f32 %v5472_v62, %v7856_v15  ;;  %v4596_v37 = vld [vmem:[#allocation3 + $0x60] sm:$0xff]  ;;  %v710_v62 = vadd.f32 %v8173_v39, %v384_v42 }
 0x2b9   : > { %v5474_v22 = vpop.eup %5473  ;;  %v7895_v12 = vadd.f32 %v7762_v53, %v4637_v51  ;;  %v4635_v13 = vmul.f32 %v7757_v49, %v4596_v37 }
 0x2ba   : > { %4926 = vst.msk [vmem:[%s7820_s12 + $0x40] sm:$0xff] %vm240_vm7, %v4894_v24  ;;  %v4897_v8 = vmul.f32 %v5474_v22, %v7865_v46  ;;  %v4599_v20 = vld [vmem:[#allocation3 + $0x78] sm:$0xff]  ;;  %v8174_v24 = vld [vmem:[#allocation24_spill] sm:$0xff]  ;;  %v3270_v22 = vadd.f32 %v3191_v0, %v2008_v61 }
 0x2bb   : > { %v5141_v43 = vmul.f32 -1.442695, %v7895_v12  ;;  %v7903_v21 = vadd.f32 %v7762_v53, %v4635_v13  ;;  %v4638_v15 = vmul.f32 %v7757_v49, %v4599_v20  ;;  %v2011_v37 = vadd.f32 %v8174_v24, %v712_v63  ;;  %v3194_v20 = vpop.f32.mrf.mxu0  ;;  %v8179_v24 = vld [vmem:[#allocation31_spill] sm:$0xff] }
 0x2bc   : > { %v5476_v58 = vpop.eup %5475  ;;  %4929 = vst.msk [vmem:[%s7820_s12 + $0x58] sm:$0xff] %vm240_vm7, %v4897_v8  ;;  %v4597_v59 = vld [vmem:[#allocation3 + $0x68] sm:$0xff] }
 0x2bd   : > { %v4895_v23 = vmul.f32 %v5476_v58, %v7874_v54  ;;  %5477 = vpow2.f32 %v5141_v43  ;;  %v5139_v6 = vmul.f32 -1.442695, %v7903_v21  ;;  %v7911_v40 = vadd.f32 %v7762_v53, %v4638_v15  ;;  %v385_v54 = vld [vmem:[#allocation3 + $0x90] sm:$0xff] }
 0x2be   : > { %v4636_v46 = vmul.f32 %v7757_v49, %v4597_v59  ;;  %v711_v45 = vadd.f32 %v8168_v28, %v385_v54  ;;  %v8175_v15 = vld [vmem:[#allocation26_spill] sm:$0xff]  ;;  %v3273_v59 = vadd.f32 %v5320_v18, %v2011_v37 }
 0x2bf   : > { %4927 = vst.msk [vmem:[%s7820_s12 + $0x48] sm:$0xff] %vm240_vm7, %v4895_v23  ;;  %5479 = vpow2.f32 %v5139_v6  ;;  %v5142_v14 = vmul.f32 -1.442695, %v7911_v40  ;;  %v2009_v58 = vadd.f32 %v8175_v15, %v710_v62 }
 0x2c0   : > { %v7918_v5 = vadd.f32 %v7762_v53, %v4636_v46  ;;  %v2010_v57 = vadd.f32 %v8170_v36, %v711_v45  ;;  %v8176_v45 = vld [vmem:[#allocation27_spill] sm:$0xff] }
 0x2c1   : > { %5481 = vpow2.f32 %v5142_v14  ;;  %v3271_v46 = vadd.f32 %v3194_v20, %v2009_v58  ;;  %v390_v36 = vld [vmem:[#allocation3 + $0xb8] sm:$0xff] }
 0x2c2   : > { %v5140_v31 = vmul.f32 -1.442695, %v7918_v5  ;;  %v3272_v48 = vadd.f32 %v5319_v7, %v2010_v57  ;;  %v389_v7 = vld [vmem:[#allocation3 + $0xb0] sm:$0xff]  ;;  %v716_v37 = vadd.f32 %v8179_v24, %v390_v36 }
 0x2c3   : > { %v715_v27 = vadd.f32 %v8176_v45, %v389_v7 }
 0x2c4   : > { %5483 = vpow2.f32 %v5140_v31  ;;  %v5323_v31 = vpop.f32.mrf.mxu0 }
 0x2c5   : > { %v2014_v63 = vadd.f32 %v8178_v16, %v715_v27  ;;  %v8183_v16 = vld [vmem:[#allocation34_spill] sm:$0xff] }
 0x2c6   : > { %v3207_v0 = vpop.f32.mrf.mxu0 }
 0x2c8   : > { %v5324_v3 = vpop.f32.mrf.mxu0 }
 0x2ca   : > { %v5478_v17 = vpop.eup %5477 }
 0x2cb   : > { %v4804_v33 = vadd.f32 1.0, %v5478_v17 }
 0x2cc   : > { %v5480_v9 = vpop.eup %5479 }
 0x2cd   : > { %5485 = vrcp.f32 %v4804_v33  ;;  %v4802_v32 = vadd.f32 1.0, %v5480_v9 }
 0x2ce   : > { %v5482_v35 = vpop.eup %5481 }
 0x2cf   : > { %5487 = vrcp.f32 %v4802_v32  ;;  %v4805_v30 = vadd.f32 1.0, %v5482_v35  ;;  %v387_v32 = vld [vmem:[#allocation3 + $0xa0] sm:$0xff] }
 0x2d1   : > { %v5484_v2 = vpop.eup %5483  ;;  %5489 = vrcp.f32 %v4805_v30  ;;  %v5353_v51 = vpop.f32.mrf.mxu1  ;;  %v8177_v30 = vld [vmem:[#allocation29_spill] sm:$0xff] }
 0x2d2   : > { %v4803_v13 = vadd.f32 1.0, %v5484_v2  ;;  %v4534_v8 = vadd.f32 %v5353_v51, %v3272_v48 }
 0x2d3   : > { %v4453_v43 = vpop.f32.mrf.mxu1 }
 0x2d4   : > { %5491 = vrcp.f32 %v4803_v13  ;;  %4567 = vst.msk [vmem:[#allocation3 + $0x90] sm:$0xff] %vm240_vm7, %v4534_v8  ;;  %v4532_v23 = vadd.f32 %v4453_v43, %v3270_v22  ;;  %v8180_v22 = vld [vmem:[#allocation30_spill] sm:$0xff]  ;;  %v3276_v8 = vadd.f32 %v5323_v31, %v2014_v63 }
 0x2d5   : > { %v5354_v6 = vpop.f32.mrf.mxu1 }
 0x2d6   : > { %4565 = vst.msk [vmem:[#allocation3 + $0x80] sm:$0xff] %vm240_vm7, %v4532_v23  ;;  %v4535_v14 = vadd.f32 %v5354_v6, %v3273_v59  ;;  %v8181_v59 = vld [vmem:[#allocation32_spill] sm:$0xff]  ;;  %v3210_v6 = vpop.f32.mrf.mxu0 }
 0x2d7   : > { %v4456_v54 = vpop.f32.mrf.mxu1  ;;  %v2015_v23 = vadd.f32 %v8181_v59, %v716_v37 }
 0x2d8   : > { %4568 = vst.msk [vmem:[#allocation3 + $0x98] sm:$0xff] %vm240_vm7, %v4535_v14  ;;  %v4533_v17 = vadd.f32 %v4456_v54, %v3271_v46 }
 0x2da   : > { %v5486_v28 = vpop.eup %5485  ;;  %4566 = vst.msk [vmem:[#allocation3 + $0x88] sm:$0xff] %vm240_vm7, %v4533_v17 }
 0x2db   : > { %v4900_v33 = vmul.f32 %v5486_v28, %v7895_v12  ;;  %v4602_v9 = vld [vmem:[#allocation3 + $0x90] sm:$0xff]  ;;  %v713_v12 = vadd.f32 %v8177_v30, %v387_v32  ;;  %v8182_v28 = vld [vmem:[#allocation33_spill] sm:$0xff] }
 0x2dc   : > { %v5488_v34 = vpop.eup %5487  ;;  %v4641_v35 = vmul.f32 %v7757_v49, %v4602_v9 }
 0x2dd   : > { %4932 = vst.msk [vmem:[%s7820_s12 + $0x70] sm:$0xff] %vm240_vm7, %v4900_v33  ;;  %v4898_v29 = vmul.f32 %v5488_v34, %v7903_v21  ;;  %v4600_v4 = vld [vmem:[#allocation3 + $0x80] sm:$0xff]  ;;  %v388_v21 = vld [vmem:[#allocation3 + $0xa8] sm:$0xff]  ;;  %v2012_v13 = vadd.f32 %v8180_v22, %v713_v12  ;;  %v5327_v33 = vpop.f32.mrf.mxu0 }
 0x2de   : > { %v5490_v42 = vpop.eup %5489  ;;  %v7940_v57 = vadd.f32 %v7762_v53, %v4641_v35  ;;  %v4639_v18 = vmul.f32 %v7757_v49, %v4600_v4  ;;  %v714_v58 = vadd.f32 %v7598_v60, %v388_v21  ;;  %v3277_v60 = vadd.f32 %v5324_v3, %v2015_v23  ;;  %v392_v22 = vld [vmem:[#allocation3 + $0xc8] sm:$0xff] }
 0x2df   : > { %4930 = vst.msk [vmem:[%s7820_s12 + $0x60] sm:$0xff] %vm240_vm7, %v4898_v29  ;;  %v4901_v61 = vmul.f32 %v5490_v42, %v7911_v40  ;;  %v4603_v48 = vld [vmem:[#allocation3 + $0x98] sm:$0xff]  ;;  %v3274_v31 = vadd.f32 %v3207_v0, %v2012_v13  ;;  %v3223_v4 = vpop.f32.mrf.mxu0  ;;  %v393_v42 = vld [vmem:[#allocation3 + $0xd0] sm:$0xff] }
 0x2e0   : > { %v5145_v2 = vmul.f32 -1.442695, %v7940_v57  ;;  %v7950_v39 = vadd.f32 %v7762_v53, %v4639_v18  ;;  %v4642_v62 = vmul.f32 %v7757_v49, %v4603_v48  ;;  %v2013_v45 = vadd.f32 %v8182_v28, %v714_v58  ;;  %v391_v18 = vld [vmem:[#allocation3 + $0xc0] sm:$0xff]  ;;  %v394_v48 = vld [vmem:[#allocation3 + $0xd8] sm:$0xff] }
 0x2e1   : > { %v5492_v51 = vpop.eup %5491  ;;  %4933 = vst.msk [vmem:[%s7820_s12 + $0x78] sm:$0xff] %vm240_vm7, %v4901_v61  ;;  %v4601_v20 = vld [vmem:[#allocation3 + $0x88] sm:$0xff]  ;;  %v719_v63 = vadd.f32 %v8183_v16, %v393_v42  ;;  %v5328_v3 = vpop.f32.mrf.mxu0  ;;  %v717_v24 = vadd.f32 %v7628_v10, %v391_v18  ;;  %v8184_v58 = vld [vmem:[#allocation35_spill] sm:$0xff]  ;;  %v395_v18 = vld [vmem:[#allocation3 + $0xe0] sm:$0xff] }
 0x2e2   : > { %v4899_v40 = vmul.f32 %v5492_v51, %v7918_v5  ;;  %5493 = vpow2.f32 %v5145_v2  ;;  %v5143_v43 = vmul.f32 -1.442695, %v7950_v39  ;;  %v7960_v15 = vadd.f32 %v7762_v53, %v4642_v62 }
 0x2e3   : > { %v4640_v46 = vmul.f32 %v7757_v49, %v4601_v20  ;;  %v3275_v34 = vadd.f32 %v3210_v6, %v2013_v45  ;;  %v2018_v59 = vadd.f32 %v8184_v58, %v719_v63  ;;  %v2016_v23 = vadd.f32 %v7631_v52, %v717_v24  ;;  %v3226_v6 = vpop.f32.mrf.mxu0 }
 0x2e4   : > { %v5357_v14 = vpop.f32.mrf.mxu1  ;;  %4931 = vst.msk [vmem:[%s7820_s12 + $0x68] sm:$0xff] %vm240_vm7, %v4899_v40  ;;  %5495 = vpow2.f32 %v5143_v43  ;;  %v5146_v5 = vmul.f32 -1.442695, %v7960_v15  ;;  %v720_v43 = vadd.f32 %v7641_v26, %v394_v48  ;;  %v396_v48 = vld [vmem:[#allocation3 + $0xe8] sm:$0xff] }
 0x2e5   : > { %v4538_v54 = vadd.f32 %v5357_v14, %v3276_v8  ;;  %v7969_v7 = vadd.f32 %v7762_v53, %v4640_v46  ;;  %v3278_v45 = vadd.f32 %v3223_v4, %v2016_v23 }
 0x2e6   : > { %v4469_v17 = vpop.f32.mrf.mxu1  ;;  %5497 = vpow2.f32 %v5146_v5  ;;  %v2019_v52 = vadd.f32 %v7648_v47, %v720_v43 }
 0x2e7   : > { %4571 = vst.msk [vmem:[#allocation3 + $0xb0] sm:$0xff] %vm240_vm7, %v4538_v54  ;;  %v4536_v27 = vadd.f32 %v4469_v17, %v3274_v31  ;;  %v5144_v0 = vmul.f32 -1.442695, %v7969_v7  ;;  %v718_v54 = vadd.f32 %v7661_v19, %v392_v22  ;;  %v3280_v17 = vadd.f32 %v5327_v33, %v2018_v59 }
 0x2e8   : > { %v5358_v9 = vpop.f32.mrf.mxu1  ;;  %v3281_v42 = vadd.f32 %v5328_v3, %v2019_v52  ;;  %v721_v3 = vadd.f32 %v7724_v1, %v395_v18 }
 0x2e9   : > { %4569 = vst.msk [vmem:[#allocation3 + $0xa0] sm:$0xff] %vm240_vm7, %v4536_v27  ;;  %v4539_v32 = vadd.f32 %v5358_v9, %v3277_v60  ;;  %5499 = vpow2.f32 %v5144_v0  ;;  %v397_v0 = vld [vmem:[#allocation3 + $0xf0] sm:$0xff]  ;;  %v5331_v9 = vpop.f32.mrf.mxu0 }
 0x2ea   : > { %v4472_v35 = vpop.f32.mrf.mxu1  ;;  %v723_v4 = vadd.f32 %v7675_v25, %v397_v0  ;;  %v2020_v24 = vadd.f32 %v7728_v38, %v721_v3 }
 0x2eb   : > { %4572 = vst.msk [vmem:[#allocation3 + $0xb8] sm:$0xff] %vm240_vm7, %v4539_v32  ;;  %v4537_v29 = vadd.f32 %v4472_v35, %v3275_v34 }
 0x2ed   : > { %4570 = vst.msk [vmem:[#allocation3 + $0xa8] sm:$0xff] %vm240_vm7, %v4537_v29  ;;  %v2017_v29 = vadd.f32 %v7669_v56, %v718_v54 }
 0x2ee   : > { %v4606_v36 = vld [vmem:[#allocation3 + $0xb0] sm:$0xff] }
 0x2ef   : > { %v4645_v30 = vmul.f32 %v7757_v49, %v4606_v36  ;;  %v5494_v12 = vpop.eup %5493 }
 0x2f0   : > { %v4604_v61 = vld [vmem:[#allocation3 + $0xa0] sm:$0xff]  ;;  %v4808_v21 = vadd.f32 1.0, %v5494_v12  ;;  %v3239_v12 = vpop.f32.mrf.mxu0 }
 0x2f1   : > { %v7980_v2 = vadd.f32 %v7762_v53, %v4645_v30  ;;  %v4643_v62 = vmul.f32 %v7757_v49, %v4604_v61  ;;  %v5496_v51 = vpop.eup %5495  ;;  %v3279_v30 = vadd.f32 %v3226_v6, %v2017_v29  ;;  %v398_v61 = vld [vmem:[#allocation3 + $0xf8] sm:$0xff]  ;;  %v3282_v59 = vadd.f32 %v3239_v12, %v2020_v24 }
 0x2f2   : > { %v4607_v37 = vld [vmem:[#allocation3 + $0xb8] sm:$0xff]  ;;  %5501 = vrcp.f32 %v4808_v21  ;;  %v4806_v13 = vadd.f32 1.0, %v5496_v51  ;;  %v2022_v21 = vadd.f32 %v7686_v41, %v723_v4  ;;  %v724_v51 = vadd.f32 %v7732_v11, %v398_v61 }
 0x2f3   : > { %v5149_v8 = vmul.f32 -1.442695, %v7980_v2  ;;  %v7986_v20 = vadd.f32 %v7762_v53, %v4643_v62  ;;  %v5498_v40 = vpop.eup %5497  ;;  %v4646_v46 = vmul.f32 %v7757_v49, %v4607_v37  ;;  %v5332_v62 = vpop.f32.mrf.mxu0 }
 0x2f4   : > { %v4605_v10 = vld [vmem:[#allocation3 + $0xa8] sm:$0xff]  ;;  %5503 = vrcp.f32 %v4806_v13  ;;  %v4809_v14 = vadd.f32 1.0, %v5498_v40  ;;  %v3284_v37 = vadd.f32 %v5331_v9, %v2022_v21  ;;  %v722_v40 = vadd.f32 %v7737_v55, %v396_v48 }
 0x2f5   : > { %v5147_v31 = vmul.f32 -1.442695, %v7986_v20  ;;  %v4644_v5 = vmul.f32 %v7757_v49, %v4605_v10  ;;  %5505 = vpow2.f32 %v5149_v8  ;;  %v7996_v26 = vadd.f32 %v7762_v53, %v4646_v46 }
 0x2f6   : > { %v5500_v28 = vpop.eup %5499  ;;  %5507 = vrcp.f32 %v4809_v14  ;;  %v5361_v27 = vpop.f32.mrf.mxu1  ;;  %v2023_v58 = vadd.f32 %v7734_v50, %v724_v51  ;;  %v2021_v50 = vadd.f32 %v7741_v44, %v722_v40 }
 0x2f7   : > { %v8000_v60 = vadd.f32 %v7762_v53, %v4644_v5  ;;  %v4807_v34 = vadd.f32 1.0, %v5500_v28  ;;  %5509 = vpow2.f32 %v5147_v31  ;;  %v5150_v19 = vmul.f32 -1.442695, %v7996_v26 }
 0x2f8   : > { %v4542_v33 = vadd.f32 %v5361_v27, %v3280_v17  ;;  %v4485_v35 = vpop.f32.mrf.mxu1  ;;  %v3285_v5 = vadd.f32 %v5332_v62, %v2023_v58 }
 0x2f9   : > { %v5148_v32 = vmul.f32 -1.442695, %v8000_v60  ;;  %5511 = vrcp.f32 %v4807_v34  ;;  %v4540_v47 = vadd.f32 %v4485_v35, %v3278_v45 }
 0x2fa   : > { %4575 = vst.msk [vmem:[#allocation3 + $0xd0] sm:$0xff] %vm240_vm7, %v4542_v33  ;;  %5513 = vpow2.f32 %v5150_v19  ;;  %v5362_v36 = vpop.f32.mrf.mxu1 }
 0x2fb   : > { %5515 = vpow2.f32 %v5148_v32  ;;  %4573 = vst.msk [vmem:[#allocation3 + $0xc0] sm:$0xff] %vm240_vm7, %v4540_v47  ;;  %v4543_v16 = vadd.f32 %v5362_v36, %v3281_v42 }
 0x2fc   : > { %v4488_v63 = vpop.f32.mrf.mxu1 }
 0x2fd   : > { %4576 = vst.msk [vmem:[#allocation3 + $0xd8] sm:$0xff] %vm240_vm7, %v4543_v16  ;;  %v4541_v56 = vadd.f32 %v4488_v63, %v3279_v30 }
 0x2ff   : > { %v5502_v25 = vpop.eup %5501  ;;  %4574 = vst.msk [vmem:[#allocation3 + $0xc8] sm:$0xff] %vm240_vm7, %v4541_v56 }
 0x300   : > { %v4904_v22 = vmul.f32 %v5502_v25, %v7940_v57  ;;  %v3242_v57 = vpop.f32.mrf.mxu0 }
 0x301   : > { %v4610_v13 = vld [vmem:[#allocation3 + $0xd0] sm:$0xff]  ;;  %v5504_v8 = vpop.eup %5503  ;;  %v5365_v43 = vpop.f32.mrf.mxu1  ;;  %v3283_v9 = vadd.f32 %v3242_v57, %v2021_v50 }
 0x302   : > { %v4649_v1 = vmul.f32 %v7757_v49, %v4610_v13  ;;  %v5506_v41 = vpop.eup %5505  ;;  %4936 = vst.msk [vmem:[%s7820_s12 + $0x90] sm:$0xff] %vm240_vm7, %v4904_v22  ;;  %v4902_v11 = vmul.f32 %v5504_v8, %v7950_v39  ;;  %v4608_v38 = vld [vmem:[#allocation3 + $0xc0] sm:$0xff]  ;;  %v4546_v23 = vadd.f32 %v5365_v43, %v3284_v37 }
 0x303   : > { %v5508_v6 = vpop.eup %5507  ;;  %v4812_v46 = vadd.f32 1.0, %v5506_v41  ;;  %v4647_v55 = vmul.f32 %v7757_v49, %v4608_v38  ;;  %v4501_v14 = vpop.f32.mrf.mxu1  ;;  %v5557_v43 = vld [vmem:[%s8119_s3] ss:$0 sm:$0xff] }
 0x304   : > { %v8022_v10 = vadd.f32 %v7762_v53, %v4649_v1  ;;  %v5510_v31 = vpop.eup %5509  ;;  %4934 = vst.msk [vmem:[%s7820_s12 + $0x80] sm:$0xff] %vm240_vm7, %v4902_v11  ;;  %v4905_v39 = vmul.f32 %v5508_v6, %v7960_v15  ;;  %v4611_v54 = vld [vmem:[#allocation3 + $0xd8] sm:$0xff]  ;;  %4579 = vst.msk [vmem:[#allocation3 + $0xf0] sm:$0xff] %vm240_vm7, %v4546_v23  ;;  %v4544_v17 = vadd.f32 %v4501_v14, %v3282_v59 }
 0x305   : > { %5517 = vrcp.f32 %v4812_v46  ;;  %v4810_v28 = vadd.f32 1.0, %v5510_v31  ;;  %v8032_v45 = vadd.f32 %v7762_v53, %v4647_v55  ;;  %v5366_v27 = vpop.f32.mrf.mxu1  ;;  %v4650_v44 = vmul.f32 %v7757_v49, %v4611_v54 }
 0x306   : > { %v5153_v52 = vmul.f32 -1.442695, %v8022_v10  ;;  %v5512_v0 = vpop.eup %5511  ;;  %4937 = vst.msk [vmem:[%s7820_s12 + $0x98] sm:$0xff] %vm240_vm7, %v4905_v39  ;;  %v4609_v15 = vld [vmem:[#allocation3 + $0xc8] sm:$0xff]  ;;  %4577 = vst.msk [vmem:[#allocation3 + $0xe0] sm:$0xff] %vm240_vm7, %v4544_v17  ;;  %v4547_v34 = vadd.f32 %v5366_v27, %v3285_v5 }
 0x307   : > { %v5514_v19 = vpop.eup %5513  ;;  %v4903_v33 = vmul.f32 %v5512_v0, %v7969_v7  ;;  %5519 = vrcp.f32 %v4810_v28  ;;  %v5151_v32 = vmul.f32 -1.442695, %v8032_v45  ;;  %v4648_v35 = vmul.f32 %v7757_v49, %v4609_v15  ;;  %v4504_v29 = vpop.f32.mrf.mxu1 }
 0x308   : > { %v5516_v42 = vpop.eup %5515  ;;  %v4813_v47 = vadd.f32 1.0, %v5514_v19  ;;  %5521 = vpow2.f32 %v5153_v52  ;;  %v8042_v4 = vadd.f32 %v7762_v53, %v4650_v44  ;;  %4580 = vst.msk [vmem:[#allocation3 + $0xf8] sm:$0xff] %vm240_vm7, %v4547_v34  ;;  %v4545_v36 = vadd.f32 %v4504_v29, %v3283_v9 }
 0x309   : > { %4935 = vst.msk [vmem:[%s7820_s12 + $0x88] sm:$0xff] %vm240_vm7, %v4903_v33  ;;  %v4811_v18 = vadd.f32 1.0, %v5516_v42  ;;  %5523 = vpow2.f32 %v5151_v32  ;;  %v8048_v7 = vadd.f32 %v7762_v53, %v4648_v35 }
 0x30a   : > { %5525 = vrcp.f32 %v4813_v47  ;;  %v5154_v30 = vmul.f32 -1.442695, %v8042_v4  ;;  %4578 = vst.msk [vmem:[#allocation3 + $0xe8] sm:$0xff] %vm240_vm7, %v4545_v36 }
 0x30b   : > { %5527 = vrcp.f32 %v4811_v18  ;;  %v5152_v12 = vmul.f32 -1.442695, %v8048_v7  ;;  %v4614_v16 = vld [vmem:[#allocation3 + $0xf0] sm:$0xff] }
 0x30c   : > { %5529 = vpow2.f32 %v5154_v30  ;;  %v4653_v63 = vmul.f32 %v7757_v49, %v4614_v16 }
 0x30d   : > { %5531 = vpow2.f32 %v5152_v12  ;;  %v4612_v61 = vld [vmem:[#allocation3 + $0xe0] sm:$0xff] }
 0x30e   : > { %v8055_v56 = vadd.f32 %v7762_v53, %v4653_v63  ;;  %v4651_v3 = vmul.f32 %v7757_v49, %v4612_v61 }
 0x30f   : > { %v4615_v48 = vld [vmem:[#allocation3 + $0xf8] sm:$0xff] }
 0x310   : > { %v5157_v21 = vmul.f32 -1.442695, %v8055_v56  ;;  %v8060_v25 = vadd.f32 %v7762_v53, %v4651_v3  ;;  %v4654_v62 = vmul.f32 %v7757_v49, %v4615_v48 }
 0x311   : > { %v4613_v51 = vld [vmem:[#allocation3 + $0xe8] sm:$0xff] }
 0x312   : > { %v5518_v24 = vpop.eup %5517  ;;  %5533 = vpow2.f32 %v5157_v21  ;;  %v5155_v37 = vmul.f32 -1.442695, %v8060_v25  ;;  %v8065_v22 = vadd.f32 %v7762_v53, %v4654_v62  ;;  %v4652_v13 = vmul.f32 %v7757_v49, %v4613_v51 }
 0x313   : > { %v4908_v8 = vmul.f32 %v5518_v24, %v7980_v2 }
 0x314   : > { %v5520_v40 = vpop.eup %5519  ;;  %5535 = vpow2.f32 %v5155_v37  ;;  %v5158_v1 = vmul.f32 -1.442695, %v8065_v22  ;;  %v4691_v41 = vadd.f32 %v5557_v43, %v4652_v13 }
 0x315   : > { %v5522_v58 = vpop.eup %5521  ;;  %4940 = vst.msk [vmem:[%s7820_s12 + $0xb0] sm:$0xff] %vm240_vm7, %v4908_v8  ;;  %v4906_v53 = vmul.f32 %v5520_v40, %v7986_v20 }
 0x316   : > { %v5524_v59 = vpop.eup %5523  ;;  %v4816_v11 = vadd.f32 1.0, %v5522_v58  ;;  %5537 = vpow2.f32 %v5158_v1  ;;  %v5156_v49 = vmul.f32 -1.442695, %v4691_v41 }
 0x317   : > { %v5526_v2 = vpop.eup %5525  ;;  %4938 = vst.msk [vmem:[%s7820_s12 + $0xa0] sm:$0xff] %vm240_vm7, %v4906_v53  ;;  %v4814_v38 = vadd.f32 1.0, %v5524_v59 }
 0x318   : > { %v5528_v23 = vpop.eup %5527  ;;  %v4909_v6 = vmul.f32 %v5526_v2, %v7996_v26  ;;  %5539 = vrcp.f32 %v4816_v11 }
 0x319   : > { %v5530_v57 = vpop.eup %5529  ;;  %v4907_v46 = vmul.f32 %v5528_v23, %v8000_v60  ;;  %5541 = vrcp.f32 %v4814_v38 }
 0x31a   : > { %v5532_v55 = vpop.eup %5531  ;;  %4941 = vst.msk [vmem:[%s7820_s12 + $0xb8] sm:$0xff] %vm240_vm7, %v4909_v6  ;;  %v4817_v20 = vadd.f32 1.0, %v5530_v57  ;;  %5543 = vpow2.f32 %v5156_v49 }
 0x31b   : > { %4939 = vst.msk [vmem:[%s7820_s12 + $0xa8] sm:$0xff] %vm240_vm7, %v4907_v46  ;;  %v4815_v14 = vadd.f32 1.0, %v5532_v55 }
 0x31c   : > { %5545 = vrcp.f32 %v4817_v20 }
 0x31d   : > { %5547 = vrcp.f32 %v4815_v14 }
 0x31f   : > { %v5534_v31 = vpop.eup %5533 }
 0x320   : > { %v4820_v50 = vadd.f32 1.0, %v5534_v31 }
 0x321   : > { %v5536_v26 = vpop.eup %5535 }
 0x322   : > { %5549 = vrcp.f32 %v4820_v50  ;;  %v4818_v5 = vadd.f32 1.0, %v5536_v26 }
 0x323   : > { %v5538_v39 = vpop.eup %5537 }
 0x324   : > { %5551 = vrcp.f32 %v4818_v5  ;;  %v4821_v60 = vadd.f32 1.0, %v5538_v39 }
 0x325   : > { %v5540_v54 = vpop.eup %5539 }
 0x326   : > { %v5542_v17 = vpop.eup %5541  ;;  %v4912_v28 = vmul.f32 %v5540_v54, %v8022_v10  ;;  %5553 = vrcp.f32 %v4821_v60 }
 0x327   : > { %v5544_v52 = vpop.eup %5543  ;;  %v4910_v27 = vmul.f32 %v5542_v17, %v8032_v45 }
 0x328   : > { %4944 = vst.msk [vmem:[%s7820_s12 + $0xd0] sm:$0xff] %vm240_vm7, %v4912_v28  ;;  %v4819_v0 = vadd.f32 1.0, %v5544_v52 }
 0x329   : > { %v5546_v9 = vpop.eup %5545  ;;  %4942 = vst.msk [vmem:[%s7820_s12 + $0xc0] sm:$0xff] %vm240_vm7, %v4910_v27 }
 0x32a   : > { %v5548_v44 = vpop.eup %5547  ;;  %v4913_v15 = vmul.f32 %v5546_v9, %v8042_v4  ;;  %5555 = vrcp.f32 %v4819_v0 }
 0x32b   : > { %v4911_v10 = vmul.f32 %v5548_v44, %v8048_v7 }
 0x32c   : > { %4945 = vst.msk [vmem:[%s7820_s12 + $0xd8] sm:$0xff] %vm240_vm7, %v4913_v15 }
 0x32d   : > { %4943 = vst.msk [vmem:[%s7820_s12 + $0xc8] sm:$0xff] %vm240_vm7, %v4911_v10 }
 0x32f   : > { %v5550_v45 = vpop.eup %5549 }
 0x330   : > { %v4916_v34 = vmul.f32 %v5550_v45, %v8055_v56 }
 0x331   : > { %v5552_v19 = vpop.eup %5551 }
 0x332   : > { %4948 = vst.msk [vmem:[%s7820_s12 + $0xf0] sm:$0xff] %vm240_vm7, %v4916_v34  ;;  %v4914_v33 = vmul.f32 %v5552_v19, %v8060_v25 }
 0x333   : > { %v5554_v32 = vpop.eup %5553 }
 0x334   : > { %4946 = vst.msk [vmem:[%s7820_s12 + $0xe0] sm:$0xff] %vm240_vm7, %v4914_v33  ;;  %v4917_v35 = vmul.f32 %v5554_v32, %v8065_v22 }
 0x336   : > { %4949 = vst.msk [vmem:[%s7820_s12 + $0xf8] sm:$0xff] %vm240_vm7, %v4917_v35 }
 0x337   : > { %v5556_v29 = vpop.eup %5555 }
 0x338   : > { %v4915_v42 = vmul.f32 %v5556_v29, %v4691_v41 }
 0x33a   : > { %4947 = vst.msk [vmem:[%s7820_s12 + $0xe8] sm:$0xff] %vm240_vm7, %v4915_v42 }
 0x33b PF: > { %s14_s17 = sadd.s32 1, %s5580_s17   ;;  %s8185_s15 = smov %s5576_s16 }
 0x33c   : > { %p11_p5 = scmp.ge.s32.totalorder %s14_s17, 4   ;;  %s8186_s16 = smov %s8188_s18 }
 0x33e   :  { %13 = sbr.rel (!%p11_p5) target bundleno = 2 (0x2), region = 81 }

</bundles_post_ra>
